<compile_context>
chip_gen: v5e
topology: v5e:2x2
jax: 0.10.0
libtpu: 0.0.40
codegen_flags: <defaults>
</compile_context>

<pallas_src>
import math

import jax
import jax.numpy as jnp
from jax.experimental import pallas as pl
from jax.experimental.pallas import tpu as pltpu

# ----------------------------- config ---------------------------------------
HIDDEN = 32
HEADS = 2
HEAD_DIM = HIDDEN // HEADS
LAYERS = 2
INTERMEDIATE = 64
PATCH = 4
IMG = 16
CHANNELS = 3
GRID_P = IMG // PATCH
NUM_PATCHES = GRID_P * GRID_P
SEQ = NUM_PATCHES + 1            # +1 CLS token
CPP = CHANNELS * PATCH * PATCH   # flattened patch size
EPS = 1e-12                      # ViT layer_norm_eps
ATTN_SCALE = 1.0 / math.sqrt(HEAD_DIM)

BATCH = 2                        # per-tower batch
BATCH2 = 2 * BATCH               # both towers stacked along batch
ROWS = BATCH2 * SEQ              # activation slab rows (flattened [b, s])


# --------------------------- fused mega-kernel -------------------------------
def _value_vit_kernel(patches_ref, add_ref, patch_w_ref,
                      ln1_g_ref, ln1_b_ref, wqkv_ref, bqkv_ref, wo_ref, bo_ref,
                      ln2_g_ref, ln2_b_ref, w1_ref, b1_ref, w2_ref, b2_ref,
                      lnf_g_ref, lnf_b_ref, pool_w_ref, pool_b_ref,
                      fc_w_ref, fc_b_ref,
                      out_ref,
                      ctx_ref):
    f32 = jnp.float32

    def layer_norm(t, g, b):
        mean = jnp.mean(t, axis=-1, keepdims=True)
        cen = t - mean
        var = jnp.mean(cen * cen, axis=-1, keepdims=True)
        return cen * jax.lax.rsqrt(var + EPS) * g + b

    # ---- embedding: patch matmul + (pos + cls/patch-bias) additive term ----
    # add_ref already contains pos[i] + patch_b for patch rows and
    # pos[0] + cls for the (zero-padded) CLS rows.
    x = jnp.dot(patches_ref[...], patch_w_ref[...],
                preferred_element_type=f32) + add_ref[...]          # [ROWS, H]

    # ---- transformer layers (weights stacked along leading LAYERS axis) ----
    for l in range(LAYERS):
        # --- self-attention block (pre-LN), fused QKV projection ---
        h = layer_norm(x, ln1_g_ref[l], ln1_b_ref[l])
        qkv = jnp.dot(h, wqkv_ref[l], preferred_element_type=f32) + bqkv_ref[l]

        for b in range(BATCH2):
            r0 = b * SEQ
            head_ctx = []
            for hd in range(HEADS):
                c0 = hd * HEAD_DIM
                q = qkv[r0:r0 + SEQ, c0:c0 + HEAD_DIM]
                k = qkv[r0:r0 + SEQ, HIDDEN + c0:HIDDEN + c0 + HEAD_DIM]
                v = qkv[r0:r0 + SEQ, 2 * HIDDEN + c0:2 * HIDDEN + c0 + HEAD_DIM]
                # q @ k^T without an explicit transpose (contract last dims).
                s = jax.lax.dot_general(
                    q, k, (((1,), (1,)), ((), ())),
                    preferred_element_type=f32) * ATTN_SCALE
                s = s - jnp.max(s, axis=-1, keepdims=True)
                w = jnp.exp(s)
                w = w * pl.reciprocal(jnp.sum(w, axis=-1, keepdims=True),
                                      approx=True)
                head_ctx.append(jnp.dot(w, v, preferred_element_type=f32))
            ctx_ref[r0:r0 + SEQ, :] = jnp.concatenate(head_ctx, axis=1)

        attn_out = jnp.dot(ctx_ref[...], wo_ref[l],
                           preferred_element_type=f32) + bo_ref[l]
        x = x + attn_out

        # --- MLP block (pre-LN), fused GELU epilogue ---
        h = layer_norm(x, ln2_g_ref[l], ln2_b_ref[l])
        h = jnp.dot(h, w1_ref[l], preferred_element_type=f32) + b1_ref[l]
        # TODO(synk): HF ViT uses exact erf-GELU; tanh-approx GELU used in-kernel
        # (EUP-friendly, ~1e-3 deviation).
        h = jax.nn.gelu(h, approximate=True)
        h = jnp.dot(h, w2_ref[l], preferred_element_type=f32) + b2_ref[l]
        x = x + h

    # ---- pooler head: CLS rows -> final LN (row-wise) -> dense -> tanh ----
    cls_tok = jnp.concatenate(
        [x[b * SEQ:b * SEQ + 1, :] for b in range(BATCH2)], axis=0)  # [BATCH2, H]
    cls_tok = layer_norm(cls_tok, lnf_g_ref[...], lnf_b_ref[...])
    pooled = jnp.tanh(
        jnp.dot(cls_tok, pool_w_ref[...], preferred_element_type=f32)
        + pool_b_ref[...])                                           # [BATCH2, H]

    # ---- concat(two towers) + final fc, done as a split mul-reduce ----
    fcw = fc_w_ref[...]                                              # [1, 2H]
    out = (jnp.sum(pooled[:BATCH, :] * fcw[:, :HIDDEN], axis=-1, keepdims=True)
           + jnp.sum(pooled[BATCH:, :] * fcw[:, HIDDEN:], axis=-1, keepdims=True)
           + fc_b_ref[...])                                          # [BATCH, 1]
    out_ref[...] = out.astype(out_ref.dtype)


def _full_spec(shape):
    n = len(shape)
    return pl.BlockSpec(shape, lambda i, _n=n: (0,) * _n)


# ----------------------------- forward wrapper -------------------------------
def value_vit_forward(params, image1, image2):
    """image1, image2: [BATCH, 3, IMG, IMG] (NCHW) -> [BATCH, 1]."""
    p = params
    B = image1.shape[0]
    assert B == BATCH

    # Batch the two shared-weight towers together: tower1 rows first.
    images = jnp.concatenate([image1, image2], axis=0)               # [2B,3,H,W]

    # Patchify (conv-as-matmul layout): flatten each patch in (c, ph, pw) order.
    x = images.reshape(BATCH2, CHANNELS, GRID_P, PATCH, GRID_P, PATCH)
    x = x.transpose(0, 2, 4, 1, 3, 5).reshape(BATCH2, NUM_PATCHES, CPP)
    # Insert a zero "patch" at the CLS position so the kernel works on one slab.
    patches = jnp.concatenate(
        [jnp.zeros((BATCH2, 1, CPP), jnp.float32), x], axis=1
    ).reshape(ROWS, CPP)

    # Additive term: pos + patch_b for patch rows, pos[0] + cls for CLS rows.
    pos = p["pos"].reshape(SEQ, HIDDEN)
    add_seq = jnp.concatenate(
        [pos[0:1] + p["cls"].reshape(1, HIDDEN),
         pos[1:] + p["patch_b"].reshape(1, HIDDEN)], axis=0)         # [SEQ, H]
    add_term = jnp.broadcast_to(add_seq[None], (BATCH2, SEQ, HIDDEN)
                                ).reshape(ROWS, HIDDEN)

    args = (patches, add_term, p["patch_w"],
            p["ln1_g"], p["ln1_b"], p["wqkv"], p["bqkv"], p["wo"], p["bo"],
            p["ln2_g"], p["ln2_b"], p["w1"], p["b1"], p["w2"], p["b2"],
            p["lnf_g"], p["lnf_b"], p["pool_w"], p["pool_b"],
            p["fc_w"], p["fc_b"])

    return pl.pallas_call(
        _value_vit_kernel,
        grid=(1,),
        in_specs=[_full_spec(a.shape) for a in args],
        out_specs=_full_spec((BATCH, 1)),
        out_shape=jax.ShapeDtypeStruct((BATCH, 1), jnp.float32),
        scratch_shapes=[pltpu.VMEM((ROWS, HIDDEN), jnp.float32)],
    )(*args)


# --------------------------- parameter init ---------------------------------
def init_params(key):
    scale = 0.02
    keys = list(jax.random.split(key, 16))
    kit = iter(keys)

    def nrm(shape):
        return jax.random.normal(next(kit), shape, jnp.float32) * scale

    def ones(shape):
        return jnp.ones(shape, jnp.float32)

    def zeros(shape):
        return jnp.zeros(shape, jnp.float32)

    L = LAYERS
    return dict(
        # embedding
        patch_w=nrm((CPP, HIDDEN)),
        patch_b=zeros((HIDDEN,)),
        cls=nrm((1, 1, HIDDEN)),
        pos=nrm((1, SEQ, HIDDEN)),
        # transformer layers, stacked along leading LAYERS axis; QKV fused.
        ln1_g=ones((L, 1, HIDDEN)), ln1_b=zeros((L, 1, HIDDEN)),
        wqkv=nrm((L, HIDDEN, 3 * HIDDEN)), bqkv=zeros((L, 1, 3 * HIDDEN)),
        wo=nrm((L, HIDDEN, HIDDEN)), bo=zeros((L, 1, HIDDEN)),
        ln2_g=ones((L, 1, HIDDEN)), ln2_b=zeros((L, 1, HIDDEN)),
        w1=nrm((L, HIDDEN, INTERMEDIATE)), b1=zeros((L, 1, INTERMEDIATE)),
        w2=nrm((L, INTERMEDIATE, HIDDEN)), b2=zeros((L, 1, HIDDEN)),
        # final LN + pooler + fc head
        lnf_g=ones((1, HIDDEN)), lnf_b=zeros((1, HIDDEN)),
        pool_w=nrm((HIDDEN, HIDDEN)), pool_b=zeros((1, HIDDEN)),
        fc_w=nrm((1, 2 * HIDDEN)),        # nn.Linear(2*hidden, 1).weight layout
        fc_b=zeros((1, 1)),
    )


# ------------------------------- main ----------------------------------------
if __name__ == "__main__":
    key = jax.random.PRNGKey(0)
    k_param, k_img1, k_img2 = jax.random.split(key, 3)

    params = init_params(k_param)
    image1 = jax.random.normal(k_img1, (BATCH, CHANNELS, IMG, IMG), jnp.float32)
    image2 = jax.random.normal(k_img2, (BATCH, CHANNELS, IMG, IMG), jnp.float32)

    fwd = jax.jit(value_vit_forward)
    out = jax.block_until_ready(fwd(params, image1, image2))
    assert out.shape == (BATCH, 1) and out.dtype == jnp.float32
    print("KERNEL_OK")
</pallas_src>

<mosaic_0001>
module attributes {stable_mosaic.version = 11 : i64} {
  func.func @_value_vit_kernel(%arg0: i32, %arg1: memref<68x48xf32, #tpu.memory_space<vmem>>, %arg2: memref<68x32xf32, #tpu.memory_space<vmem>>, %arg3: memref<48x32xf32, #tpu.memory_space<vmem>>, %arg4: memref<2x1x32xf32, #tpu.memory_space<vmem>>, %arg5: memref<2x1x32xf32, #tpu.memory_space<vmem>>, %arg6: memref<2x32x96xf32, #tpu.memory_space<vmem>>, %arg7: memref<2x1x96xf32, #tpu.memory_space<vmem>>, %arg8: memref<2x32x32xf32, #tpu.memory_space<vmem>>, %arg9: memref<2x1x32xf32, #tpu.memory_space<vmem>>, %arg10: memref<2x1x32xf32, #tpu.memory_space<vmem>>, %arg11: memref<2x1x32xf32, #tpu.memory_space<vmem>>, %arg12: memref<2x32x64xf32, #tpu.memory_space<vmem>>, %arg13: memref<2x1x64xf32, #tpu.memory_space<vmem>>, %arg14: memref<2x64x32xf32, #tpu.memory_space<vmem>>, %arg15: memref<2x1x32xf32, #tpu.memory_space<vmem>>, %arg16: memref<1x32xf32, #tpu.memory_space<vmem>>, %arg17: memref<1x32xf32, #tpu.memory_space<vmem>>, %arg18: memref<32x32xf32, #tpu.memory_space<vmem>>, %arg19: memref<1x32xf32, #tpu.memory_space<vmem>>, %arg20: memref<1x64xf32, #tpu.memory_space<vmem>>, %arg21: memref<1x1xf32, #tpu.memory_space<vmem>>, %arg22: memref<2x1xf32, #tpu.memory_space<vmem>>, %arg23: memref<68x32xf32, #tpu.memory_space<vmem>>) attributes {dimension_semantics = [#tpu.dimension_semantics<arbitrary>], iteration_bounds = array<i64: 1>, scalar_prefetch = 0 : i64, scratch_operands = 1 : i64, tpu.core_type = #tpu.core_type<tc>, window_params = [{pipeline_mode = #tpu.pipeline_mode<synchronous>, transform_indices = @transform_0, window_bounds = array<i64: 68, 48>}, {pipeline_mode = #tpu.pipeline_mode<synchronous>, transform_indices = @transform_1, window_bounds = array<i64: 68, 32>}, {pipeline_mode = #tpu.pipeline_mode<synchronous>, transform_indices = @transform_2, window_bounds = array<i64: 48, 32>}, {pipeline_mode = #tpu.pipeline_mode<synchronous>, transform_indices = @transform_3, window_bounds = array<i64: 2, 1, 32>}, {pipeline_mode = #tpu.pipeline_mode<synchronous>, transform_indices = @transform_4, window_bounds = array<i64: 2, 1, 32>}, {pipeline_mode = #tpu.pipeline_mode<synchronous>, transform_indices = @transform_5, window_bounds = array<i64: 2, 32, 96>}, {pipeline_mode = #tpu.pipeline_mode<synchronous>, transform_indices = @transform_6, window_bounds = array<i64: 2, 1, 96>}, {pipeline_mode = #tpu.pipeline_mode<synchronous>, transform_indices = @transform_7, window_bounds = array<i64: 2, 32, 32>}, {pipeline_mode = #tpu.pipeline_mode<synchronous>, transform_indices = @transform_8, window_bounds = array<i64: 2, 1, 32>}, {pipeline_mode = #tpu.pipeline_mode<synchronous>, transform_indices = @transform_9, window_bounds = array<i64: 2, 1, 32>}, {pipeline_mode = #tpu.pipeline_mode<synchronous>, transform_indices = @transform_10, window_bounds = array<i64: 2, 1, 32>}, {pipeline_mode = #tpu.pipeline_mode<synchronous>, transform_indices = @transform_11, window_bounds = array<i64: 2, 32, 64>}, {pipeline_mode = #tpu.pipeline_mode<synchronous>, transform_indices = @transform_12, window_bounds = array<i64: 2, 1, 64>}, {pipeline_mode = #tpu.pipeline_mode<synchronous>, transform_indices = @transform_13, window_bounds = array<i64: 2, 64, 32>}, {pipeline_mode = #tpu.pipeline_mode<synchronous>, transform_indices = @transform_14, window_bounds = array<i64: 2, 1, 32>}, {pipeline_mode = #tpu.pipeline_mode<synchronous>, transform_indices = @transform_15, window_bounds = array<i64: 1, 32>}, {pipeline_mode = #tpu.pipeline_mode<synchronous>, transform_indices = @transform_16, window_bounds = array<i64: 1, 32>}, {pipeline_mode = #tpu.pipeline_mode<synchronous>, transform_indices = @transform_17, window_bounds = array<i64: 32, 32>}, {pipeline_mode = #tpu.pipeline_mode<synchronous>, transform_indices = @transform_18, window_bounds = array<i64: 1, 32>}, {pipeline_mode = #tpu.pipeline_mode<synchronous>, transform_indices = @transform_19, window_bounds = array<i64: 1, 64>}, {pipeline_mode = #tpu.pipeline_mode<synchronous>, transform_indices = @transform_20, window_bounds = array<i64: 1, 1>}, {pipeline_mode = #tpu.pipeline_mode<synchronous>, transform_indices = @transform_21, window_bounds = array<i64: 2, 1>}]} {
    %c0 = arith.constant 0 : index
    %c0_0 = arith.constant 0 : index
    %0 = vector.load %arg1[%c0, %c0_0] : memref<68x48xf32, #tpu.memory_space<vmem>>, vector<68x48xf32>
    %c0_1 = arith.constant 0 : index
    %c0_2 = arith.constant 0 : index
    %1 = vector.load %arg3[%c0_1, %c0_2] : memref<48x32xf32, #tpu.memory_space<vmem>>, vector<48x32xf32>
    %cst = arith.constant dense<0.000000e+00> : vector<68x32xf32>
    %2 = tpu.matmul %0, %1, %cst {dimension_numbers = #tpu.dot_dimension_numbers<[1], [0], [0], [1], [0, 0, 1, 1], [], []>} : vector<68x48xf32>, vector<48x32xf32>, vector<68x32xf32> -> vector<68x32xf32>
    %c0_3 = arith.constant 0 : index
    %c0_4 = arith.constant 0 : index
    %3 = vector.load %arg2[%c0_3, %c0_4] : memref<68x32xf32, #tpu.memory_space<vmem>>, vector<68x32xf32>
    %4 = arith.addf %2, %3 : vector<68x32xf32>
    %c0_5 = arith.constant 0 : index
    %c0_6 = arith.constant 0 : index
    %c0_7 = arith.constant 0 : index
    %5 = vector.load %arg4[%c0_5, %c0_6, %c0_7] : memref<2x1x32xf32, #tpu.memory_space<vmem>>, vector<1x1x32xf32>
    %6 = vector.shape_cast %5 : vector<1x1x32xf32> to vector<1x32xf32>
    %c0_8 = arith.constant 0 : index
    %c0_9 = arith.constant 0 : index
    %c0_10 = arith.constant 0 : index
    %7 = vector.load %arg5[%c0_8, %c0_9, %c0_10] : memref<2x1x32xf32, #tpu.memory_space<vmem>>, vector<1x1x32xf32>
    %8 = vector.shape_cast %7 : vector<1x1x32xf32> to vector<1x32xf32>
    %cst_11 = arith.constant dense<0.000000e+00> : vector<68xf32>
    %9 = vector.multi_reduction <add>, %4, %cst_11 [1] : vector<68x32xf32> to vector<68xf32>
    %10 = vector.shape_cast %9 : vector<68xf32> to vector<68x1xf32>
    %cst_12 = arith.constant 3.200000e+01 : f32
    %11 = vector.broadcast %cst_12 : f32 to vector<68x1xf32>
    %12 = arith.divf %10, %11 : vector<68x1xf32>
    %13 = vector.broadcast %12 : vector<68x1xf32> to vector<68x32xf32>
    %14 = arith.subf %4, %13 : vector<68x32xf32>
    %15 = arith.mulf %14, %14 : vector<68x32xf32>
    %cst_13 = arith.constant dense<0.000000e+00> : vector<68xf32>
    %16 = vector.multi_reduction <add>, %15, %cst_13 [1] : vector<68x32xf32> to vector<68xf32>
    %17 = vector.shape_cast %16 : vector<68xf32> to vector<68x1xf32>
    %cst_14 = arith.constant 3.200000e+01 : f32
    %18 = vector.broadcast %cst_14 : f32 to vector<68x1xf32>
    %19 = arith.divf %17, %18 : vector<68x1xf32>
    %cst_15 = arith.constant 9.99999996E-13 : f32
    %20 = vector.broadcast %cst_15 : f32 to vector<68x1xf32>
    %21 = arith.addf %19, %20 : vector<68x1xf32>
    %22 = math.rsqrt %21 : vector<68x1xf32>
    %23 = vector.broadcast %22 : vector<68x1xf32> to vector<68x32xf32>
    %24 = arith.mulf %14, %23 : vector<68x32xf32>
    %25 = vector.broadcast %6 : vector<1x32xf32> to vector<68x32xf32>
    %26 = arith.mulf %24, %25 : vector<68x32xf32>
    %27 = vector.broadcast %8 : vector<1x32xf32> to vector<68x32xf32>
    %28 = arith.addf %26, %27 : vector<68x32xf32>
    %c0_16 = arith.constant 0 : index
    %c0_17 = arith.constant 0 : index
    %c0_18 = arith.constant 0 : index
    %29 = vector.load %arg6[%c0_16, %c0_17, %c0_18] : memref<2x32x96xf32, #tpu.memory_space<vmem>>, vector<1x32x96xf32>
    %30 = vector.shape_cast %29 : vector<1x32x96xf32> to vector<32x96xf32>
    %cst_19 = arith.constant dense<0.000000e+00> : vector<68x96xf32>
    %31 = tpu.matmul %28, %30, %cst_19 {dimension_numbers = #tpu.dot_dimension_numbers<[1], [0], [0], [1], [0, 0, 1, 1], [], []>} : vector<68x32xf32>, vector<32x96xf32>, vector<68x96xf32> -> vector<68x96xf32>
    %c0_20 = arith.constant 0 : index
    %c0_21 = arith.constant 0 : index
    %c0_22 = arith.constant 0 : index
    %32 = vector.load %arg7[%c0_20, %c0_21, %c0_22] : memref<2x1x96xf32, #tpu.memory_space<vmem>>, vector<1x1x96xf32>
    %33 = vector.shape_cast %32 : vector<1x1x96xf32> to vector<1x96xf32>
    %34 = vector.broadcast %33 : vector<1x96xf32> to vector<68x96xf32>
    %35 = arith.addf %31, %34 : vector<68x96xf32>
    %36 = vector.extract_strided_slice %35 {offsets = [0, 0], sizes = [17, 16], strides = [1, 1]} : vector<68x96xf32> to vector<17x16xf32>
    %37 = vector.extract_strided_slice %35 {offsets = [0, 32], sizes = [17, 16], strides = [1, 1]} : vector<68x96xf32> to vector<17x16xf32>
    %38 = vector.extract_strided_slice %35 {offsets = [0, 64], sizes = [17, 16], strides = [1, 1]} : vector<68x96xf32> to vector<17x16xf32>
    %cst_23 = arith.constant dense<0.000000e+00> : vector<17x17xf32>
    %39 = tpu.matmul %36, %37, %cst_23 {dimension_numbers = #tpu.dot_dimension_numbers<[1], [1], [0], [0], [0, 0, 1, 0], [], []>} : vector<17x16xf32>, vector<17x16xf32>, vector<17x17xf32> -> vector<17x17xf32>
    %cst_24 = arith.constant 2.500000e-01 : f32
    %40 = vector.broadcast %cst_24 : f32 to vector<17x17xf32>
    %41 = arith.mulf %39, %40 : vector<17x17xf32>
    %cst_25 = arith.constant dense<0xFF800000> : vector<17xf32>
    %42 = vector.multi_reduction <maximumf>, %41, %cst_25 [1] : vector<17x17xf32> to vector<17xf32>
    %43 = vector.shape_cast %42 : vector<17xf32> to vector<17x1xf32>
    %44 = vector.broadcast %43 : vector<17x1xf32> to vector<17x17xf32>
    %45 = arith.subf %41, %44 : vector<17x17xf32>
    %46 = math.exp %45 : vector<17x17xf32>
    %cst_26 = arith.constant dense<0.000000e+00> : vector<17xf32>
    %47 = vector.multi_reduction <add>, %46, %cst_26 [1] : vector<17x17xf32> to vector<17xf32>
    %48 = vector.shape_cast %47 : vector<17xf32> to vector<17x1xf32>
    %49 = tpu.reciprocal %48 {approx = true} : vector<17x1xf32> -> vector<17x1xf32>
    %50 = vector.broadcast %49 : vector<17x1xf32> to vector<17x17xf32>
    %51 = arith.mulf %46, %50 : vector<17x17xf32>
    %cst_27 = arith.constant dense<0.000000e+00> : vector<17x16xf32>
    %52 = tpu.matmul %51, %38, %cst_27 {dimension_numbers = #tpu.dot_dimension_numbers<[1], [0], [0], [1], [0, 0, 1, 1], [], []>} : vector<17x17xf32>, vector<17x16xf32>, vector<17x16xf32> -> vector<17x16xf32>
    %53 = vector.extract_strided_slice %35 {offsets = [0, 16], sizes = [17, 16], strides = [1, 1]} : vector<68x96xf32> to vector<17x16xf32>
    %54 = vector.extract_strided_slice %35 {offsets = [0, 48], sizes = [17, 16], strides = [1, 1]} : vector<68x96xf32> to vector<17x16xf32>
    %55 = vector.extract_strided_slice %35 {offsets = [0, 80], sizes = [17, 16], strides = [1, 1]} : vector<68x96xf32> to vector<17x16xf32>
    %cst_28 = arith.constant dense<0.000000e+00> : vector<17x17xf32>
    %56 = tpu.matmul %53, %54, %cst_28 {dimension_numbers = #tpu.dot_dimension_numbers<[1], [1], [0], [0], [0, 0, 1, 0], [], []>} : vector<17x16xf32>, vector<17x16xf32>, vector<17x17xf32> -> vector<17x17xf32>
    %cst_29 = arith.constant 2.500000e-01 : f32
    %57 = vector.broadcast %cst_29 : f32 to vector<17x17xf32>
    %58 = arith.mulf %56, %57 : vector<17x17xf32>
    %cst_30 = arith.constant dense<0xFF800000> : vector<17xf32>
    %59 = vector.multi_reduction <maximumf>, %58, %cst_30 [1] : vector<17x17xf32> to vector<17xf32>
    %60 = vector.shape_cast %59 : vector<17xf32> to vector<17x1xf32>
    %61 = vector.broadcast %60 : vector<17x1xf32> to vector<17x17xf32>
    %62 = arith.subf %58, %61 : vector<17x17xf32>
    %63 = math.exp %62 : vector<17x17xf32>
    %cst_31 = arith.constant dense<0.000000e+00> : vector<17xf32>
    %64 = vector.multi_reduction <add>, %63, %cst_31 [1] : vector<17x17xf32> to vector<17xf32>
    %65 = vector.shape_cast %64 : vector<17xf32> to vector<17x1xf32>
    %66 = tpu.reciprocal %65 {approx = true} : vector<17x1xf32> -> vector<17x1xf32>
    %67 = vector.broadcast %66 : vector<17x1xf32> to vector<17x17xf32>
    %68 = arith.mulf %63, %67 : vector<17x17xf32>
    %cst_32 = arith.constant dense<0.000000e+00> : vector<17x16xf32>
    %69 = tpu.matmul %68, %55, %cst_32 {dimension_numbers = #tpu.dot_dimension_numbers<[1], [0], [0], [1], [0, 0, 1, 1], [], []>} : vector<17x17xf32>, vector<17x16xf32>, vector<17x16xf32> -> vector<17x16xf32>
    %70 = tpu.concatenate %52, %69 in 1 : vector<17x16xf32>, vector<17x16xf32> -> vector<17x32xf32>
    %c0_33 = arith.constant 0 : index
    %c0_34 = arith.constant 0 : index
    %71 = vector.load %arg23[%c0_33, %c0_34] : memref<68x32xf32, #tpu.memory_space<vmem>>, vector<17x32xf32>
    tpu.vector_store %arg23[%c0_33, %c0_34], %70 {strides = array<i32>} : memref<68x32xf32, #tpu.memory_space<vmem>>, vector<17x32xf32>,
    %72 = vector.extract_strided_slice %35 {offsets = [17, 0], sizes = [17, 16], strides = [1, 1]} : vector<68x96xf32> to vector<17x16xf32>
    %73 = vector.extract_strided_slice %35 {offsets = [17, 32], sizes = [17, 16], strides = [1, 1]} : vector<68x96xf32> to vector<17x16xf32>
    %74 = vector.extract_strided_slice %35 {offsets = [17, 64], sizes = [17, 16], strides = [1, 1]} : vector<68x96xf32> to vector<17x16xf32>
    %cst_35 = arith.constant dense<0.000000e+00> : vector<17x17xf32>
    %75 = tpu.matmul %72, %73, %cst_35 {dimension_numbers = #tpu.dot_dimension_numbers<[1], [1], [0], [0], [0, 0, 1, 0], [], []>} : vector<17x16xf32>, vector<17x16xf32>, vector<17x17xf32> -> vector<17x17xf32>
    %cst_36 = arith.constant 2.500000e-01 : f32
    %76 = vector.broadcast %cst_36 : f32 to vector<17x17xf32>
    %77 = arith.mulf %75, %76 : vector<17x17xf32>
    %cst_37 = arith.constant dense<0xFF800000> : vector<17xf32>
    %78 = vector.multi_reduction <maximumf>, %77, %cst_37 [1] : vector<17x17xf32> to vector<17xf32>
    %79 = vector.shape_cast %78 : vector<17xf32> to vector<17x1xf32>
    %80 = vector.broadcast %79 : vector<17x1xf32> to vector<17x17xf32>
    %81 = arith.subf %77, %80 : vector<17x17xf32>
    %82 = math.exp %81 : vector<17x17xf32>
    %cst_38 = arith.constant dense<0.000000e+00> : vector<17xf32>
    %83 = vector.multi_reduction <add>, %82, %cst_38 [1] : vector<17x17xf32> to vector<17xf32>
    %84 = vector.shape_cast %83 : vector<17xf32> to vector<17x1xf32>
    %85 = tpu.reciprocal %84 {approx = true} : vector<17x1xf32> -> vector<17x1xf32>
    %86 = vector.broadcast %85 : vector<17x1xf32> to vector<17x17xf32>
    %87 = arith.mulf %82, %86 : vector<17x17xf32>
    %cst_39 = arith.constant dense<0.000000e+00> : vector<17x16xf32>
    %88 = tpu.matmul %87, %74, %cst_39 {dimension_numbers = #tpu.dot_dimension_numbers<[1], [0], [0], [1], [0, 0, 1, 1], [], []>} : vector<17x17xf32>, vector<17x16xf32>, vector<17x16xf32> -> vector<17x16xf32>
    %89 = vector.extract_strided_slice %35 {offsets = [17, 16], sizes = [17, 16], strides = [1, 1]} : vector<68x96xf32> to vector<17x16xf32>
    %90 = vector.extract_strided_slice %35 {offsets = [17, 48], sizes = [17, 16], strides = [1, 1]} : vector<68x96xf32> to vector<17x16xf32>
    %91 = vector.extract_strided_slice %35 {offsets = [17, 80], sizes = [17, 16], strides = [1, 1]} : vector<68x96xf32> to vector<17x16xf32>
    %cst_40 = arith.constant dense<0.000000e+00> : vector<17x17xf32>
    %92 = tpu.matmul %89, %90, %cst_40 {dimension_numbers = #tpu.dot_dimension_numbers<[1], [1], [0], [0], [0, 0, 1, 0], [], []>} : vector<17x16xf32>, vector<17x16xf32>, vector<17x17xf32> -> vector<17x17xf32>
    %cst_41 = arith.constant 2.500000e-01 : f32
    %93 = vector.broadcast %cst_41 : f32 to vector<17x17xf32>
    %94 = arith.mulf %92, %93 : vector<17x17xf32>
    %cst_42 = arith.constant dense<0xFF800000> : vector<17xf32>
    %95 = vector.multi_reduction <maximumf>, %94, %cst_42 [1] : vector<17x17xf32> to vector<17xf32>
    %96 = vector.shape_cast %95 : vector<17xf32> to vector<17x1xf32>
    %97 = vector.broadcast %96 : vector<17x1xf32> to vector<17x17xf32>
    %98 = arith.subf %94, %97 : vector<17x17xf32>
    %99 = math.exp %98 : vector<17x17xf32>
    %cst_43 = arith.constant dense<0.000000e+00> : vector<17xf32>
    %100 = vector.multi_reduction <add>, %99, %cst_43 [1] : vector<17x17xf32> to vector<17xf32>
    %101 = vector.shape_cast %100 : vector<17xf32> to vector<17x1xf32>
    %102 = tpu.reciprocal %101 {approx = true} : vector<17x1xf32> -> vector<17x1xf32>
    %103 = vector.broadcast %102 : vector<17x1xf32> to vector<17x17xf32>
    %104 = arith.mulf %99, %103 : vector<17x17xf32>
    %cst_44 = arith.constant dense<0.000000e+00> : vector<17x16xf32>
    %105 = tpu.matmul %104, %91, %cst_44 {dimension_numbers = #tpu.dot_dimension_numbers<[1], [0], [0], [1], [0, 0, 1, 1], [], []>} : vector<17x17xf32>, vector<17x16xf32>, vector<17x16xf32> -> vector<17x16xf32>
    %106 = tpu.concatenate %88, %105 in 1 : vector<17x16xf32>, vector<17x16xf32> -> vector<17x32xf32>
    %c17 = arith.constant 17 : index
    %c0_45 = arith.constant 0 : index
    %107 = vector.load %arg23[%c17, %c0_45] : memref<68x32xf32, #tpu.memory_space<vmem>>, vector<17x32xf32>
    tpu.vector_store %arg23[%c17, %c0_45], %106 {strides = array<i32>} : memref<68x32xf32, #tpu.memory_space<vmem>>, vector<17x32xf32>,
    %108 = vector.extract_strided_slice %35 {offsets = [34, 0], sizes = [17, 16], strides = [1, 1]} : vector<68x96xf32> to vector<17x16xf32>
    %109 = vector.extract_strided_slice %35 {offsets = [34, 32], sizes = [17, 16], strides = [1, 1]} : vector<68x96xf32> to vector<17x16xf32>
    %110 = vector.extract_strided_slice %35 {offsets = [34, 64], sizes = [17, 16], strides = [1, 1]} : vector<68x96xf32> to vector<17x16xf32>
    %cst_46 = arith.constant dense<0.000000e+00> : vector<17x17xf32>
    %111 = tpu.matmul %108, %109, %cst_46 {dimension_numbers = #tpu.dot_dimension_numbers<[1], [1], [0], [0], [0, 0, 1, 0], [], []>} : vector<17x16xf32>, vector<17x16xf32>, vector<17x17xf32> -> vector<17x17xf32>
    %cst_47 = arith.constant 2.500000e-01 : f32
    %112 = vector.broadcast %cst_47 : f32 to vector<17x17xf32>
    %113 = arith.mulf %111, %112 : vector<17x17xf32>
    %cst_48 = arith.constant dense<0xFF800000> : vector<17xf32>
    %114 = vector.multi_reduction <maximumf>, %113, %cst_48 [1] : vector<17x17xf32> to vector<17xf32>
    %115 = vector.shape_cast %114 : vector<17xf32> to vector<17x1xf32>
    %116 = vector.broadcast %115 : vector<17x1xf32> to vector<17x17xf32>
    %117 = arith.subf %113, %116 : vector<17x17xf32>
    %118 = math.exp %117 : vector<17x17xf32>
    %cst_49 = arith.constant dense<0.000000e+00> : vector<17xf32>
    %119 = vector.multi_reduction <add>, %118, %cst_49 [1] : vector<17x17xf32> to vector<17xf32>
    %120 = vector.shape_cast %119 : vector<17xf32> to vector<17x1xf32>
    %121 = tpu.reciprocal %120 {approx = true} : vector<17x1xf32> -> vector<17x1xf32>
    %122 = vector.broadcast %121 : vector<17x1xf32> to vector<17x17xf32>
    %123 = arith.mulf %118, %122 : vector<17x17xf32>
    %cst_50 = arith.constant dense<0.000000e+00> : vector<17x16xf32>
    %124 = tpu.matmul %123, %110, %cst_50 {dimension_numbers = #tpu.dot_dimension_numbers<[1], [0], [0], [1], [0, 0, 1, 1], [], []>} : vector<17x17xf32>, vector<17x16xf32>, vector<17x16xf32> -> vector<17x16xf32>
    %125 = vector.extract_strided_slice %35 {offsets = [34, 16], sizes = [17, 16], strides = [1, 1]} : vector<68x96xf32> to vector<17x16xf32>
    %126 = vector.extract_strided_slice %35 {offsets = [34, 48], sizes = [17, 16], strides = [1, 1]} : vector<68x96xf32> to vector<17x16xf32>
    %127 = vector.extract_strided_slice %35 {offsets = [34, 80], sizes = [17, 16], strides = [1, 1]} : vector<68x96xf32> to vector<17x16xf32>
    %cst_51 = arith.constant dense<0.000000e+00> : vector<17x17xf32>
    %128 = tpu.matmul %125, %126, %cst_51 {dimension_numbers = #tpu.dot_dimension_numbers<[1], [1], [0], [0], [0, 0, 1, 0], [], []>} : vector<17x16xf32>, vector<17x16xf32>, vector<17x17xf32> -> vector<17x17xf32>
    %cst_52 = arith.constant 2.500000e-01 : f32
    %129 = vector.broadcast %cst_52 : f32 to vector<17x17xf32>
    %130 = arith.mulf %128, %129 : vector<17x17xf32>
    %cst_53 = arith.constant dense<0xFF800000> : vector<17xf32>
    %131 = vector.multi_reduction <maximumf>, %130, %cst_53 [1] : vector<17x17xf32> to vector<17xf32>
    %132 = vector.shape_cast %131 : vector<17xf32> to vector<17x1xf32>
    %133 = vector.broadcast %132 : vector<17x1xf32> to vector<17x17xf32>
    %134 = arith.subf %130, %133 : vector<17x17xf32>
    %135 = math.exp %134 : vector<17x17xf32>
    %cst_54 = arith.constant dense<0.000000e+00> : vector<17xf32>
    %136 = vector.multi_reduction <add>, %135, %cst_54 [1] : vector<17x17xf32> to vector<17xf32>
    %137 = vector.shape_cast %136 : vector<17xf32> to vector<17x1xf32>
    %138 = tpu.reciprocal %137 {approx = true} : vector<17x1xf32> -> vector<17x1xf32>
    %139 = vector.broadcast %138 : vector<17x1xf32> to vector<17x17xf32>
    %140 = arith.mulf %135, %139 : vector<17x17xf32>
    %cst_55 = arith.constant dense<0.000000e+00> : vector<17x16xf32>
    %141 = tpu.matmul %140, %127, %cst_55 {dimension_numbers = #tpu.dot_dimension_numbers<[1], [0], [0], [1], [0, 0, 1, 1], [], []>} : vector<17x17xf32>, vector<17x16xf32>, vector<17x16xf32> -> vector<17x16xf32>
    %142 = tpu.concatenate %124, %141 in 1 : vector<17x16xf32>, vector<17x16xf32> -> vector<17x32xf32>
    %c34 = arith.constant 34 : index
    %c0_56 = arith.constant 0 : index
    %143 = vector.load %arg23[%c34, %c0_56] : memref<68x32xf32, #tpu.memory_space<vmem>>, vector<17x32xf32>
    tpu.vector_store %arg23[%c34, %c0_56], %142 {strides = array<i32>} : memref<68x32xf32, #tpu.memory_space<vmem>>, vector<17x32xf32>,
    %144 = vector.extract_strided_slice %35 {offsets = [51, 0], sizes = [17, 16], strides = [1, 1]} : vector<68x96xf32> to vector<17x16xf32>
    %145 = vector.extract_strided_slice %35 {offsets = [51, 32], sizes = [17, 16], strides = [1, 1]} : vector<68x96xf32> to vector<17x16xf32>
    %146 = vector.extract_strided_slice %35 {offsets = [51, 64], sizes = [17, 16], strides = [1, 1]} : vector<68x96xf32> to vector<17x16xf32>
    %cst_57 = arith.constant dense<0.000000e+00> : vector<17x17xf32>
    %147 = tpu.matmul %144, %145, %cst_57 {dimension_numbers = #tpu.dot_dimension_numbers<[1], [1], [0], [0], [0, 0, 1, 0], [], []>} : vector<17x16xf32>, vector<17x16xf32>, vector<17x17xf32> -> vector<17x17xf32>
    %cst_58 = arith.constant 2.500000e-01 : f32
    %148 = vector.broadcast %cst_58 : f32 to vector<17x17xf32>
    %149 = arith.mulf %147, %148 : vector<17x17xf32>
    %cst_59 = arith.constant dense<0xFF800000> : vector<17xf32>
    %150 = vector.multi_reduction <maximumf>, %149, %cst_59 [1] : vector<17x17xf32> to vector<17xf32>
    %151 = vector.shape_cast %150 : vector<17xf32> to vector<17x1xf32>
    %152 = vector.broadcast %151 : vector<17x1xf32> to vector<17x17xf32>
    %153 = arith.subf %149, %152 : vector<17x17xf32>
    %154 = math.exp %153 : vector<17x17xf32>
    %cst_60 = arith.constant dense<0.000000e+00> : vector<17xf32>
    %155 = vector.multi_reduction <add>, %154, %cst_60 [1] : vector<17x17xf32> to vector<17xf32>
    %156 = vector.shape_cast %155 : vector<17xf32> to vector<17x1xf32>
    %157 = tpu.reciprocal %156 {approx = true} : vector<17x1xf32> -> vector<17x1xf32>
    %158 = vector.broadcast %157 : vector<17x1xf32> to vector<17x17xf32>
    %159 = arith.mulf %154, %158 : vector<17x17xf32>
    %cst_61 = arith.constant dense<0.000000e+00> : vector<17x16xf32>
    %160 = tpu.matmul %159, %146, %cst_61 {dimension_numbers = #tpu.dot_dimension_numbers<[1], [0], [0], [1], [0, 0, 1, 1], [], []>} : vector<17x17xf32>, vector<17x16xf32>, vector<17x16xf32> -> vector<17x16xf32>
    %161 = vector.extract_strided_slice %35 {offsets = [51, 16], sizes = [17, 16], strides = [1, 1]} : vector<68x96xf32> to vector<17x16xf32>
    %162 = vector.extract_strided_slice %35 {offsets = [51, 48], sizes = [17, 16], strides = [1, 1]} : vector<68x96xf32> to vector<17x16xf32>
    %163 = vector.extract_strided_slice %35 {offsets = [51, 80], sizes = [17, 16], strides = [1, 1]} : vector<68x96xf32> to vector<17x16xf32>
    %cst_62 = arith.constant dense<0.000000e+00> : vector<17x17xf32>
    %164 = tpu.matmul %161, %162, %cst_62 {dimension_numbers = #tpu.dot_dimension_numbers<[1], [1], [0], [0], [0, 0, 1, 0], [], []>} : vector<17x16xf32>, vector<17x16xf32>, vector<17x17xf32> -> vector<17x17xf32>
    %cst_63 = arith.constant 2.500000e-01 : f32
    %165 = vector.broadcast %cst_63 : f32 to vector<17x17xf32>
    %166 = arith.mulf %164, %165 : vector<17x17xf32>
    %cst_64 = arith.constant dense<0xFF800000> : vector<17xf32>
    %167 = vector.multi_reduction <maximumf>, %166, %cst_64 [1] : vector<17x17xf32> to vector<17xf32>
    %168 = vector.shape_cast %167 : vector<17xf32> to vector<17x1xf32>
    %169 = vector.broadcast %168 : vector<17x1xf32> to vector<17x17xf32>
    %170 = arith.subf %166, %169 : vector<17x17xf32>
    %171 = math.exp %170 : vector<17x17xf32>
    %cst_65 = arith.constant dense<0.000000e+00> : vector<17xf32>
    %172 = vector.multi_reduction <add>, %171, %cst_65 [1] : vector<17x17xf32> to vector<17xf32>
    %173 = vector.shape_cast %172 : vector<17xf32> to vector<17x1xf32>
    %174 = tpu.reciprocal %173 {approx = true} : vector<17x1xf32> -> vector<17x1xf32>
    %175 = vector.broadcast %174 : vector<17x1xf32> to vector<17x17xf32>
    %176 = arith.mulf %171, %175 : vector<17x17xf32>
    %cst_66 = arith.constant dense<0.000000e+00> : vector<17x16xf32>
    %177 = tpu.matmul %176, %163, %cst_66 {dimension_numbers = #tpu.dot_dimension_numbers<[1], [0], [0], [1], [0, 0, 1, 1], [], []>} : vector<17x17xf32>, vector<17x16xf32>, vector<17x16xf32> -> vector<17x16xf32>
    %178 = tpu.concatenate %160, %177 in 1 : vector<17x16xf32>, vector<17x16xf32> -> vector<17x32xf32>
    %c51 = arith.constant 51 : index
    %c0_67 = arith.constant 0 : index
    %179 = vector.load %arg23[%c51, %c0_67] : memref<68x32xf32, #tpu.memory_space<vmem>>, vector<17x32xf32>
    tpu.vector_store %arg23[%c51, %c0_67], %178 {strides = array<i32>} : memref<68x32xf32, #tpu.memory_space<vmem>>, vector<17x32xf32>,
    %c0_68 = arith.constant 0 : index
    %c0_69 = arith.constant 0 : index
    %180 = vector.load %arg23[%c0_68, %c0_69] : memref<68x32xf32, #tpu.memory_space<vmem>>, vector<68x32xf32>
    %c0_70 = arith.constant 0 : index
    %c0_71 = arith.constant 0 : index
    %c0_72 = arith.constant 0 : index
    %181 = vector.load %arg8[%c0_70, %c0_71, %c0_72] : memref<2x32x32xf32, #tpu.memory_space<vmem>>, vector<1x32x32xf32>
    %182 = vector.shape_cast %181 : vector<1x32x32xf32> to vector<32x32xf32>
    %cst_73 = arith.constant dense<0.000000e+00> : vector<68x32xf32>
    %183 = tpu.matmul %180, %182, %cst_73 {dimension_numbers = #tpu.dot_dimension_numbers<[1], [0], [0], [1], [0, 0, 1, 1], [], []>} : vector<68x32xf32>, vector<32x32xf32>, vector<68x32xf32> -> vector<68x32xf32>
    %c0_74 = arith.constant 0 : index
    %c0_75 = arith.constant 0 : index
    %c0_76 = arith.constant 0 : index
    %184 = vector.load %arg9[%c0_74, %c0_75, %c0_76] : memref<2x1x32xf32, #tpu.memory_space<vmem>>, vector<1x1x32xf32>
    %185 = vector.shape_cast %184 : vector<1x1x32xf32> to vector<1x32xf32>
    %186 = vector.broadcast %185 : vector<1x32xf32> to vector<68x32xf32>
    %187 = arith.addf %183, %186 : vector<68x32xf32>
    %188 = arith.addf %4, %187 : vector<68x32xf32>
    %c0_77 = arith.constant 0 : index
    %c0_78 = arith.constant 0 : index
    %c0_79 = arith.constant 0 : index
    %189 = vector.load %arg10[%c0_77, %c0_78, %c0_79] : memref<2x1x32xf32, #tpu.memory_space<vmem>>, vector<1x1x32xf32>
    %190 = vector.shape_cast %189 : vector<1x1x32xf32> to vector<1x32xf32>
    %c0_80 = arith.constant 0 : index
    %c0_81 = arith.constant 0 : index
    %c0_82 = arith.constant 0 : index
    %191 = vector.load %arg11[%c0_80, %c0_81, %c0_82] : memref<2x1x32xf32, #tpu.memory_space<vmem>>, vector<1x1x32xf32>
    %192 = vector.shape_cast %191 : vector<1x1x32xf32> to vector<1x32xf32>
    %cst_83 = arith.constant dense<0.000000e+00> : vector<68xf32>
    %193 = vector.multi_reduction <add>, %188, %cst_83 [1] : vector<68x32xf32> to vector<68xf32>
    %194 = vector.shape_cast %193 : vector<68xf32> to vector<68x1xf32>
    %cst_84 = arith.constant 3.200000e+01 : f32
    %195 = vector.broadcast %cst_84 : f32 to vector<68x1xf32>
    %196 = arith.divf %194, %195 : vector<68x1xf32>
    %197 = vector.broadcast %196 : vector<68x1xf32> to vector<68x32xf32>
    %198 = arith.subf %188, %197 : vector<68x32xf32>
    %199 = arith.mulf %198, %198 : vector<68x32xf32>
    %cst_85 = arith.constant dense<0.000000e+00> : vector<68xf32>
    %200 = vector.multi_reduction <add>, %199, %cst_85 [1] : vector<68x32xf32> to vector<68xf32>
    %201 = vector.shape_cast %200 : vector<68xf32> to vector<68x1xf32>
    %cst_86 = arith.constant 3.200000e+01 : f32
    %202 = vector.broadcast %cst_86 : f32 to vector<68x1xf32>
    %203 = arith.divf %201, %202 : vector<68x1xf32>
    %cst_87 = arith.constant 9.99999996E-13 : f32
    %204 = vector.broadcast %cst_87 : f32 to vector<68x1xf32>
    %205 = arith.addf %203, %204 : vector<68x1xf32>
    %206 = math.rsqrt %205 : vector<68x1xf32>
    %207 = vector.broadcast %206 : vector<68x1xf32> to vector<68x32xf32>
    %208 = arith.mulf %198, %207 : vector<68x32xf32>
    %209 = vector.broadcast %190 : vector<1x32xf32> to vector<68x32xf32>
    %210 = arith.mulf %208, %209 : vector<68x32xf32>
    %211 = vector.broadcast %192 : vector<1x32xf32> to vector<68x32xf32>
    %212 = arith.addf %210, %211 : vector<68x32xf32>
    %c0_88 = arith.constant 0 : index
    %c0_89 = arith.constant 0 : index
    %c0_90 = arith.constant 0 : index
    %213 = vector.load %arg12[%c0_88, %c0_89, %c0_90] : memref<2x32x64xf32, #tpu.memory_space<vmem>>, vector<1x32x64xf32>
    %214 = vector.shape_cast %213 : vector<1x32x64xf32> to vector<32x64xf32>
    %cst_91 = arith.constant dense<0.000000e+00> : vector<68x64xf32>
    %215 = tpu.matmul %212, %214, %cst_91 {dimension_numbers = #tpu.dot_dimension_numbers<[1], [0], [0], [1], [0, 0, 1, 1], [], []>} : vector<68x32xf32>, vector<32x64xf32>, vector<68x64xf32> -> vector<68x64xf32>
    %c0_92 = arith.constant 0 : index
    %c0_93 = arith.constant 0 : index
    %c0_94 = arith.constant 0 : index
    %216 = vector.load %arg13[%c0_92, %c0_93, %c0_94] : memref<2x1x64xf32, #tpu.memory_space<vmem>>, vector<1x1x64xf32>
    %217 = vector.shape_cast %216 : vector<1x1x64xf32> to vector<1x64xf32>
    %218 = vector.broadcast %217 : vector<1x64xf32> to vector<68x64xf32>
    %219 = arith.addf %215, %218 : vector<68x64xf32>
    %220 = arith.mulf %219, %219 : vector<68x64xf32>
    %221 = arith.mulf %219, %220 : vector<68x64xf32>
    %cst_95 = arith.constant 4.471500e-02 : f32
    %222 = vector.broadcast %cst_95 : f32 to vector<68x64xf32>
    %223 = arith.mulf %222, %221 : vector<68x64xf32>
    %224 = arith.addf %219, %223 : vector<68x64xf32>
    %cst_96 = arith.constant 0.797884583 : f32
    %225 = vector.broadcast %cst_96 : f32 to vector<68x64xf32>
    %226 = arith.mulf %225, %224 : vector<68x64xf32>
    %227 = math.tanh %226 : vector<68x64xf32>
    %cst_97 = arith.constant 1.000000e+00 : f32
    %228 = vector.broadcast %cst_97 : f32 to vector<68x64xf32>
    %229 = arith.addf %228, %227 : vector<68x64xf32>
    %cst_98 = arith.constant 5.000000e-01 : f32
    %230 = vector.broadcast %cst_98 : f32 to vector<68x64xf32>
    %231 = arith.mulf %230, %229 : vector<68x64xf32>
    %232 = arith.mulf %219, %231 : vector<68x64xf32>
    %c0_99 = arith.constant 0 : index
    %c0_100 = arith.constant 0 : index
    %c0_101 = arith.constant 0 : index
    %233 = vector.load %arg14[%c0_99, %c0_100, %c0_101] : memref<2x64x32xf32, #tpu.memory_space<vmem>>, vector<1x64x32xf32>
    %234 = vector.shape_cast %233 : vector<1x64x32xf32> to vector<64x32xf32>
    %cst_102 = arith.constant dense<0.000000e+00> : vector<68x32xf32>
    %235 = tpu.matmul %232, %234, %cst_102 {dimension_numbers = #tpu.dot_dimension_numbers<[1], [0], [0], [1], [0, 0, 1, 1], [], []>} : vector<68x64xf32>, vector<64x32xf32>, vector<68x32xf32> -> vector<68x32xf32>
    %c0_103 = arith.constant 0 : index
    %c0_104 = arith.constant 0 : index
    %c0_105 = arith.constant 0 : index
    %236 = vector.load %arg15[%c0_103, %c0_104, %c0_105] : memref<2x1x32xf32, #tpu.memory_space<vmem>>, vector<1x1x32xf32>
    %237 = vector.shape_cast %236 : vector<1x1x32xf32> to vector<1x32xf32>
    %238 = vector.broadcast %237 : vector<1x32xf32> to vector<68x32xf32>
    %239 = arith.addf %235, %238 : vector<68x32xf32>
    %240 = arith.addf %188, %239 : vector<68x32xf32>
    %c1 = arith.constant 1 : index
    %c0_106 = arith.constant 0 : index
    %c0_107 = arith.constant 0 : index
    %241 = vector.load %arg4[%c1, %c0_106, %c0_107] : memref<2x1x32xf32, #tpu.memory_space<vmem>>, vector<1x1x32xf32>
    %242 = vector.shape_cast %241 : vector<1x1x32xf32> to vector<1x32xf32>
    %c1_108 = arith.constant 1 : index
    %c0_109 = arith.constant 0 : index
    %c0_110 = arith.constant 0 : index
    %243 = vector.load %arg5[%c1_108, %c0_109, %c0_110] : memref<2x1x32xf32, #tpu.memory_space<vmem>>, vector<1x1x32xf32>
    %244 = vector.shape_cast %243 : vector<1x1x32xf32> to vector<1x32xf32>
    %cst_111 = arith.constant dense<0.000000e+00> : vector<68xf32>
    %245 = vector.multi_reduction <add>, %240, %cst_111 [1] : vector<68x32xf32> to vector<68xf32>
    %246 = vector.shape_cast %245 : vector<68xf32> to vector<68x1xf32>
    %cst_112 = arith.constant 3.200000e+01 : f32
    %247 = vector.broadcast %cst_112 : f32 to vector<68x1xf32>
    %248 = arith.divf %246, %247 : vector<68x1xf32>
    %249 = vector.broadcast %248 : vector<68x1xf32> to vector<68x32xf32>
    %250 = arith.subf %240, %249 : vector<68x32xf32>
    %251 = arith.mulf %250, %250 : vector<68x32xf32>
    %cst_113 = arith.constant dense<0.000000e+00> : vector<68xf32>
    %252 = vector.multi_reduction <add>, %251, %cst_113 [1] : vector<68x32xf32> to vector<68xf32>
    %253 = vector.shape_cast %252 : vector<68xf32> to vector<68x1xf32>
    %cst_114 = arith.constant 3.200000e+01 : f32
    %254 = vector.broadcast %cst_114 : f32 to vector<68x1xf32>
    %255 = arith.divf %253, %254 : vector<68x1xf32>
    %cst_115 = arith.constant 9.99999996E-13 : f32
    %256 = vector.broadcast %cst_115 : f32 to vector<68x1xf32>
    %257 = arith.addf %255, %256 : vector<68x1xf32>
    %258 = math.rsqrt %257 : vector<68x1xf32>
    %259 = vector.broadcast %258 : vector<68x1xf32> to vector<68x32xf32>
    %260 = arith.mulf %250, %259 : vector<68x32xf32>
    %261 = vector.broadcast %242 : vector<1x32xf32> to vector<68x32xf32>
    %262 = arith.mulf %260, %261 : vector<68x32xf32>
    %263 = vector.broadcast %244 : vector<1x32xf32> to vector<68x32xf32>
    %264 = arith.addf %262, %263 : vector<68x32xf32>
    %c1_116 = arith.constant 1 : index
    %c0_117 = arith.constant 0 : index
    %c0_118 = arith.constant 0 : index
    %265 = vector.load %arg6[%c1_116, %c0_117, %c0_118] : memref<2x32x96xf32, #tpu.memory_space<vmem>>, vector<1x32x96xf32>
    %266 = vector.shape_cast %265 : vector<1x32x96xf32> to vector<32x96xf32>
    %cst_119 = arith.constant dense<0.000000e+00> : vector<68x96xf32>
    %267 = tpu.matmul %264, %266, %cst_119 {dimension_numbers = #tpu.dot_dimension_numbers<[1], [0], [0], [1], [0, 0, 1, 1], [], []>} : vector<68x32xf32>, vector<32x96xf32>, vector<68x96xf32> -> vector<68x96xf32>
    %c1_120 = arith.constant 1 : index
    %c0_121 = arith.constant 0 : index
    %c0_122 = arith.constant 0 : index
    %268 = vector.load %arg7[%c1_120, %c0_121, %c0_122] : memref<2x1x96xf32, #tpu.memory_space<vmem>>, vector<1x1x96xf32>
    %269 = vector.shape_cast %268 : vector<1x1x96xf32> to vector<1x96xf32>
    %270 = vector.broadcast %269 : vector<1x96xf32> to vector<68x96xf32>
    %271 = arith.addf %267, %270 : vector<68x96xf32>
    %272 = vector.extract_strided_slice %271 {offsets = [0, 0], sizes = [17, 16], strides = [1, 1]} : vector<68x96xf32> to vector<17x16xf32>
    %273 = vector.extract_strided_slice %271 {offsets = [0, 32], sizes = [17, 16], strides = [1, 1]} : vector<68x96xf32> to vector<17x16xf32>
    %274 = vector.extract_strided_slice %271 {offsets = [0, 64], sizes = [17, 16], strides = [1, 1]} : vector<68x96xf32> to vector<17x16xf32>
    %cst_123 = arith.constant dense<0.000000e+00> : vector<17x17xf32>
    %275 = tpu.matmul %272, %273, %cst_123 {dimension_numbers = #tpu.dot_dimension_numbers<[1], [1], [0], [0], [0, 0, 1, 0], [], []>} : vector<17x16xf32>, vector<17x16xf32>, vector<17x17xf32> -> vector<17x17xf32>
    %cst_124 = arith.constant 2.500000e-01 : f32
    %276 = vector.broadcast %cst_124 : f32 to vector<17x17xf32>
    %277 = arith.mulf %275, %276 : vector<17x17xf32>
    %cst_125 = arith.constant dense<0xFF800000> : vector<17xf32>
    %278 = vector.multi_reduction <maximumf>, %277, %cst_125 [1] : vector<17x17xf32> to vector<17xf32>
    %279 = vector.shape_cast %278 : vector<17xf32> to vector<17x1xf32>
    %280 = vector.broadcast %279 : vector<17x1xf32> to vector<17x17xf32>
    %281 = arith.subf %277, %280 : vector<17x17xf32>
    %282 = math.exp %281 : vector<17x17xf32>
    %cst_126 = arith.constant dense<0.000000e+00> : vector<17xf32>
    %283 = vector.multi_reduction <add>, %282, %cst_126 [1] : vector<17x17xf32> to vector<17xf32>
    %284 = vector.shape_cast %283 : vector<17xf32> to vector<17x1xf32>
    %285 = tpu.reciprocal %284 {approx = true} : vector<17x1xf32> -> vector<17x1xf32>
    %286 = vector.broadcast %285 : vector<17x1xf32> to vector<17x17xf32>
    %287 = arith.mulf %282, %286 : vector<17x17xf32>
    %cst_127 = arith.constant dense<0.000000e+00> : vector<17x16xf32>
    %288 = tpu.matmul %287, %274, %cst_127 {dimension_numbers = #tpu.dot_dimension_numbers<[1], [0], [0], [1], [0, 0, 1, 1], [], []>} : vector<17x17xf32>, vector<17x16xf32>, vector<17x16xf32> -> vector<17x16xf32>
    %289 = vector.extract_strided_slice %271 {offsets = [0, 16], sizes = [17, 16], strides = [1, 1]} : vector<68x96xf32> to vector<17x16xf32>
    %290 = vector.extract_strided_slice %271 {offsets = [0, 48], sizes = [17, 16], strides = [1, 1]} : vector<68x96xf32> to vector<17x16xf32>
    %291 = vector.extract_strided_slice %271 {offsets = [0, 80], sizes = [17, 16], strides = [1, 1]} : vector<68x96xf32> to vector<17x16xf32>
    %cst_128 = arith.constant dense<0.000000e+00> : vector<17x17xf32>
    %292 = tpu.matmul %289, %290, %cst_128 {dimension_numbers = #tpu.dot_dimension_numbers<[1], [1], [0], [0], [0, 0, 1, 0], [], []>} : vector<17x16xf32>, vector<17x16xf32>, vector<17x17xf32> -> vector<17x17xf32>
    %cst_129 = arith.constant 2.500000e-01 : f32
    %293 = vector.broadcast %cst_129 : f32 to vector<17x17xf32>
    %294 = arith.mulf %292, %293 : vector<17x17xf32>
    %cst_130 = arith.constant dense<0xFF800000> : vector<17xf32>
    %295 = vector.multi_reduction <maximumf>, %294, %cst_130 [1] : vector<17x17xf32> to vector<17xf32>
    %296 = vector.shape_cast %295 : vector<17xf32> to vector<17x1xf32>
    %297 = vector.broadcast %296 : vector<17x1xf32> to vector<17x17xf32>
    %298 = arith.subf %294, %297 : vector<17x17xf32>
    %299 = math.exp %298 : vector<17x17xf32>
    %cst_131 = arith.constant dense<0.000000e+00> : vector<17xf32>
    %300 = vector.multi_reduction <add>, %299, %cst_131 [1] : vector<17x17xf32> to vector<17xf32>
    %301 = vector.shape_cast %300 : vector<17xf32> to vector<17x1xf32>
    %302 = tpu.reciprocal %301 {approx = true} : vector<17x1xf32> -> vector<17x1xf32>
    %303 = vector.broadcast %302 : vector<17x1xf32> to vector<17x17xf32>
    %304 = arith.mulf %299, %303 : vector<17x17xf32>
    %cst_132 = arith.constant dense<0.000000e+00> : vector<17x16xf32>
    %305 = tpu.matmul %304, %291, %cst_132 {dimension_numbers = #tpu.dot_dimension_numbers<[1], [0], [0], [1], [0, 0, 1, 1], [], []>} : vector<17x17xf32>, vector<17x16xf32>, vector<17x16xf32> -> vector<17x16xf32>
    %306 = tpu.concatenate %288, %305 in 1 : vector<17x16xf32>, vector<17x16xf32> -> vector<17x32xf32>
    %c0_133 = arith.constant 0 : index
    %c0_134 = arith.constant 0 : index
    %307 = vector.load %arg23[%c0_133, %c0_134] : memref<68x32xf32, #tpu.memory_space<vmem>>, vector<17x32xf32>
    tpu.vector_store %arg23[%c0_133, %c0_134], %306 {strides = array<i32>} : memref<68x32xf32, #tpu.memory_space<vmem>>, vector<17x32xf32>,
    %308 = vector.extract_strided_slice %271 {offsets = [17, 0], sizes = [17, 16], strides = [1, 1]} : vector<68x96xf32> to vector<17x16xf32>
    %309 = vector.extract_strided_slice %271 {offsets = [17, 32], sizes = [17, 16], strides = [1, 1]} : vector<68x96xf32> to vector<17x16xf32>
    %310 = vector.extract_strided_slice %271 {offsets = [17, 64], sizes = [17, 16], strides = [1, 1]} : vector<68x96xf32> to vector<17x16xf32>
    %cst_135 = arith.constant dense<0.000000e+00> : vector<17x17xf32>
    %311 = tpu.matmul %308, %309, %cst_135 {dimension_numbers = #tpu.dot_dimension_numbers<[1], [1], [0], [0], [0, 0, 1, 0], [], []>} : vector<17x16xf32>, vector<17x16xf32>, vector<17x17xf32> -> vector<17x17xf32>
    %cst_136 = arith.constant 2.500000e-01 : f32
    %312 = vector.broadcast %cst_136 : f32 to vector<17x17xf32>
    %313 = arith.mulf %311, %312 : vector<17x17xf32>
    %cst_137 = arith.constant dense<0xFF800000> : vector<17xf32>
    %314 = vector.multi_reduction <maximumf>, %313, %cst_137 [1] : vector<17x17xf32> to vector<17xf32>
    %315 = vector.shape_cast %314 : vector<17xf32> to vector<17x1xf32>
    %316 = vector.broadcast %315 : vector<17x1xf32> to vector<17x17xf32>
    %317 = arith.subf %313, %316 : vector<17x17xf32>
    %318 = math.exp %317 : vector<17x17xf32>
    %cst_138 = arith.constant dense<0.000000e+00> : vector<17xf32>
    %319 = vector.multi_reduction <add>, %318, %cst_138 [1] : vector<17x17xf32> to vector<17xf32>
    %320 = vector.shape_cast %319 : vector<17xf32> to vector<17x1xf32>
    %321 = tpu.reciprocal %320 {approx = true} : vector<17x1xf32> -> vector<17x1xf32>
    %322 = vector.broadcast %321 : vector<17x1xf32> to vector<17x17xf32>
    %323 = arith.mulf %318, %322 : vector<17x17xf32>
    %cst_139 = arith.constant dense<0.000000e+00> : vector<17x16xf32>
    %324 = tpu.matmul %323, %310, %cst_139 {dimension_numbers = #tpu.dot_dimension_numbers<[1], [0], [0], [1], [0, 0, 1, 1], [], []>} : vector<17x17xf32>, vector<17x16xf32>, vector<17x16xf32> -> vector<17x16xf32>
    %325 = vector.extract_strided_slice %271 {offsets = [17, 16], sizes = [17, 16], strides = [1, 1]} : vector<68x96xf32> to vector<17x16xf32>
    %326 = vector.extract_strided_slice %271 {offsets = [17, 48], sizes = [17, 16], strides = [1, 1]} : vector<68x96xf32> to vector<17x16xf32>
    %327 = vector.extract_strided_slice %271 {offsets = [17, 80], sizes = [17, 16], strides = [1, 1]} : vector<68x96xf32> to vector<17x16xf32>
    %cst_140 = arith.constant dense<0.000000e+00> : vector<17x17xf32>
    %328 = tpu.matmul %325, %326, %cst_140 {dimension_numbers = #tpu.dot_dimension_numbers<[1], [1], [0], [0], [0, 0, 1, 0], [], []>} : vector<17x16xf32>, vector<17x16xf32>, vector<17x17xf32> -> vector<17x17xf32>
    %cst_141 = arith.constant 2.500000e-01 : f32
    %329 = vector.broadcast %cst_141 : f32 to vector<17x17xf32>
    %330 = arith.mulf %328, %329 : vector<17x17xf32>
    %cst_142 = arith.constant dense<0xFF800000> : vector<17xf32>
    %331 = vector.multi_reduction <maximumf>, %330, %cst_142 [1] : vector<17x17xf32> to vector<17xf32>
    %332 = vector.shape_cast %331 : vector<17xf32> to vector<17x1xf32>
    %333 = vector.broadcast %332 : vector<17x1xf32> to vector<17x17xf32>
    %334 = arith.subf %330, %333 : vector<17x17xf32>
    %335 = math.exp %334 : vector<17x17xf32>
    %cst_143 = arith.constant dense<0.000000e+00> : vector<17xf32>
    %336 = vector.multi_reduction <add>, %335, %cst_143 [1] : vector<17x17xf32> to vector<17xf32>
    %337 = vector.shape_cast %336 : vector<17xf32> to vector<17x1xf32>
    %338 = tpu.reciprocal %337 {approx = true} : vector<17x1xf32> -> vector<17x1xf32>
    %339 = vector.broadcast %338 : vector<17x1xf32> to vector<17x17xf32>
    %340 = arith.mulf %335, %339 : vector<17x17xf32>
    %cst_144 = arith.constant dense<0.000000e+00> : vector<17x16xf32>
    %341 = tpu.matmul %340, %327, %cst_144 {dimension_numbers = #tpu.dot_dimension_numbers<[1], [0], [0], [1], [0, 0, 1, 1], [], []>} : vector<17x17xf32>, vector<17x16xf32>, vector<17x16xf32> -> vector<17x16xf32>
    %342 = tpu.concatenate %324, %341 in 1 : vector<17x16xf32>, vector<17x16xf32> -> vector<17x32xf32>
    %c17_145 = arith.constant 17 : index
    %c0_146 = arith.constant 0 : index
    %343 = vector.load %arg23[%c17_145, %c0_146] : memref<68x32xf32, #tpu.memory_space<vmem>>, vector<17x32xf32>
    tpu.vector_store %arg23[%c17_145, %c0_146], %342 {strides = array<i32>} : memref<68x32xf32, #tpu.memory_space<vmem>>, vector<17x32xf32>,
    %344 = vector.extract_strided_slice %271 {offsets = [34, 0], sizes = [17, 16], strides = [1, 1]} : vector<68x96xf32> to vector<17x16xf32>
    %345 = vector.extract_strided_slice %271 {offsets = [34, 32], sizes = [17, 16], strides = [1, 1]} : vector<68x96xf32> to vector<17x16xf32>
    %346 = vector.extract_strided_slice %271 {offsets = [34, 64], sizes = [17, 16], strides = [1, 1]} : vector<68x96xf32> to vector<17x16xf32>
    %cst_147 = arith.constant dense<0.000000e+00> : vector<17x17xf32>
    %347 = tpu.matmul %344, %345, %cst_147 {dimension_numbers = #tpu.dot_dimension_numbers<[1], [1], [0], [0], [0, 0, 1, 0], [], []>} : vector<17x16xf32>, vector<17x16xf32>, vector<17x17xf32> -> vector<17x17xf32>
    %cst_148 = arith.constant 2.500000e-01 : f32
    %348 = vector.broadcast %cst_148 : f32 to vector<17x17xf32>
    %349 = arith.mulf %347, %348 : vector<17x17xf32>
    %cst_149 = arith.constant dense<0xFF800000> : vector<17xf32>
    %350 = vector.multi_reduction <maximumf>, %349, %cst_149 [1] : vector<17x17xf32> to vector<17xf32>
    %351 = vector.shape_cast %350 : vector<17xf32> to vector<17x1xf32>
    %352 = vector.broadcast %351 : vector<17x1xf32> to vector<17x17xf32>
    %353 = arith.subf %349, %352 : vector<17x17xf32>
    %354 = math.exp %353 : vector<17x17xf32>
    %cst_150 = arith.constant dense<0.000000e+00> : vector<17xf32>
    %355 = vector.multi_reduction <add>, %354, %cst_150 [1] : vector<17x17xf32> to vector<17xf32>
    %356 = vector.shape_cast %355 : vector<17xf32> to vector<17x1xf32>
    %357 = tpu.reciprocal %356 {approx = true} : vector<17x1xf32> -> vector<17x1xf32>
    %358 = vector.broadcast %357 : vector<17x1xf32> to vector<17x17xf32>
    %359 = arith.mulf %354, %358 : vector<17x17xf32>
    %cst_151 = arith.constant dense<0.000000e+00> : vector<17x16xf32>
    %360 = tpu.matmul %359, %346, %cst_151 {dimension_numbers = #tpu.dot_dimension_numbers<[1], [0], [0], [1], [0, 0, 1, 1], [], []>} : vector<17x17xf32>, vector<17x16xf32>, vector<17x16xf32> -> vector<17x16xf32>
    %361 = vector.extract_strided_slice %271 {offsets = [34, 16], sizes = [17, 16], strides = [1, 1]} : vector<68x96xf32> to vector<17x16xf32>
    %362 = vector.extract_strided_slice %271 {offsets = [34, 48], sizes = [17, 16], strides = [1, 1]} : vector<68x96xf32> to vector<17x16xf32>
    %363 = vector.extract_strided_slice %271 {offsets = [34, 80], sizes = [17, 16], strides = [1, 1]} : vector<68x96xf32> to vector<17x16xf32>
    %cst_152 = arith.constant dense<0.000000e+00> : vector<17x17xf32>
    %364 = tpu.matmul %361, %362, %cst_152 {dimension_numbers = #tpu.dot_dimension_numbers<[1], [1], [0], [0], [0, 0, 1, 0], [], []>} : vector<17x16xf32>, vector<17x16xf32>, vector<17x17xf32> -> vector<17x17xf32>
    %cst_153 = arith.constant 2.500000e-01 : f32
    %365 = vector.broadcast %cst_153 : f32 to vector<17x17xf32>
    %366 = arith.mulf %364, %365 : vector<17x17xf32>
    %cst_154 = arith.constant dense<0xFF800000> : vector<17xf32>
    %367 = vector.multi_reduction <maximumf>, %366, %cst_154 [1] : vector<17x17xf32> to vector<17xf32>
    %368 = vector.shape_cast %367 : vector<17xf32> to vector<17x1xf32>
    %369 = vector.broadcast %368 : vector<17x1xf32> to vector<17x17xf32>
    %370 = arith.subf %366, %369 : vector<17x17xf32>
    %371 = math.exp %370 : vector<17x17xf32>
    %cst_155 = arith.constant dense<0.000000e+00> : vector<17xf32>
    %372 = vector.multi_reduction <add>, %371, %cst_155 [1] : vector<17x17xf32> to vector<17xf32>
    %373 = vector.shape_cast %372 : vector<17xf32> to vector<17x1xf32>
    %374 = tpu.reciprocal %373 {approx = true} : vector<17x1xf32> -> vector<17x1xf32>
    %375 = vector.broadcast %374 : vector<17x1xf32> to vector<17x17xf32>
    %376 = arith.mulf %371, %375 : vector<17x17xf32>
    %cst_156 = arith.constant dense<0.000000e+00> : vector<17x16xf32>
    %377 = tpu.matmul %376, %363, %cst_156 {dimension_numbers = #tpu.dot_dimension_numbers<[1], [0], [0], [1], [0, 0, 1, 1], [], []>} : vector<17x17xf32>, vector<17x16xf32>, vector<17x16xf32> -> vector<17x16xf32>
    %378 = tpu.concatenate %360, %377 in 1 : vector<17x16xf32>, vector<17x16xf32> -> vector<17x32xf32>
    %c34_157 = arith.constant 34 : index
    %c0_158 = arith.constant 0 : index
    %379 = vector.load %arg23[%c34_157, %c0_158] : memref<68x32xf32, #tpu.memory_space<vmem>>, vector<17x32xf32>
    tpu.vector_store %arg23[%c34_157, %c0_158], %378 {strides = array<i32>} : memref<68x32xf32, #tpu.memory_space<vmem>>, vector<17x32xf32>,
    %380 = vector.extract_strided_slice %271 {offsets = [51, 0], sizes = [17, 16], strides = [1, 1]} : vector<68x96xf32> to vector<17x16xf32>
    %381 = vector.extract_strided_slice %271 {offsets = [51, 32], sizes = [17, 16], strides = [1, 1]} : vector<68x96xf32> to vector<17x16xf32>
    %382 = vector.extract_strided_slice %271 {offsets = [51, 64], sizes = [17, 16], strides = [1, 1]} : vector<68x96xf32> to vector<17x16xf32>
    %cst_159 = arith.constant dense<0.000000e+00> : vector<17x17xf32>
    %383 = tpu.matmul %380, %381, %cst_159 {dimension_numbers = #tpu.dot_dimension_numbers<[1], [1], [0], [0], [0, 0, 1, 0], [], []>} : vector<17x16xf32>, vector<17x16xf32>, vector<17x17xf32> -> vector<17x17xf32>
    %cst_160 = arith.constant 2.500000e-01 : f32
    %384 = vector.broadcast %cst_160 : f32 to vector<17x17xf32>
    %385 = arith.mulf %383, %384 : vector<17x17xf32>
    %cst_161 = arith.constant dense<0xFF800000> : vector<17xf32>
    %386 = vector.multi_reduction <maximumf>, %385, %cst_161 [1] : vector<17x17xf32> to vector<17xf32>
    %387 = vector.shape_cast %386 : vector<17xf32> to vector<17x1xf32>
    %388 = vector.broadcast %387 : vector<17x1xf32> to vector<17x17xf32>
    %389 = arith.subf %385, %388 : vector<17x17xf32>
    %390 = math.exp %389 : vector<17x17xf32>
    %cst_162 = arith.constant dense<0.000000e+00> : vector<17xf32>
    %391 = vector.multi_reduction <add>, %390, %cst_162 [1] : vector<17x17xf32> to vector<17xf32>
    %392 = vector.shape_cast %391 : vector<17xf32> to vector<17x1xf32>
    %393 = tpu.reciprocal %392 {approx = true} : vector<17x1xf32> -> vector<17x1xf32>
    %394 = vector.broadcast %393 : vector<17x1xf32> to vector<17x17xf32>
    %395 = arith.mulf %390, %394 : vector<17x17xf32>
    %cst_163 = arith.constant dense<0.000000e+00> : vector<17x16xf32>
    %396 = tpu.matmul %395, %382, %cst_163 {dimension_numbers = #tpu.dot_dimension_numbers<[1], [0], [0], [1], [0, 0, 1, 1], [], []>} : vector<17x17xf32>, vector<17x16xf32>, vector<17x16xf32> -> vector<17x16xf32>
    %397 = vector.extract_strided_slice %271 {offsets = [51, 16], sizes = [17, 16], strides = [1, 1]} : vector<68x96xf32> to vector<17x16xf32>
    %398 = vector.extract_strided_slice %271 {offsets = [51, 48], sizes = [17, 16], strides = [1, 1]} : vector<68x96xf32> to vector<17x16xf32>
    %399 = vector.extract_strided_slice %271 {offsets = [51, 80], sizes = [17, 16], strides = [1, 1]} : vector<68x96xf32> to vector<17x16xf32>
    %cst_164 = arith.constant dense<0.000000e+00> : vector<17x17xf32>
    %400 = tpu.matmul %397, %398, %cst_164 {dimension_numbers = #tpu.dot_dimension_numbers<[1], [1], [0], [0], [0, 0, 1, 0], [], []>} : vector<17x16xf32>, vector<17x16xf32>, vector<17x17xf32> -> vector<17x17xf32>
    %cst_165 = arith.constant 2.500000e-01 : f32
    %401 = vector.broadcast %cst_165 : f32 to vector<17x17xf32>
    %402 = arith.mulf %400, %401 : vector<17x17xf32>
    %cst_166 = arith.constant dense<0xFF800000> : vector<17xf32>
    %403 = vector.multi_reduction <maximumf>, %402, %cst_166 [1] : vector<17x17xf32> to vector<17xf32>
    %404 = vector.shape_cast %403 : vector<17xf32> to vector<17x1xf32>
    %405 = vector.broadcast %404 : vector<17x1xf32> to vector<17x17xf32>
    %406 = arith.subf %402, %405 : vector<17x17xf32>
    %407 = math.exp %406 : vector<17x17xf32>
    %cst_167 = arith.constant dense<0.000000e+00> : vector<17xf32>
    %408 = vector.multi_reduction <add>, %407, %cst_167 [1] : vector<17x17xf32> to vector<17xf32>
    %409 = vector.shape_cast %408 : vector<17xf32> to vector<17x1xf32>
    %410 = tpu.reciprocal %409 {approx = true} : vector<17x1xf32> -> vector<17x1xf32>
    %411 = vector.broadcast %410 : vector<17x1xf32> to vector<17x17xf32>
    %412 = arith.mulf %407, %411 : vector<17x17xf32>
    %cst_168 = arith.constant dense<0.000000e+00> : vector<17x16xf32>
    %413 = tpu.matmul %412, %399, %cst_168 {dimension_numbers = #tpu.dot_dimension_numbers<[1], [0], [0], [1], [0, 0, 1, 1], [], []>} : vector<17x17xf32>, vector<17x16xf32>, vector<17x16xf32> -> vector<17x16xf32>
    %414 = tpu.concatenate %396, %413 in 1 : vector<17x16xf32>, vector<17x16xf32> -> vector<17x32xf32>
    %c51_169 = arith.constant 51 : index
    %c0_170 = arith.constant 0 : index
    %415 = vector.load %arg23[%c51_169, %c0_170] : memref<68x32xf32, #tpu.memory_space<vmem>>, vector<17x32xf32>
    tpu.vector_store %arg23[%c51_169, %c0_170], %414 {strides = array<i32>} : memref<68x32xf32, #tpu.memory_space<vmem>>, vector<17x32xf32>,
    %c0_171 = arith.constant 0 : index
    %c0_172 = arith.constant 0 : index
    %416 = vector.load %arg23[%c0_171, %c0_172] : memref<68x32xf32, #tpu.memory_space<vmem>>, vector<68x32xf32>
    %c1_173 = arith.constant 1 : index
    %c0_174 = arith.constant 0 : index
    %c0_175 = arith.constant 0 : index
    %417 = vector.load %arg8[%c1_173, %c0_174, %c0_175] : memref<2x32x32xf32, #tpu.memory_space<vmem>>, vector<1x32x32xf32>
    %418 = vector.shape_cast %417 : vector<1x32x32xf32> to vector<32x32xf32>
    %cst_176 = arith.constant dense<0.000000e+00> : vector<68x32xf32>
    %419 = tpu.matmul %416, %418, %cst_176 {dimension_numbers = #tpu.dot_dimension_numbers<[1], [0], [0], [1], [0, 0, 1, 1], [], []>} : vector<68x32xf32>, vector<32x32xf32>, vector<68x32xf32> -> vector<68x32xf32>
    %c1_177 = arith.constant 1 : index
    %c0_178 = arith.constant 0 : index
    %c0_179 = arith.constant 0 : index
    %420 = vector.load %arg9[%c1_177, %c0_178, %c0_179] : memref<2x1x32xf32, #tpu.memory_space<vmem>>, vector<1x1x32xf32>
    %421 = vector.shape_cast %420 : vector<1x1x32xf32> to vector<1x32xf32>
    %422 = vector.broadcast %421 : vector<1x32xf32> to vector<68x32xf32>
    %423 = arith.addf %419, %422 : vector<68x32xf32>
    %424 = arith.addf %240, %423 : vector<68x32xf32>
    %c1_180 = arith.constant 1 : index
    %c0_181 = arith.constant 0 : index
    %c0_182 = arith.constant 0 : index
    %425 = vector.load %arg10[%c1_180, %c0_181, %c0_182] : memref<2x1x32xf32, #tpu.memory_space<vmem>>, vector<1x1x32xf32>
    %426 = vector.shape_cast %425 : vector<1x1x32xf32> to vector<1x32xf32>
    %c1_183 = arith.constant 1 : index
    %c0_184 = arith.constant 0 : index
    %c0_185 = arith.constant 0 : index
    %427 = vector.load %arg11[%c1_183, %c0_184, %c0_185] : memref<2x1x32xf32, #tpu.memory_space<vmem>>, vector<1x1x32xf32>
    %428 = vector.shape_cast %427 : vector<1x1x32xf32> to vector<1x32xf32>
    %cst_186 = arith.constant dense<0.000000e+00> : vector<68xf32>
    %429 = vector.multi_reduction <add>, %424, %cst_186 [1] : vector<68x32xf32> to vector<68xf32>
    %430 = vector.shape_cast %429 : vector<68xf32> to vector<68x1xf32>
    %cst_187 = arith.constant 3.200000e+01 : f32
    %431 = vector.broadcast %cst_187 : f32 to vector<68x1xf32>
    %432 = arith.divf %430, %431 : vector<68x1xf32>
    %433 = vector.broadcast %432 : vector<68x1xf32> to vector<68x32xf32>
    %434 = arith.subf %424, %433 : vector<68x32xf32>
    %435 = arith.mulf %434, %434 : vector<68x32xf32>
    %cst_188 = arith.constant dense<0.000000e+00> : vector<68xf32>
    %436 = vector.multi_reduction <add>, %435, %cst_188 [1] : vector<68x32xf32> to vector<68xf32>
    %437 = vector.shape_cast %436 : vector<68xf32> to vector<68x1xf32>
    %cst_189 = arith.constant 3.200000e+01 : f32
    %438 = vector.broadcast %cst_189 : f32 to vector<68x1xf32>
    %439 = arith.divf %437, %438 : vector<68x1xf32>
    %cst_190 = arith.constant 9.99999996E-13 : f32
    %440 = vector.broadcast %cst_190 : f32 to vector<68x1xf32>
    %441 = arith.addf %439, %440 : vector<68x1xf32>
    %442 = math.rsqrt %441 : vector<68x1xf32>
    %443 = vector.broadcast %442 : vector<68x1xf32> to vector<68x32xf32>
    %444 = arith.mulf %434, %443 : vector<68x32xf32>
    %445 = vector.broadcast %426 : vector<1x32xf32> to vector<68x32xf32>
    %446 = arith.mulf %444, %445 : vector<68x32xf32>
    %447 = vector.broadcast %428 : vector<1x32xf32> to vector<68x32xf32>
    %448 = arith.addf %446, %447 : vector<68x32xf32>
    %c1_191 = arith.constant 1 : index
    %c0_192 = arith.constant 0 : index
    %c0_193 = arith.constant 0 : index
    %449 = vector.load %arg12[%c1_191, %c0_192, %c0_193] : memref<2x32x64xf32, #tpu.memory_space<vmem>>, vector<1x32x64xf32>
    %450 = vector.shape_cast %449 : vector<1x32x64xf32> to vector<32x64xf32>
    %cst_194 = arith.constant dense<0.000000e+00> : vector<68x64xf32>
    %451 = tpu.matmul %448, %450, %cst_194 {dimension_numbers = #tpu.dot_dimension_numbers<[1], [0], [0], [1], [0, 0, 1, 1], [], []>} : vector<68x32xf32>, vector<32x64xf32>, vector<68x64xf32> -> vector<68x64xf32>
    %c1_195 = arith.constant 1 : index
    %c0_196 = arith.constant 0 : index
    %c0_197 = arith.constant 0 : index
    %452 = vector.load %arg13[%c1_195, %c0_196, %c0_197] : memref<2x1x64xf32, #tpu.memory_space<vmem>>, vector<1x1x64xf32>
    %453 = vector.shape_cast %452 : vector<1x1x64xf32> to vector<1x64xf32>
    %454 = vector.broadcast %453 : vector<1x64xf32> to vector<68x64xf32>
    %455 = arith.addf %451, %454 : vector<68x64xf32>
    %456 = arith.mulf %455, %455 : vector<68x64xf32>
    %457 = arith.mulf %455, %456 : vector<68x64xf32>
    %cst_198 = arith.constant 4.471500e-02 : f32
    %458 = vector.broadcast %cst_198 : f32 to vector<68x64xf32>
    %459 = arith.mulf %458, %457 : vector<68x64xf32>
    %460 = arith.addf %455, %459 : vector<68x64xf32>
    %cst_199 = arith.constant 0.797884583 : f32
    %461 = vector.broadcast %cst_199 : f32 to vector<68x64xf32>
    %462 = arith.mulf %461, %460 : vector<68x64xf32>
    %463 = math.tanh %462 : vector<68x64xf32>
    %cst_200 = arith.constant 1.000000e+00 : f32
    %464 = vector.broadcast %cst_200 : f32 to vector<68x64xf32>
    %465 = arith.addf %464, %463 : vector<68x64xf32>
    %cst_201 = arith.constant 5.000000e-01 : f32
    %466 = vector.broadcast %cst_201 : f32 to vector<68x64xf32>
    %467 = arith.mulf %466, %465 : vector<68x64xf32>
    %468 = arith.mulf %455, %467 : vector<68x64xf32>
    %c1_202 = arith.constant 1 : index
    %c0_203 = arith.constant 0 : index
    %c0_204 = arith.constant 0 : index
    %469 = vector.load %arg14[%c1_202, %c0_203, %c0_204] : memref<2x64x32xf32, #tpu.memory_space<vmem>>, vector<1x64x32xf32>
    %470 = vector.shape_cast %469 : vector<1x64x32xf32> to vector<64x32xf32>
    %cst_205 = arith.constant dense<0.000000e+00> : vector<68x32xf32>
    %471 = tpu.matmul %468, %470, %cst_205 {dimension_numbers = #tpu.dot_dimension_numbers<[1], [0], [0], [1], [0, 0, 1, 1], [], []>} : vector<68x64xf32>, vector<64x32xf32>, vector<68x32xf32> -> vector<68x32xf32>
    %c1_206 = arith.constant 1 : index
    %c0_207 = arith.constant 0 : index
    %c0_208 = arith.constant 0 : index
    %472 = vector.load %arg15[%c1_206, %c0_207, %c0_208] : memref<2x1x32xf32, #tpu.memory_space<vmem>>, vector<1x1x32xf32>
    %473 = vector.shape_cast %472 : vector<1x1x32xf32> to vector<1x32xf32>
    %474 = vector.broadcast %473 : vector<1x32xf32> to vector<68x32xf32>
    %475 = arith.addf %471, %474 : vector<68x32xf32>
    %476 = arith.addf %424, %475 : vector<68x32xf32>
    %477 = vector.extract_strided_slice %476 {offsets = [0, 0], sizes = [1, 32], strides = [1, 1]} : vector<68x32xf32> to vector<1x32xf32>
    %478 = vector.extract_strided_slice %476 {offsets = [17, 0], sizes = [1, 32], strides = [1, 1]} : vector<68x32xf32> to vector<1x32xf32>
    %479 = vector.extract_strided_slice %476 {offsets = [34, 0], sizes = [1, 32], strides = [1, 1]} : vector<68x32xf32> to vector<1x32xf32>
    %480 = vector.extract_strided_slice %476 {offsets = [51, 0], sizes = [1, 32], strides = [1, 1]} : vector<68x32xf32> to vector<1x32xf32>
    %481 = tpu.concatenate %477, %478, %479, %480 in 0 : vector<1x32xf32>, vector<1x32xf32>, vector<1x32xf32>, vector<1x32xf32> -> vector<4x32xf32>
    %c0_209 = arith.constant 0 : index
    %c0_210 = arith.constant 0 : index
    %482 = vector.load %arg16[%c0_209, %c0_210] : memref<1x32xf32, #tpu.memory_space<vmem>>, vector<1x32xf32>
    %c0_211 = arith.constant 0 : index
    %c0_212 = arith.constant 0 : index
    %483 = vector.load %arg17[%c0_211, %c0_212] : memref<1x32xf32, #tpu.memory_space<vmem>>, vector<1x32xf32>
    %cst_213 = arith.constant dense<0.000000e+00> : vector<4xf32>
    %484 = vector.multi_reduction <add>, %481, %cst_213 [1] : vector<4x32xf32> to vector<4xf32>
    %485 = vector.shape_cast %484 : vector<4xf32> to vector<4x1xf32>
    %cst_214 = arith.constant 3.200000e+01 : f32
    %486 = vector.broadcast %cst_214 : f32 to vector<4x1xf32>
    %487 = arith.divf %485, %486 : vector<4x1xf32>
    %488 = vector.broadcast %487 : vector<4x1xf32> to vector<4x32xf32>
    %489 = arith.subf %481, %488 : vector<4x32xf32>
    %490 = arith.mulf %489, %489 : vector<4x32xf32>
    %cst_215 = arith.constant dense<0.000000e+00> : vector<4xf32>
    %491 = vector.multi_reduction <add>, %490, %cst_215 [1] : vector<4x32xf32> to vector<4xf32>
    %492 = vector.shape_cast %491 : vector<4xf32> to vector<4x1xf32>
    %cst_216 = arith.constant 3.200000e+01 : f32
    %493 = vector.broadcast %cst_216 : f32 to vector<4x1xf32>
    %494 = arith.divf %492, %493 : vector<4x1xf32>
    %cst_217 = arith.constant 9.99999996E-13 : f32
    %495 = vector.broadcast %cst_217 : f32 to vector<4x1xf32>
    %496 = arith.addf %494, %495 : vector<4x1xf32>
    %497 = math.rsqrt %496 : vector<4x1xf32>
    %498 = vector.broadcast %497 : vector<4x1xf32> to vector<4x32xf32>
    %499 = arith.mulf %489, %498 : vector<4x32xf32>
    %500 = vector.broadcast %482 : vector<1x32xf32> to vector<4x32xf32>
    %501 = arith.mulf %499, %500 : vector<4x32xf32>
    %502 = vector.broadcast %483 : vector<1x32xf32> to vector<4x32xf32>
    %503 = arith.addf %501, %502 : vector<4x32xf32>
    %c0_218 = arith.constant 0 : index
    %c0_219 = arith.constant 0 : index
    %504 = vector.load %arg18[%c0_218, %c0_219] : memref<32x32xf32, #tpu.memory_space<vmem>>, vector<32x32xf32>
    %cst_220 = arith.constant dense<0.000000e+00> : vector<4x32xf32>
    %505 = tpu.matmul %503, %504, %cst_220 {dimension_numbers = #tpu.dot_dimension_numbers<[1], [0], [0], [1], [0, 0, 1, 1], [], []>} : vector<4x32xf32>, vector<32x32xf32>, vector<4x32xf32> -> vector<4x32xf32>
    %c0_221 = arith.constant 0 : index
    %c0_222 = arith.constant 0 : index
    %506 = vector.load %arg19[%c0_221, %c0_222] : memref<1x32xf32, #tpu.memory_space<vmem>>, vector<1x32xf32>
    %507 = vector.broadcast %506 : vector<1x32xf32> to vector<4x32xf32>
    %508 = arith.addf %505, %507 : vector<4x32xf32>
    %509 = math.tanh %508 : vector<4x32xf32>
    %c0_223 = arith.constant 0 : index
    %c0_224 = arith.constant 0 : index
    %510 = vector.load %arg20[%c0_223, %c0_224] : memref<1x64xf32, #tpu.memory_space<vmem>>, vector<1x64xf32>
    %511 = vector.extract_strided_slice %509 {offsets = [0, 0], sizes = [2, 32], strides = [1, 1]} : vector<4x32xf32> to vector<2x32xf32>
    %512 = vector.extract_strided_slice %510 {offsets = [0, 0], sizes = [1, 32], strides = [1, 1]} : vector<1x64xf32> to vector<1x32xf32>
    %513 = vector.broadcast %512 : vector<1x32xf32> to vector<2x32xf32>
    %514 = arith.mulf %511, %513 : vector<2x32xf32>
    %cst_225 = arith.constant dense<0.000000e+00> : vector<2xf32>
    %515 = vector.multi_reduction <add>, %514, %cst_225 [1] : vector<2x32xf32> to vector<2xf32>
    %516 = vector.shape_cast %515 : vector<2xf32> to vector<2x1xf32>
    %517 = vector.extract_strided_slice %509 {offsets = [2, 0], sizes = [2, 32], strides = [1, 1]} : vector<4x32xf32> to vector<2x32xf32>
    %518 = vector.extract_strided_slice %510 {offsets = [0, 32], sizes = [1, 32], strides = [1, 1]} : vector<1x64xf32> to vector<1x32xf32>
    %519 = vector.broadcast %518 : vector<1x32xf32> to vector<2x32xf32>
    %520 = arith.mulf %517, %519 : vector<2x32xf32>
    %cst_226 = arith.constant dense<0.000000e+00> : vector<2xf32>
    %521 = vector.multi_reduction <add>, %520, %cst_226 [1] : vector<2x32xf32> to vector<2xf32>
    %522 = vector.shape_cast %521 : vector<2xf32> to vector<2x1xf32>
    %523 = arith.addf %516, %522 : vector<2x1xf32>
    %c0_227 = arith.constant 0 : index
    %c0_228 = arith.constant 0 : index
    %524 = vector.load %arg21[%c0_227, %c0_228] : memref<1x1xf32, #tpu.memory_space<vmem>>, vector<1x1xf32>
    %525 = vector.broadcast %524 : vector<1x1xf32> to vector<2x1xf32>
    %526 = arith.addf %523, %525 : vector<2x1xf32>
    %c0_229 = arith.constant 0 : index
    %c0_230 = arith.constant 0 : index
    %527 = vector.load %arg22[%c0_229, %c0_230] : memref<2x1xf32, #tpu.memory_space<vmem>>, vector<2x1xf32>
    tpu.vector_store %arg22[%c0_229, %c0_230], %526 {strides = array<i32>} : memref<2x1xf32, #tpu.memory_space<vmem>>, vector<2x1xf32>,
    return
  }
  func.func @transform_0(%arg0: i32) -> (i32, i32) {
    %c0_i32 = arith.constant 0 : i32
    %c0_i32_0 = arith.constant 0 : i32
    %c0_i32_1 = arith.constant 0 : i32
    return %c0_i32, %c0_i32_0 : i32, i32
  }
  func.func @transform_1(%arg0: i32) -> (i32, i32) {
    %c0_i32 = arith.constant 0 : i32
    %c0_i32_0 = arith.constant 0 : i32
    %c0_i32_1 = arith.constant 0 : i32
    return %c0_i32, %c0_i32_0 : i32, i32
  }
  func.func @transform_2(%arg0: i32) -> (i32, i32) {
    %c0_i32 = arith.constant 0 : i32
    %c0_i32_0 = arith.constant 0 : i32
    %c0_i32_1 = arith.constant 0 : i32
    return %c0_i32, %c0_i32_0 : i32, i32
  }
  func.func @transform_3(%arg0: i32) -> (i32, i32, i32) {
    %c0_i32 = arith.constant 0 : i32
    %c0_i32_0 = arith.constant 0 : i32
    %c0_i32_1 = arith.constant 0 : i32
    %c0_i32_2 = arith.constant 0 : i32
    return %c0_i32, %c0_i32_0, %c0_i32_1 : i32, i32, i32
  }
  func.func @transform_4(%arg0: i32) -> (i32, i32, i32) {
    %c0_i32 = arith.constant 0 : i32
    %c0_i32_0 = arith.constant 0 : i32
    %c0_i32_1 = arith.constant 0 : i32
    %c0_i32_2 = arith.constant 0 : i32
    return %c0_i32, %c0_i32_0, %c0_i32_1 : i32, i32, i32
  }
  func.func @transform_5(%arg0: i32) -> (i32, i32, i32) {
    %c0_i32 = arith.constant 0 : i32
    %c0_i32_0 = arith.constant 0 : i32
    %c0_i32_1 = arith.constant 0 : i32
    %c0_i32_2 = arith.constant 0 : i32
    return %c0_i32, %c0_i32_0, %c0_i32_1 : i32, i32, i32
  }
  func.func @transform_6(%arg0: i32) -> (i32, i32, i32) {
    %c0_i32 = arith.constant 0 : i32
    %c0_i32_0 = arith.constant 0 : i32
    %c0_i32_1 = arith.constant 0 : i32
    %c0_i32_2 = arith.constant 0 : i32
    return %c0_i32, %c0_i32_0, %c0_i32_1 : i32, i32, i32
  }
  func.func @transform_7(%arg0: i32) -> (i32, i32, i32) {
    %c0_i32 = arith.constant 0 : i32
    %c0_i32_0 = arith.constant 0 : i32
    %c0_i32_1 = arith.constant 0 : i32
    %c0_i32_2 = arith.constant 0 : i32
    return %c0_i32, %c0_i32_0, %c0_i32_1 : i32, i32, i32
  }
  func.func @transform_8(%arg0: i32) -> (i32, i32, i32) {
    %c0_i32 = arith.constant 0 : i32
    %c0_i32_0 = arith.constant 0 : i32
    %c0_i32_1 = arith.constant 0 : i32
    %c0_i32_2 = arith.constant 0 : i32
    return %c0_i32, %c0_i32_0, %c0_i32_1 : i32, i32, i32
  }
  func.func @transform_9(%arg0: i32) -> (i32, i32, i32) {
    %c0_i32 = arith.constant 0 : i32
    %c0_i32_0 = arith.constant 0 : i32
    %c0_i32_1 = arith.constant 0 : i32
    %c0_i32_2 = arith.constant 0 : i32
    return %c0_i32, %c0_i32_0, %c0_i32_1 : i32, i32, i32
  }
  func.func @transform_10(%arg0: i32) -> (i32, i32, i32) {
    %c0_i32 = arith.constant 0 : i32
    %c0_i32_0 = arith.constant 0 : i32
    %c0_i32_1 = arith.constant 0 : i32
    %c0_i32_2 = arith.constant 0 : i32
    return %c0_i32, %c0_i32_0, %c0_i32_1 : i32, i32, i32
  }
  func.func @transform_11(%arg0: i32) -> (i32, i32, i32) {
    %c0_i32 = arith.constant 0 : i32
    %c0_i32_0 = arith.constant 0 : i32
    %c0_i32_1 = arith.constant 0 : i32
    %c0_i32_2 = arith.constant 0 : i32
    return %c0_i32, %c0_i32_0, %c0_i32_1 : i32, i32, i32
  }
  func.func @transform_12(%arg0: i32) -> (i32, i32, i32) {
    %c0_i32 = arith.constant 0 : i32
    %c0_i32_0 = arith.constant 0 : i32
    %c0_i32_1 = arith.constant 0 : i32
    %c0_i32_2 = arith.constant 0 : i32
    return %c0_i32, %c0_i32_0, %c0_i32_1 : i32, i32, i32
  }
  func.func @transform_13(%arg0: i32) -> (i32, i32, i32) {
    %c0_i32 = arith.constant 0 : i32
    %c0_i32_0 = arith.constant 0 : i32
    %c0_i32_1 = arith.constant 0 : i32
    %c0_i32_2 = arith.constant 0 : i32
    return %c0_i32, %c0_i32_0, %c0_i32_1 : i32, i32, i32
  }
  func.func @transform_14(%arg0: i32) -> (i32, i32, i32) {
    %c0_i32 = arith.constant 0 : i32
    %c0_i32_0 = arith.constant 0 : i32
    %c0_i32_1 = arith.constant 0 : i32
    %c0_i32_2 = arith.constant 0 : i32
    return %c0_i32, %c0_i32_0, %c0_i32_1 : i32, i32, i32
  }
  func.func @transform_15(%arg0: i32) -> (i32, i32) {
    %c0_i32 = arith.constant 0 : i32
    %c0_i32_0 = arith.constant 0 : i32
    %c0_i32_1 = arith.constant 0 : i32
    return %c0_i32, %c0_i32_0 : i32, i32
  }
  func.func @transform_16(%arg0: i32) -> (i32, i32) {
    %c0_i32 = arith.constant 0 : i32
    %c0_i32_0 = arith.constant 0 : i32
    %c0_i32_1 = arith.constant 0 : i32
    return %c0_i32, %c0_i32_0 : i32, i32
  }
  func.func @transform_17(%arg0: i32) -> (i32, i32) {
    %c0_i32 = arith.constant 0 : i32
    %c0_i32_0 = arith.constant 0 : i32
    %c0_i32_1 = arith.constant 0 : i32
    return %c0_i32, %c0_i32_0 : i32, i32
  }
  func.func @transform_18(%arg0: i32) -> (i32, i32) {
    %c0_i32 = arith.constant 0 : i32
    %c0_i32_0 = arith.constant 0 : i32
    %c0_i32_1 = arith.constant 0 : i32
    return %c0_i32, %c0_i32_0 : i32, i32
  }
  func.func @transform_19(%arg0: i32) -> (i32, i32) {
    %c0_i32 = arith.constant 0 : i32
    %c0_i32_0 = arith.constant 0 : i32
    %c0_i32_1 = arith.constant 0 : i32
    return %c0_i32, %c0_i32_0 : i32, i32
  }
  func.func @transform_20(%arg0: i32) -> (i32, i32) {
    %c0_i32 = arith.constant 0 : i32
    %c0_i32_0 = arith.constant 0 : i32
    %c0_i32_1 = arith.constant 0 : i32
    return %c0_i32, %c0_i32_0 : i32, i32
  }
  func.func @transform_21(%arg0: i32) -> (i32, i32) {
    %c0_i32 = arith.constant 0 : i32
    %c0_i32_0 = arith.constant 0 : i32
    %c0_i32_1 = arith.constant 0 : i32
    return %c0_i32, %c0_i32_0 : i32, i32
  }
}

</mosaic_0001>

<bundles_post_ra>
// kernel: value_vit_forward.1
= control target key start
LH: loop header
LB: loop body
LE: loop exit
PB: predicated region body
PF: predicated region fallthrough
CT: control target
= control target key end

     0   :  { %vm94_vm0 = vcmask 392192   ;;  %vm168_vm1 = vcmask 261120   ;;  %v4966_v21 = vmov 32.0   ;;  %s4967_s30 = smov 96   ;;  %s7172_s23 = smov 64   ;;  %vm487_vm12 = vcmask 130048   ;;  %s7142_s2 = inlined_call_operand.vmem [shape: f32[48,32], index: 2, kind: input, shape index: {}]   ;;  %s7143_s0 = inlined_call_operand.vmem [shape: f32[68,48], index: 0, kind: input, shape index: {}]   ;;  %s7144_s1 = inlined_call_operand.vmem [shape: f32[68,32], index: 1, kind: input, shape index: {}]   ;;  %s7145_s3 = inlined_call_operand.vmem [shape: f32[2,1,32], index: 3, kind: input, shape index: {}]   ;;  %s7146_s4 = inlined_call_operand.vmem [shape: f32[2,1,32], index: 4, kind: input, shape index: {}]   ;;  %s7147_s6 = inlined_call_operand.vmem [shape: f32[2,1,96], index: 6, kind: input, shape index: {}]   ;;  %s7148_s5 = inlined_call_operand.vmem [shape: f32[2,32,96], index: 5, kind: input, shape index: {}]   ;;  %s7149_s7 = inlined_call_operand.vmem [shape: f32[2,32,32], index: 7, kind: input, shape index: {}]   ;;  %s7150_s8 = inlined_call_operand.vmem [shape: f32[2,1,32], index: 8, kind: input, shape index: {}]   ;;  %s7151_s9 = inlined_call_operand.vmem [shape: f32[2,1,32], index: 9, kind: input, shape index: {}]   ;;  %s7152_s10 = inlined_call_operand.vmem [shape: f32[2,1,32], index: 10, kind: input, shape index: {}]   ;;  %s7153_s11 = inlined_call_operand.vmem [shape: f32[2,32,64], index: 11, kind: input, shape index: {}]   ;;  %s7154_s12 = inlined_call_operand.vmem [shape: f32[2,1,64], index: 12, kind: input, shape index: {}]   ;;  %s7155_s13 = inlined_call_operand.vmem [shape: f32[2,64,32], index: 13, kind: input, shape index: {}]   ;;  %s7156_s14 = inlined_call_operand.vmem [shape: f32[2,1,32], index: 14, kind: input, shape index: {}]   ;;  %s7157_s15 = inlined_call_operand.vmem [shape: f32[1,32], index: 15, kind: input, shape index: {}]   ;;  %s7158_s16 = inlined_call_operand.vmem [shape: f32[1,32], index: 16, kind: input, shape index: {}]   ;;  %s7159_s19 = inlined_call_operand.vmem [shape: f32[1,64], index: 19, kind: input, shape index: {}]   ;;  %s7160_s18 = inlined_call_operand.vmem [shape: f32[1,32], index: 18, kind: input, shape index: {}]   ;;  %s7161_s17 = inlined_call_operand.vmem [shape: f32[32,32], index: 17, kind: input, shape index: {}]   ;;  %s7162_s20 = inlined_call_operand.<no memory space> [shape: f32[1,1], index: 20, kind: input, shape index: {}]   ;;  %s7163_s21 = inlined_call_operand.vmem [shape: f32[2,1], index: 21, kind: output, shape index: {}]  }
   0x1   :  { %7175 = sst [smem:[#allocation4_spill]] %s7142_s2  ;;  %4660 = vrcp.f32 %v4966_v21  ;;  %v402_v44 = vld [vmem:[%s7148_s5 + $0x18] sm:$0xff]  ;;  %v401_v45 = vld [vmem:[%s7148_s5 + $0x10] sm:$0xff]  ;;  %v400_v46 = vld [vmem:[%s7148_s5 + $0x8] sm:$0xff]  ;;  %s4969_s29 = smov 80  }
   0x2   :  { %7176 = sst [smem:[#allocation5_spill]] %s7143_s0  ;;  %446 = vmatpush.msra.mxu1 %v402_v44  ;;  %v399_v47 = vld [vmem:[%s7148_s5] sm:$0xff]  ;;  %s4971_s0 = smov 48  }
   0x3   :  { %7177 = sst [smem:[#allocation6_spill]] %s7144_s1  ;;  %s7170_s24 = smov 16  }
   0x4   :  { %7178 = sst [smem:[#allocation7_spill]] %s7145_s3  ;;  %447 = vmatpush.msra.mxu1 %v401_v45 }
   0x5   :  { %7179 = sst [smem:[#allocation8_spill]] %s7146_s4 }
   0x6   :  { %7180 = sst [smem:[#allocation9_spill]] %s7147_s6  ;;  %448 = vmatpush.msra.mxu1 %v400_v46 }
   0x7   :  { %s7181_s26 = sld [smem:[#allocation4_spill]]  ;;  %v4661_v22 = vpop.eup %4660 }
   0x8   :  { %s7182_s1 = sld [smem:[#allocation5_spill]]  ;;  %v198_v23 = vmul.f32 32.0, %v4661_v22  ;;  %vm202_vm2 = vweird.f32 %v4661_v22  ;;  %449 = vmatpush.msra.mxu1 %v399_v47 }
   0x9   :  { %s7183_s2 = sld [smem:[#allocation6_spill]] }
   0xa   :  { %v199_v24 = vsub.f32 1.0, %v198_v23  ;;  %s7184_s25 = sld [smem:[#allocation7_spill]] }
   0xb   :  { %s7185_s28 = sld [smem:[#allocation8_spill]] }
   0xc   :  { %v200_v25 = vmul.f32 %v4661_v22, %v199_v24  ;;  %s7186_s4 = sld [smem:[#allocation9_spill]] }
   0xd   :  { %v84_v0 = vld [vmem:[%s7181_s26 + $0x28] sm:$0xff]  ;;  %v83_v1 = vld [vmem:[%s7181_s26 + $0x20] sm:$0xff]  ;;  %v82_v2 = vld [vmem:[%s7181_s26 + $0x18] sm:$0xff] }
   0xe   :  { %132 = vmatpush.msra.mxu0 %v84_v0  ;;  %v81_v3 = vld [vmem:[%s7181_s26 + $0x10] sm:$0xff]  ;;  %v80_v4 = vld [vmem:[%s7181_s26 + $0x8] sm:$0xff]  ;;  %v79_v5 = vld [vmem:[%s7181_s26] sm:$0xff]  ;;  %v201_v27 = vadd.f32 %v4661_v22, %v200_v25 }
   0xf   :  { %v70_v6 = vld [vmem:[%s7182_s1] sm:$0xff]  ;;  %v71_v7 = vld [vmem:[%s7182_s1 + $0x8] sm:$0xff]  ;;  %v72_v8 = vld [vmem:[%s7182_s1 + $0x10] sm:$0xff] }
  0x10   :  { %133 = vmatpush.msra.mxu0 %v83_v1  ;;  %v85_v9 = vld [vmem:[%s7183_s2] sm:$0xff]  ;;  %v86_v13 = vld [vmem:[%s7183_s2 + $0x8] sm:$0xff]  ;;  %v87_v17 = vld [vmem:[%s7183_s2 + $0x10] sm:$0xff]  ;;  %v5138_v28 = vsel %vm202_vm2, %v4661_v22, %v201_v27  ;;  %vm529_vm2 = vcmask 138240  }
  0x11   :  { %v73_v26 = vld [vmem:[%s7182_s1 + $0x18] sm:$0xff]  ;;  %v74_v58 = vld [vmem:[%s7182_s1 + $0x20] sm:$0xff] }
  0x12   :  { %134 = vmatpush.msra.mxu0 %v82_v2  ;;  %v88_v56 = vld [vmem:[%s7183_s2 + $0x18] sm:$0xff]  ;;  %v89_v46 = vld [vmem:[%s7183_s2 + $0x20] sm:$0xff] }
  0x14   :  { %135 = vmatpush.msra.mxu0 %v81_v3 }
  0x16   :  { %136 = vmatpush.msra.mxu0 %v80_v4 }
  0x18   :  { %137 = vmatpush.msra.mxu0 %v79_v5 }
  0x19   :  { %4279 = vmatmul.msk.f32.vlgmr.msra.gmra.mxu0 %vm94_vm0, %v70_v6  ;;  %v5186_v6 = vld [vmem:[%s7184_s25] ss:$0 sm:$0xff] }
  0x21   :  { %4280 = vmatmul.msk.f32.gmra.mxu0 %vm94_vm0, %v71_v7 }
  0x29   :  { %4281 = vmatmul.msk.f32.gmra.mxu0 %vm94_vm0, %v72_v8 }
  0x31   :  { %4282 = vmatmul.msk.f32.gmra.mxu0 %vm94_vm0, %v73_v26 }
  0x39   :  { %4283 = vmatmul.msk.f32.gmra.mxu0 %vm94_vm0, %v74_v58  ;;  %v76_v58 = vld [vmem:[%s7182_s1 + $0x30] sm:$0xff] }
  0x96   :  { %v139_v10 = vpop.f32.mrf.mxu0 }
  0x97   :  { %v5116_v11 = vadd.f32 %v139_v10, %v85_v9  ;;  %v5191_v10 = vld [vmem:[%s7185_s28] ss:$0 sm:$0xff] }
  0x99   :  { %v169_v12 = vsel %vm168_vm1, %v5116_v11, 0.0 }
  0x9a   :  { %170 = vadd.xlane.f32.xlu0 %v169_v12 }
  0x9e   :  { %v142_v14 = vpop.f32.mrf.mxu0 }
  0x9f   :  { %v5123_v15 = vadd.f32 %v142_v14, %v86_v13 }
  0xa1   :  { %v172_v16 = vsel %vm168_vm1, %v5123_v15, 0.0 }
  0xa2   :  { %173 = vadd.xlane.f32.xlu0 %v172_v16 }
  0xa6   :  { %v145_v18 = vpop.f32.mrf.mxu0 }
  0xa7   :  { %v5130_v19 = vadd.f32 %v145_v18, %v87_v17 }
  0xa9   :  { %v175_v20 = vsel %vm168_vm1, %v5130_v19, 0.0 }
  0xaa   :  { %176 = vadd.xlane.f32.xlu1 %v175_v20 }
  0xae   :  { %v148_v57 = vpop.f32.mrf.mxu0 }
  0xaf   :  { %v5177_v60 = vadd.f32 %v148_v57, %v88_v56 }
  0xb1   :  { %v178_v63 = vsel %vm168_vm1, %v5177_v60, 0.0 }
  0xb6   :  { %v151_v47 = vpop.f32.mrf.mxu0 }
 0x10d   :  { %v171_v29 = vpop.xlane.xlu0 %170 }
 0x10e   :  { %v204_v30 = vmul.f32 %v5138_v28, %v171_v29 }
 0x110   :  { %v213_v31 = vsub.f32 %v5116_v11, %v204_v30 }
 0x112   :  { %v222_v32 = vmul.f32 %v213_v31, %v213_v31 }
 0x114   :  { %v231_v33 = vsel %vm168_vm1, %v222_v32, 0.0 }
 0x115   :  { %232 = vadd.xlane.f32.xlu1 %v231_v33  ;;  %v174_v34 = vpop.xlane.xlu0 %173 }
 0x116   :  { %v205_v35 = vmul.f32 %v5138_v28, %v174_v34  ;;  %v5207_v34 = vld [vmem:[%s7186_s4] ss:$0 sm:$0xff] }
 0x118   :  { %v5145_v36 = vsub.f32 %v5123_v15, %v205_v35 }
 0x11a   :  { %v223_v37 = vmul.f32 %v5145_v36, %v5145_v36 }
 0x11c   :  { %v234_v38 = vsel %vm168_vm1, %v223_v37, 0.0 }
 0x11d   :  { %v177_v39 = vpop.xlane.xlu1 %176  ;;  %235 = vadd.xlane.f32.xlu2 %v234_v38 }
 0x11e   :  { %v206_v40 = vmul.f32 %v5138_v28, %v177_v39 }
 0x120   :  { %v5152_v41 = vsub.f32 %v5130_v19, %v206_v40 }
 0x122   :  { %v224_v42 = vmul.f32 %v5152_v41, %v5152_v41 }
 0x124   :  { %v237_v43 = vsel %vm168_vm1, %v224_v42, 0.0 }
 0x125   :  { %238 = vadd.xlane.f32.xlu2 %v237_v43 }
 0x12d   :  { %179 = vadd.xlane.f32.xlu2 %v178_v63 }
 0x188   :  { %v233_v48 = vpop.xlane.xlu1 %232 }
 0x189   :  { %v258_v49 = vmul.f32 %v233_v48, %v5138_v28  ;;  %v5230_v48 = vadd.f32 %v151_v47, %v89_v46 }
 0x18b   :  { %v267_v50 = vadd.f32 1e-12, %v258_v49  ;;  %v181_v49 = vsel %vm168_vm1, %v5230_v48, 0.0 }
 0x18d   :  { %4662 = vrsqrt.f32 %v267_v50  ;;  %vm282_vm4 = vweird.f32 %v267_v50 }
 0x190   :  { %v236_v51 = vpop.xlane.xlu2 %235 }
 0x191   :  { %v259_v52 = vmul.f32 %v236_v51, %v5138_v28 }
 0x193   :  { %v4663_v53 = vpop.eup %4662  ;;  %v268_v54 = vadd.f32 1e-12, %v259_v52 }
 0x194   :  { %v277_v55 = vmul.f32 %v4663_v53, %v267_v50  ;;  %vm283_vm3 = vweird.f32 %v4663_v53 }
 0x195   :  { %4664 = vrsqrt.f32 %v268_v54  ;;  %vm284_vm5 = vmor %vm282_vm4, %vm283_vm3  ;;  %vm292_vm7 = vweird.f32 %v268_v54 }
 0x196   :  { %v278_v59 = vmul.f32 %v4663_v53, %v277_v55 }
 0x198   :  { %v279_v61 = vmul.f32 0.5, %v278_v59  ;;  %v239_v62 = vpop.xlane.xlu2 %238 }
 0x199   :  { %v260_v0 = vmul.f32 %v239_v62, %v5138_v28 }
 0x19a   :  { %v280_v1 = vsub.f32 1.5, %v279_v61 }
 0x19b   :  { %v4665_v2 = vpop.eup %4664  ;;  %v269_v3 = vadd.f32 1e-12, %v260_v0  ;;  %v77_v0 = vld [vmem:[%s7182_s1 + $0x38] sm:$0xff] }
 0x19c   :  { %v281_v4 = vmul.f32 %v4663_v53, %v280_v1  ;;  %v287_v5 = vmul.f32 %v4665_v2, %v268_v54  ;;  %vm293_vm6 = vweird.f32 %v4665_v2  ;;  %v75_v54 = vld [vmem:[%s7182_s1 + $0x28] sm:$0xff] }
 0x19d   :  { %4666 = vrsqrt.f32 %v269_v3  ;;  %vm294_vm8 = vmor %vm292_vm7, %vm293_vm6  ;;  %vm302_vm10 = vweird.f32 %v269_v3  ;;  %4284 = vmatmul.msk.f32.gmra.mxu0 %vm94_vm0, %v75_v54  ;;  %v92_v54 = vld [vmem:[%s7183_s2 + $0x38] sm:$0xff]  ;;  %vm581_vm6 = vcmask 1040384   ;;  %vm762_vm7 = vcmask 1046528  }
 0x19e   :  { %v288_v7 = vmul.f32 %v4665_v2, %v287_v5  ;;  %v285_v8 = vsel %vm284_vm5, %v4663_v53, %v281_v4 }
 0x19f   :  { %v366_v9 = vmul.f32 %v285_v8, %v213_v31 }
 0x1a0   :  { %v289_v12 = vmul.f32 0.5, %v288_v7 }
 0x1a1   :  { %v378_v13 = vmul.f32 %v5186_v6, %v366_v9 }
 0x1a2   :  { %v290_v14 = vsub.f32 1.5, %v289_v12 }
 0x1a3   :  { %v4667_v16 = vpop.eup %4666  ;;  %v390_v17 = vadd.f32 %v5191_v10, %v378_v13 }
 0x1a4   :  { %v291_v18 = vmul.f32 %v4665_v2, %v290_v14  ;;  %v297_v20 = vmul.f32 %v4667_v16, %v269_v3  ;;  %vm303_vm9 = vweird.f32 %v4667_v16 }
 0x1a5   :  { %4288 = vmatmul.msk.f32.vlgmr.msra.gmra.mxu1 %vm168_vm1, %v390_v17  ;;  %vm304_vm11 = vmor %vm302_vm10, %vm303_vm9  ;;  %4285 = vmatmul.msk.f32.gmra.mxu0 %vm94_vm0, %v76_v58 }
 0x1a6   :  { %v298_v21 = vmul.f32 %v4667_v16, %v297_v20  ;;  %v295_v22 = vsel %vm294_vm8, %v4665_v2, %v291_v18  ;;  %vm193_vm8 = vcmask 257024  }
 0x1a7   :  { %v367_v23 = vmul.f32 %v295_v22, %v5145_v36 }
 0x1a8   :  { %v299_v24 = vmul.f32 0.5, %v298_v21 }
 0x1a9   :  { %v379_v25 = vmul.f32 %v5186_v6, %v367_v23 }
 0x1aa   :  { %v300_v26 = vsub.f32 1.5, %v299_v24 }
 0x1ab   :  { %v391_v27 = vadd.f32 %v5191_v10, %v379_v25 }
 0x1ac   :  { %v301_v29 = vmul.f32 %v4667_v16, %v300_v26 }
 0x1ad   :  { %4289 = vmatmul.msk.f32.gmra.mxu1 %vm168_vm1, %v391_v27  ;;  %4286 = vmatmul.msk.f32.gmra.mxu0 %vm94_vm0, %v77_v0  ;;  %v90_v27 = vld [vmem:[%s7183_s2 + $0x28] sm:$0xff] }
 0x1ae   :  { %v305_v30 = vsel %vm304_vm11, %v4667_v16, %v301_v29 }
 0x1af   :  { %v368_v31 = vmul.f32 %v305_v30, %v5152_v41  ;;  %v180_v41 = vpop.xlane.xlu2 %179 }
 0x1b0   :  { %v207_v42 = vmul.f32 %v5138_v28, %v180_v41 }
 0x1b1   :  { %v380_v32 = vmul.f32 %v5186_v6, %v368_v31 }
 0x1b2   :  { %v216_v43 = vsub.f32 %v5177_v60, %v207_v42 }
 0x1b3   :  { %v392_v33 = vadd.f32 %v5191_v10, %v380_v32  ;;  %v78_v32 = vld [vmem:[%s7182_s1 + $0x40] sm:$0xf] }
 0x1b4   :  { %v225_v44 = vmul.f32 %v216_v43, %v216_v43 }
 0x1b5   :  { %4290 = vmatmul.msk.f32.gmra.mxu1 %vm168_vm1, %v392_v33  ;;  %4287 = vmatmul.msk.f32.gmra.mxu0 %vm94_vm0, %v78_v32  ;;  %vm536_vm0 = vcmask 131072  }
 0x1b6   :  { %v240_v45 = vsel %vm168_vm1, %v225_v44, 0.0 }
 0x21a   :  { %v154_v29 = vpop.f32.mrf.mxu0 }
 0x21b   :  { %v5282_v31 = vadd.f32 %v154_v29, %v90_v27 }
 0x222   :  { %v451_v35 = vpop.f32.mrf.mxu1  ;;  %v157_v42 = vpop.f32.mrf.mxu0 }
 0x223   :  { %v5210_v36 = vadd.f32 %v5207_v34, %v451_v35  ;;  %v184_v35 = vsel %vm168_vm1, %v5282_v31, 0.0 }
 0x225   :  { %481 = vrot.lane.b32.xlu2 %v5210_v36, %s4967_s30 }
 0x22a   :  { %v454_v37 = vpop.f32.mrf.mxu1 }
 0x22b   :  { %v5215_v38 = vadd.f32 %v5207_v34, %v454_v37 }
 0x22d   :  { %483 = vrot.lane.b32.xlu1 %v5215_v38, %s4967_s30  ;;  %v5236_v50 = vpack.i.bf16 %v5210_v36, %v5215_v38 }
 0x232   :  { %v457_v39 = vpop.f32.mrf.mxu1 }
 0x233   :  { %v5220_v40 = vadd.f32 %v5207_v34, %v457_v39  ;;  %v91_v39 = vld [vmem:[%s7183_s2 + $0x30] sm:$0xff] }
 0x234   :  { %v5293_v44 = vadd.f32 %v157_v42, %v91_v39 }
 0x235   :  { %485 = vrot.lane.b32.xlu0 %v5220_v40, %s4967_s30 }
 0x236   :  { %v187_v46 = vsel %vm168_vm1, %v5293_v44, 0.0 }
 0x257   :  { %241 = vadd.xlane.f32.xlu1 %v240_v45 }
 0x25f   :  { %182 = vadd.xlane.f32.xlu0 %v181_v49 }
 0x270   :  { %4560 = vrot.lane.b32.xlu1 %v5236_v50, %s7172_s23 }
 0x27f   :  { %v482_v53 = vpop.permute.xlu2 %481 }
 0x29f   :  { %v484_v52 = vpop.permute.xlu1 %483 }
 0x2a7   :  { %v486_v51 = vpop.permute.xlu0 %485 }
 0x2a8   :  { %4297 = vmatpush.xpose.msk.msra.mxu2 %vm487_vm12, %v486_v51 }
 0x2ac   :  { %4298 = vmatpush.xpose.msk.msra.mxu2 %vm487_vm12, %v484_v52 }
 0x2b0   :  { %4299 = vmatpush.xpose.msk.msra.mxu2 %vm487_vm12, %v482_v53 }
 0x2b3   :  { %4300 = vmatmul.msk.f32.vlgmr.msra.gmra.mxu2 %vm487_vm12, %v5210_v36 }
 0x2bb   :  { %4301 = vmatmul.msk.f32.gmra.mxu2 %vm487_vm12, %v5215_v38 }
 0x2c3   :  { %4302 = vmatmul.msk.f32.gmra.mxu2 %vm487_vm12, %v5220_v40 }
 0x2ca   :  { %v242_v55 = vpop.xlane.xlu1 %241 }
 0x2cb   :  { %v261_v56 = vmul.f32 %v242_v55, %v5138_v28  ;;  %v160_v55 = vpop.f32.mrf.mxu0 }
 0x2cd   :  { %v270_v57 = vadd.f32 1e-12, %v261_v56 }
 0x2cf   :  { %4668 = vrsqrt.f32 %v270_v57  ;;  %vm312_vm14 = vweird.f32 %v270_v57 }
 0x2d2   :  { %v183_v59 = vpop.xlane.xlu0 %182 }
 0x2d3   :  { %v208_v61 = vmul.f32 %v5138_v28, %v183_v59 }
 0x2d5   :  { %v4669_v62 = vpop.eup %4668  ;;  %v217_v63 = vsub.f32 %v5230_v48, %v208_v61 }
 0x2d6   :  { %v307_v1 = vmul.f32 %v4669_v62, %v270_v57  ;;  %vm313_vm13 = vweird.f32 %v4669_v62  ;;  %v5304_v57 = vadd.f32 %v160_v55, %v92_v54 }
 0x2d7   :  { %v226_v2 = vmul.f32 %v217_v63, %v217_v63  ;;  %vm314_vm15 = vmor %vm312_vm14, %vm313_vm13 }
 0x2d8   :  { %v308_v3 = vmul.f32 %v4669_v62, %v307_v1  ;;  %v190_v58 = vsel %vm168_vm1, %v5304_v57, 0.0 }
 0x2d9   :  { %v243_v4 = vsel %vm168_vm1, %v226_v2, 0.0 }
 0x2da   :  { %v309_v5 = vmul.f32 0.5, %v308_v3  ;;  %244 = vadd.xlane.f32.xlu2 %v243_v4 }
 0x2dc   :  { %v310_v7 = vsub.f32 1.5, %v309_v5 }
 0x2de   :  { %v311_v8 = vmul.f32 %v4669_v62, %v310_v7 }
 0x2e0   :  { %v315_v9 = vsel %vm314_vm15, %v4669_v62, %v311_v8 }
 0x2e1   :  { %v369_v12 = vmul.f32 %v315_v9, %v216_v43  ;;  %v763_v9 = vrot.slane %v5220_v40, 1 }
 0x2e2   :  { %185 = vadd.xlane.f32.xlu2 %v184_v35  ;;  %v4561_v61 = vpop.permute.xlu1 %4560 }
 0x2e3   :  { %v381_v13 = vmul.f32 %v5186_v6, %v369_v12  ;;  %v4563_v0 = vunpack.i.h.bf16 %v4561_v61 }
 0x2e5   :  { %v393_v14 = vadd.f32 %v5191_v10, %v381_v13 }
 0x2e7   :  { %4291 = vmatmul.msk.f32.gmra.mxu1 %vm168_vm1, %v393_v14 }
 0x2ea   :  { %188 = vadd.xlane.f32.xlu2 %v187_v46 }
 0x336   :  { %v517_v16 = vpop.f32.mrf.mxu2 }
 0x337   :  { %v5268_v17 = vmul.f32 0.25, %v517_v16 }
 0x339   :  { %v530_v18 = vsel %vm529_vm2, %v5268_v17, -inf }
 0x33a   :  { %531 = vmax.xlane.f32.xlu0 %v530_v18 }
 0x33e   :  { %v520_v20 = vpop.f32.mrf.mxu2 }
 0x33f   :  { %v5272_v21 = vmul.f32 0.25, %v520_v20  ;;  %v93_v20 = vld [vmem:[%s7183_s2 + $0x40] sm:$0xf]  ;;  %s4970_s2 = smov 112  }
 0x341   :  { %v533_v22 = vsel %vm529_vm2, %v5272_v21, -inf }
 0x342   :  { %534 = vmax.xlane.f32.xlu1 %v533_v22  ;;  %v163_v22 = vpop.f32.mrf.mxu0 }
 0x346   :  { %v523_v52 = vpop.f32.mrf.mxu2 }
 0x347   :  { %v528_v53 = vmul.f32 0.25, %v523_v52 }
 0x349   :  { %v537_v56 = vsel %vm536_vm0, %v528_v53, -inf }
 0x34d   :  { %v245_v23 = vpop.xlane.xlu2 %244 }
 0x34e   :  { %v262_v24 = vmul.f32 %v245_v23, %v5138_v28  ;;  %568 = vrot.lane.b32.xlu0 %v5220_v40, %s7172_s23 }
 0x350   :  { %v271_v25 = vadd.f32 1e-12, %v262_v24 }
 0x352   :  { %4670 = vrsqrt.f32 %v271_v25  ;;  %vm322_vm4 = vweird.f32 %v271_v25 }
 0x355   :  { %v186_v13 = vpop.xlane.xlu2 %185 }
 0x356   :  { %v209_v24 = vmul.f32 %v5138_v28, %v186_v13 }
 0x358   :  { %v4671_v26 = vpop.eup %4670  ;;  %v5348_v29 = vsub.f32 %v5282_v31, %v209_v24 }
 0x359   :  { %v317_v30 = vmul.f32 %v4671_v26, %v271_v25  ;;  %vm323_vm3 = vweird.f32 %v4671_v26  ;;  %v5342_v25 = vadd.f32 %v163_v22, %v93_v20 }
 0x35a   :  { %vm324_vm5 = vmor %vm322_vm4, %vm323_vm3  ;;  %vm1044_vm4 = vcmask 1045504  }
 0x35b   :  { %v318_v33 = vmul.f32 %v4671_v26, %v317_v30  ;;  %v194_v30 = vsel %vm193_vm8, %v5342_v25, 0.0 }
 0x35d   :  { %v319_v37 = vmul.f32 0.5, %v318_v33  ;;  %v189_v14 = vpop.xlane.xlu2 %188 }
 0x35e   :  { %v210_v16 = vmul.f32 %v5138_v28, %v189_v14 }
 0x35f   :  { %v320_v41 = vsub.f32 1.5, %v319_v37  ;;  %v227_v37 = vmul.f32 %v5348_v29, %v5348_v29 }
 0x360   :  { %v5336_v18 = vsub.f32 %v5293_v44, %v210_v16 }
 0x361   :  { %v321_v43 = vmul.f32 %v4671_v26, %v320_v41  ;;  %v246_v41 = vsel %vm168_vm1, %v227_v37, 0.0 }
 0x363   :  { %v325_v45 = vsel %vm324_vm5, %v4671_v26, %v321_v43  ;;  %v228_v26 = vmul.f32 %v5336_v18, %v5336_v18 }
 0x364   :  { %v370_v47 = vmul.f32 %v325_v45, %v217_v63  ;;  %v4562_v63 = vunpack.i.l.bf16 %v4561_v61  ;;  %v460_v1 = vpop.f32.mrf.mxu1 }
 0x365   :  { %v461_v2 = vadd.f32 %v5207_v34, %v460_v1  ;;  %v249_v32 = vsel %vm168_vm1, %v228_v26, 0.0 }
 0x366   :  { %v382_v49 = vmul.f32 %v5186_v6, %v370_v47 }
 0x367   :  { %v764_v5 = vrot.slane %v461_v2, 1 }
 0x368   :  { %v394_v51 = vadd.f32 %v5191_v10, %v382_v49 }
 0x369   :  { %v5330_v12 = vsel %vm762_vm7, %v763_v9, %v764_v5 }
 0x36a   :  { %4292 = vmatmul.msk.f32.gmra.mxu1 %vm168_vm1, %v394_v51 }
 0x378   :  { %538 = vmax.xlane.f32.xlu0 %v537_v56 }
 0x380   :  { %191 = vadd.xlane.f32.xlu0 %v190_v58 }
 0x3ad   :  { %v5308_v59 = vpop.xlane.xlu0 %531 }
 0x3ae   :  { %v540_v49 = vsub.f32 %v5268_v17, %v5308_v59 }
 0x3b0   :  { %v543_v51 = vmul.f32 1.442695, %v540_v49 }
 0x3b5   :  { %v535_v23 = vpop.xlane.xlu1 %534 }
 0x3b6   :  { %v541_v27 = vsub.f32 %v5272_v21, %v535_v23 }
 0x3b8   :  { %v545_v33 = vmul.f32 1.442695, %v541_v27 }
 0x3ba   :  { %4672 = vpow2.f32 %v545_v33 }
 0x3c0   :  { %v569_v62 = vpop.permute.xlu0 %568  ;;  %v5356_v42 = vpop.eup %4672 }
 0x3c1   :  { %4303 = vmatpush.msk.msra.mxu3 %vm581_vm6, %v569_v62  ;;  %v552_v43 = vsel %vm529_vm2, %v5356_v42, 0.0 }
 0x3c3   :  { %598 = vmatpush.msra.mxu3 %v4562_v63 }
 0x3c5   :  { %599 = vmatpush.msra.mxu3 %v4563_v0 }
 0x3e7   :  { %v463_v3 = vpop.f32.mrf.mxu1 }
 0x3e8   :  { %v5313_v4 = vadd.f32 %v5207_v34, %v463_v3 }
 0x3ea   :  { %v5316_v7 = vrot.slane %v5313_v4, 1 }
 0x3eb   :  { %v539_v35 = vpop.xlane.xlu0 %538 }
 0x3ec   :  { %903 = vrot.lane.b32.xlu0 %v5316_v7, %s4969_s29  ;;  %772 = vrot.lane.b32.xlu2 %v5316_v7, %s4967_s30  ;;  %v5324_v8 = vsel %vm762_vm7, %v764_v5, %v5316_v7  ;;  %v542_v39 = vsub.f32 %v528_v53, %v539_v35 }
 0x3ed   :  { %770 = vrot.lane.b32.xlu1 %v5324_v8, %s4967_s30 }
 0x3ee   :  { %v547_v21 = vmul.f32 1.442695, %v542_v39 }
 0x3f0   :  { %4674 = vpow2.f32 %v547_v21 }
 0x3f1   :  { %4676 = vpow2.f32 %v543_v51 }
 0x3f4   :  { %768 = vrot.lane.b32.xlu2 %v5330_v12, %s4967_s30 }
 0x3f6   :  { %v5360_v45 = vpop.eup %4674 }
 0x3f7   :  { %v555_v46 = vsel %vm536_vm0, %v5360_v45, 0.0  ;;  %v5383_v52 = vpop.eup %4676 }
 0x3f8   :  { %v549_v53 = vsel %vm529_vm2, %v5383_v52, 0.0 }
 0x416   :  { %250 = vadd.xlane.f32.xlu0 %v249_v32 }
 0x417   :  { %195 = vadd.xlane.f32.xlu1 %v194_v30 }
 0x41d   :  { %247 = vadd.xlane.f32.xlu2 %v246_v41 }
 0x425   :  { %553 = vadd.xlane.f32.xlu2 %v552_v43 }
 0x42a   :  { %897 = vrot.lane.b32.xlu0 %v5316_v7, %s4970_s2 }
 0x42d   :  { %556 = vadd.xlane.f32.xlu2 %v555_v46 }
 0x430   :  { %901 = vrot.lane.b32.xlu1 %v5324_v8, %s4969_s29 }
 0x432   :  { %620 = vrot.lane.b32.xlu0 %v5220_v40, %s4969_s29 }
 0x43a   :  { %618 = vrot.lane.b32.xlu0 %v5215_v38, %s4969_s29 }
 0x442   :  { %616 = vrot.lane.b32.xlu0 %v5210_v36, %s4969_s29 }
 0x445   :  { %899 = vrot.lane.b32.xlu2 %v5330_v12, %s4969_s29 }
 0x446   :  { %v773_v47 = vpop.permute.xlu2 %772 }
 0x447   :  { %4317 = vmatpush.xpose.msk.msrb.mxu3 %vm487_vm12, %v773_v47 }
 0x44a   :  { %612 = vrot.lane.b32.xlu0 %v5215_v38, %s4970_s2  ;;  %v192_v38 = vpop.xlane.xlu0 %191 }
 0x44b   :  { %v211_v14 = vmul.f32 %v5138_v28, %v192_v38 }
 0x44d   :  { %v5406_v22 = vsub.f32 %v5304_v57, %v211_v14 }
 0x44e   :  { %v769_v55 = vpop.permute.xlu2 %768 }
 0x44f   :  { %v229_v30 = vmul.f32 %v5406_v22, %v5406_v22 }
 0x451   :  { %v252_v37 = vsel %vm168_vm1, %v229_v30, 0.0 }
 0x452   :  { %614 = vrot.lane.b32.xlu0 %v5220_v40, %s4970_s2 }
 0x45a   :  { %550 = vadd.xlane.f32.xlu1 %v549_v53 }
 0x45e   :  { %v5393_v17 = vpop.permute.xlu0 %903 }
 0x45f   :  { %v771_v54 = vpop.permute.xlu1 %770 }
 0x460   :  { %4318 = vmatpush.xpose.msk.msrb.mxu3 %vm487_vm12, %v771_v54 }
 0x464   :  { %4319 = vmatpush.xpose.msk.msrb.mxu3 %vm487_vm12, %v769_v55 }
 0x473   :  { %893 = vrot.lane.b32.xlu1 %v5330_v12, %s4970_s2 }
 0x47b   :  { %895 = vrot.lane.b32.xlu1 %v5324_v8, %s4970_s2 }
 0x489   :  { %v251_v56 = vpop.xlane.xlu0 %250 }
 0x48a   :  { %v264_v58 = vmul.f32 %v251_v56, %v5138_v28  ;;  %v196_v59 = vpop.xlane.xlu1 %195 }
 0x48b   :  { %v212_v61 = vmul.f32 %v5138_v28, %v196_v59 }
 0x48c   :  { %v273_v62 = vadd.f32 1e-12, %v264_v58 }
 0x48d   :  { %v5398_v63 = vsub.f32 %v5342_v25, %v212_v61 }
 0x48e   :  { %4678 = vrsqrt.f32 %v273_v62  ;;  %vm342_vm14 = vweird.f32 %v273_v62 }
 0x48f   :  { %v230_v0 = vmul.f32 %v5398_v63, %v5398_v63 }
 0x490   :  { %v248_v1 = vpop.xlane.xlu2 %247 }
 0x491   :  { %v263_v2 = vmul.f32 %v248_v1, %v5138_v28  ;;  %v255_v3 = vsel %vm193_vm8, %v230_v0, 0.0 }
 0x492   :  { %256 = vadd.xlane.f32.xlu2 %v255_v3 }
 0x493   :  { %v272_v5 = vadd.f32 1e-12, %v263_v2 }
 0x494   :  { %v4679_v9 = vpop.eup %4678 }
 0x495   :  { %v337_v13 = vmul.f32 %v4679_v9, %v273_v62  ;;  %4680 = vrsqrt.f32 %v272_v5  ;;  %vm343_vm10 = vweird.f32 %v4679_v9  ;;  %vm332_vm11 = vweird.f32 %v272_v5 }
 0x496   :  { %vm344_vm15 = vmor %vm342_vm14, %vm343_vm10  ;;  %vm1326_vm14 = vcmask 1044480  }
 0x497   :  { %v338_v16 = vmul.f32 %v4679_v9, %v337_v13 }
 0x498   :  { %v554_v58 = vpop.xlane.xlu2 %553 }
 0x499   :  { %v339_v23 = vmul.f32 0.5, %v338_v16 }
 0x49b   :  { %v4681_v20 = vpop.eup %4680  ;;  %v340_v32 = vsub.f32 1.5, %v339_v23 }
 0x49c   :  { %v327_v24 = vmul.f32 %v4681_v20, %v272_v5  ;;  %v5408_v26 = vpop.permute.xlu0 %897  ;;  %vm333_vm9 = vweird.f32 %v4681_v20 }
 0x49d   :  { %v341_v39 = vmul.f32 %v4679_v9, %v340_v32  ;;  %vm334_vm13 = vmor %vm332_vm11, %vm333_vm9 }
 0x49e   :  { %v328_v27 = vmul.f32 %v4681_v20, %v327_v24 }
 0x49f   :  { %v345_v47 = vsel %vm344_vm15, %v4679_v9, %v341_v39  ;;  %vm758_vm15 = vcmask 253952  }
 0x4a0   :  { %v329_v33 = vmul.f32 0.5, %v328_v27  ;;  %v372_v53 = vmul.f32 %v345_v47, %v5336_v18  ;;  %v557_v61 = vpop.xlane.xlu2 %556 }
 0x4a2   :  { %v330_v35 = vsub.f32 1.5, %v329_v33  ;;  %v384_v55 = vmul.f32 %v5186_v6, %v372_v53 }
 0x4a4   :  { %v331_v41 = vmul.f32 %v4681_v20, %v330_v35  ;;  %v621_v21 = vpop.permute.xlu0 %620  ;;  %v396_v38 = vadd.f32 %v5191_v10, %v384_v55 }
 0x4a5   :  { %253 = vadd.xlane.f32.xlu1 %v252_v37  ;;  %4307 = vmatpush.xpose.msk.msrb.mxu1 %vm487_vm12, %v621_v21 }
 0x4a6   :  { %v335_v43 = vsel %vm334_vm13, %v4681_v20, %v331_v41 }
 0x4a7   :  { %v371_v46 = vmul.f32 %v335_v43, %v5348_v29  ;;  %v902_v29 = vpop.permute.xlu1 %901  ;;  %v1045_v43 = vrot.slane %v5313_v4, 2 }
 0x4a8   :  { %v900_v1 = vpop.permute.xlu2 %899 }
 0x4a9   :  { %v383_v49 = vmul.f32 %v5186_v6, %v371_v46 }
 0x4ab   :  { %v395_v51 = vadd.f32 %v5191_v10, %v383_v49 }
 0x4ac   :  { %v619_v54 = vpop.permute.xlu0 %618 }
 0x4ad   :  { %4293 = vmatmul.msk.f32.gmra.mxu1 %vm168_vm1, %v395_v51 }
 0x4ae   :  { %4308 = vmatpush.xpose.msk.msrb.mxu1 %vm487_vm12, %v619_v54 }
 0x4b4   :  { %v617_v56 = vpop.permute.xlu0 %616 }
 0x4b5   :  { %4294 = vmatmul.msk.f32.gmra.mxu1 %vm168_vm1, %v396_v38 }
 0x4b6   :  { %4309 = vmatpush.xpose.msk.msrb.mxu1 %vm487_vm12, %v617_v56 }
 0x4be   :  { %610 = vrot.lane.b32.xlu1 %v5210_v36, %s4970_s2 }
 0x4cd   :  { %v551_v18 = vpop.xlane.xlu1 %550 }
 0x4ce   :  { %4682 = vrcp.f32 %v551_v18 }
 0x4cf   :  { %4684 = vrcp.f32 %v554_v58 }
 0x4d0   :  { %4686 = vrcp.f32 %v557_v61 }
 0x4d4   :  { %v4683_v59 = vpop.eup %4682 }
 0x4d5   :  { %v561_v62 = vmul.f32 %v4683_v59, %v5383_v52  ;;  %v4685_v0 = vpop.eup %4684 }
 0x4d6   :  { %v562_v36 = vmul.f32 %v4685_v0, %v5356_v42  ;;  %v4687_v2 = vpop.eup %4686 }
 0x4d7   :  { %4304 = vmatmul.msk.f32.vlgmr.msra.gmra.mxu3 %vm529_vm2, %v561_v62  ;;  %v563_v3 = vmul.f32 %v4687_v2, %v5360_v45 }
 0x4d8   :  { %4327 = vmatpush.xpose.msk.msra.mxu3 %vm487_vm12, %v5393_v17 }
 0x4dc   :  { %4328 = vmatpush.xpose.msk.msra.mxu3 %vm487_vm12, %v902_v29 }
 0x4df   :  { %4305 = vmatmul.msk.f32.gmra.mxu3 %vm529_vm2, %v562_v36 }
 0x4e0   :  { %4329 = vmatpush.xpose.msk.msra.mxu3 %vm487_vm12, %v900_v1 }
 0x4e5   :  { %v894_v42 = vpop.permute.xlu1 %893 }
 0x4e7   :  { %4306 = vmatmul.msk.f32.gmra.mxu3 %vm529_vm2, %v563_v3 }
 0x4ed   :  { %v896_v5 = vpop.permute.xlu1 %895 }
 0x4ef   :  { %4320 = vmatmul.msk.f32.vlgmr.msrb.gmra.mxu3 %vm487_vm12, %v5330_v12 }
 0x4f7   :  { %4321 = vmatmul.msk.f32.gmra.mxu3 %vm487_vm12, %v5324_v8 }
 0x4ff   :  { %4322 = vmatmul.msk.f32.gmra.mxu3 %vm487_vm12, %v5316_v7 }
 0x505   :  { %v257_v52 = vpop.xlane.xlu2 %256 }
 0x506   :  { %v266_v17 = vmul.f32 %v257_v52, %v5138_v28 }
 0x507   :  { %4330 = vmatmul.msk.f32.vlgmr.msra.gmra.mxu3 %vm487_vm12, %v894_v42 }
 0x508   :  { %v275_v9 = vadd.f32 1e-12, %v266_v17 }
 0x50a   :  { %4688 = vrsqrt.f32 %v275_v9  ;;  %vm362_vm11 = vweird.f32 %v275_v9 }
 0x50f   :  { %4331 = vmatmul.msk.f32.gmra.mxu3 %vm487_vm12, %v896_v5 }
 0x510   :  { %v4689_v13 = vpop.eup %4688 }
 0x511   :  { %v357_v20 = vmul.f32 %v4689_v13, %v275_v9  ;;  %vm363_vm5 = vweird.f32 %v4689_v13 }
 0x512   :  { %vm364_vm13 = vmor %vm362_vm11, %vm363_vm5 }
 0x513   :  { %v358_v23 = vmul.f32 %v4689_v13, %v357_v20  ;;  %v5526_v20 = vpack.i.bf16 %v5330_v12, %v5324_v8 }
 0x515   :  { %v359_v27 = vmul.f32 0.5, %v358_v23 }
 0x517   :  { %4332 = vmatmul.msk.f32.gmra.mxu3 %vm487_vm12, %v5408_v26  ;;  %v360_v33 = vsub.f32 1.5, %v359_v27 }
 0x518   :  { %v254_v45 = vpop.xlane.xlu1 %253 }
 0x519   :  { %v265_v14 = vmul.f32 %v254_v45, %v5138_v28  ;;  %v361_v26 = vmul.f32 %v4689_v13, %v360_v33 }
 0x51b   :  { %v274_v16 = vadd.f32 1e-12, %v265_v14  ;;  %v365_v53 = vsel %vm364_vm13, %v4689_v13, %v361_v26 }
 0x51c   :  { %v374_v56 = vmul.f32 %v365_v53, %v5398_v63 }
 0x51d   :  { %4690 = vrsqrt.f32 %v274_v16  ;;  %vm352_vm9 = vweird.f32 %v274_v16 }
 0x51e   :  { %v386_v58 = vmul.f32 %v5186_v6, %v374_v56 }
 0x520   :  { %v398_v18 = vadd.f32 %v5191_v10, %v386_v58 }
 0x523   :  { %v4691_v24 = vpop.eup %4690 }
 0x524   :  { %v347_v30 = vmul.f32 %v4691_v24, %v274_v16  ;;  %vm353_vm3 = vweird.f32 %v4691_v24 }
 0x525   :  { %vm354_vm10 = vmor %vm352_vm9, %vm353_vm3 }
 0x526   :  { %v348_v32 = vmul.f32 %v4691_v24, %v347_v30 }
 0x528   :  { %v349_v35 = vmul.f32 0.5, %v348_v32 }
 0x52a   :  { %v350_v37 = vsub.f32 1.5, %v349_v35  ;;  %v466_v39 = vpop.f32.mrf.mxu1 }
 0x52b   :  { %v467_v41 = vadd.f32 %v5207_v34, %v466_v39 }
 0x52c   :  { %v351_v21 = vmul.f32 %v4691_v24, %v350_v37 }
 0x52d   :  { %v1046_v46 = vrot.slane %v467_v41, 2 }
 0x52e   :  { %v355_v47 = vsel %vm354_vm10, %v4691_v24, %v351_v21 }
 0x52f   :  { %v5451_v49 = vsel %vm1044_vm4, %v1045_v43, %v1046_v46  ;;  %v373_v51 = vmul.f32 %v355_v47, %v5406_v22 }
 0x530   :  { %1181 = vrot.lane.b32.xlu2 %v5451_v49, %s4969_s29  ;;  %v611_v63 = vpop.permute.xlu1 %610 }
 0x531   :  { %v385_v54 = vmul.f32 %v5186_v6, %v373_v51  ;;  %v613_v6 = vpop.permute.xlu0 %612 }
 0x532   :  { %v469_v55 = vpop.f32.mrf.mxu1 }
 0x533   :  { %v470_v38 = vadd.f32 %v5207_v34, %v469_v55  ;;  %v397_v4 = vadd.f32 %v5191_v10, %v385_v54 }
 0x535   :  { %v5460_v29 = vrot.slane %v470_v38, 2  ;;  %4295 = vmatmul.msk.f32.gmra.mxu1 %vm168_vm1, %v397_v4  ;;  %v1327_v2 = vrot.slane %v470_v38, 3 }
 0x537   :  { %1185 = vrot.lane.b32.xlu0 %v5460_v29, %s4969_s29  ;;  %v5467_v22 = vsel %vm1044_vm4, %v1046_v46, %v5460_v29 }
 0x538   :  { %1183 = vrot.lane.b32.xlu1 %v5467_v22, %s4969_s29 }
 0x539   :  { %v615_v59 = vpop.permute.xlu0 %614 }
 0x53d   :  { %4296 = vmatmul.msk.f32.gmra.mxu1 %vm168_vm1, %v398_v18 }
 0x53f   :  { %1175 = vrot.lane.b32.xlu0 %v5451_v49, %s4970_s2 }
 0x540   :  { %1177 = vrot.lane.b32.xlu1 %v5467_v22, %s4970_s2 }
 0x545   :  { %4310 = vmatmul.msk.f32.vlgmr.msrb.gmra.mxu1 %vm487_vm12, %v611_v63 }
 0x548   :  { %1179 = vrot.lane.b32.xlu1 %v5460_v29, %s4970_s2 }
 0x54d   :  { %4311 = vmatmul.msk.f32.gmra.mxu1 %vm487_vm12, %v613_v6 }
 0x555   :  { %4312 = vmatmul.msk.f32.gmra.mxu1 %vm487_vm12, %v615_v59 }
 0x55a   :  { %v5493_v52 = vpop.f32.mrf.mxu3 }
 0x562   :  { %v5509_v14 = vpop.f32.mrf.mxu3 }
 0x56a   :  { %v5518_v16 = vpop.f32.mrf.mxu3 }
 0x572   :  { %v5528_v23 = vpop.f32.mrf.mxu3 }
 0x57a   :  { %v5536_v24 = vpop.f32.mrf.mxu3 }
 0x582   :  { %v5540_v27 = vpop.f32.mrf.mxu3 }
 0x58a   :  { %v1182_v62 = vpop.permute.xlu2 %1181  ;;  %v934_v8 = vpop.f32.mrf.mxu3 }
 0x58b   :  { %v943_v30 = vmul.f32 0.25, %v934_v8 }
 0x58d   :  { %v946_v35 = vsel %vm529_vm2, %v943_v30, -inf }
 0x592   :  { %v937_v32 = vpop.f32.mrf.mxu3 }
 0x593   :  { %v944_v37 = vmul.f32 0.25, %v937_v32 }
 0x595   :  { %v949_v39 = vsel %vm529_vm2, %v944_v37, -inf }
 0x59a   :  { %v940_v41 = vpop.f32.mrf.mxu3 }
 0x59b   :  { %v5546_v21 = vmul.f32 0.25, %v940_v41 }
 0x59d   :  { %v952_v46 = vsel %vm536_vm0, %v5546_v21, -inf }
 0x5a9   :  { %v1186_v10 = vpop.permute.xlu0 %1185 }
 0x5aa   :  { %4347 = vmatpush.xpose.msk.msrb.mxu3 %vm487_vm12, %v1186_v10  ;;  %v1184_v61 = vpop.permute.xlu1 %1183 }
 0x5ae   :  { %4348 = vmatpush.xpose.msk.msrb.mxu3 %vm487_vm12, %v1184_v61 }
 0x5b1   :  { %v1176_v1 = vpop.permute.xlu0 %1175 }
 0x5b2   :  { %v472_v0 = vpop.f32.mrf.mxu1  ;;  %4349 = vmatpush.xpose.msk.msrb.mxu3 %vm487_vm12, %v1182_v62  ;;  %v1178_v17 = vpop.permute.xlu1 %1177 }
 0x5b3   :  { %v473_v36 = vadd.f32 %v5207_v34, %v472_v0 }
 0x5b5   :  { %v1328_v3 = vrot.slane %v473_v36, 3  ;;  %4350 = vmatmul.msk.f32.vlgmr.msrb.gmra.mxu3 %vm487_vm12, %v1176_v1 }
 0x5b7   :  { %v5489_v42 = vsel %vm1326_vm14, %v1327_v2, %v1328_v3 }
 0x5b8   :  { %1463 = vrot.lane.b32.xlu2 %v5489_v42, %s4969_s29 }
 0x5ba   :  { %v475_v5 = vpop.f32.mrf.mxu1 }
 0x5bb   :  { %v476_v9 = vadd.f32 %v5207_v34, %v475_v5  ;;  %v1180_v34 = vpop.permute.xlu1 %1179 }
 0x5bd   :  { %v5496_v45 = vrot.slane %v476_v9, 3  ;;  %4351 = vmatmul.msk.f32.gmra.mxu3 %vm487_vm12, %v1178_v17 }
 0x5bf   :  { %1467 = vrot.lane.b32.xlu0 %v5496_v45, %s4969_s29  ;;  %v5503_v13 = vsel %vm1326_vm14, %v1328_v3, %v5496_v45 }
 0x5c0   :  { %983 = vrot.lane.b32.xlu2 %v5316_v7, %s4971_s0  ;;  %1459 = vrot.lane.b32.xlu1 %v5503_v13, %s4970_s2 }
 0x5c2   :  { %v651_v12 = vpop.f32.mrf.mxu1 }
 0x5c3   :  { %v660_v53 = vmul.f32 0.25, %v651_v12 }
 0x5c5   :  { %4352 = vmatmul.msk.f32.gmra.mxu3 %vm487_vm12, %v1180_v34  ;;  %v663_v54 = vsel %vm529_vm2, %v660_v53, -inf }
 0x5c7   :  { %1465 = vrot.lane.b32.xlu0 %v5503_v13, %s4969_s29 }
 0x5c8   :  { %1054 = vrot.lane.b32.xlu2 %v5460_v29, %s4967_s30  ;;  %1336 = vrot.lane.b32.xlu1 %v5496_v45, %s4967_s30 }
 0x5ca   :  { %v5542_v33 = vpop.f32.mrf.mxu1 }
 0x5cf   :  { %1457 = vrot.lane.b32.xlu0 %v5489_v42, %s4970_s2 }
 0x5d0   :  { %1052 = vrot.lane.b32.xlu2 %v5467_v22, %s4967_s30 }
 0x5d2   :  { %v657_v26 = vpop.f32.mrf.mxu1 }
 0x5d3   :  { %v5548_v43 = vmul.f32 0.25, %v657_v26 }
 0x5d5   :  { %v669_v47 = vsel %vm536_vm0, %v5548_v43, -inf }
 0x5d7   :  { %4565 = vrot.lane.b32.xlu0 %v5526_v20, %s4971_s0 }
 0x5d8   :  { %1050 = vrot.lane.b32.xlu2 %v5451_v49, %s4967_s30 }
 0x5df   :  { %1461 = vrot.lane.b32.xlu0 %v5496_v45, %s4970_s2 }
 0x5e7   :  { %1332 = vrot.lane.b32.xlu0 %v5489_v42, %s4967_s30 }
 0x601   :  { %947 = vmax.xlane.f32.xlu2 %v946_v35 }
 0x609   :  { %950 = vmax.xlane.f32.xlu2 %v949_v39 }
 0x611   :  { %953 = vmax.xlane.f32.xlu2 %v952_v46  ;;  %670 = vmax.xlane.f32.xlu0 %v669_v47 }
 0x612   :  { %v1464_v51 = vpop.permute.xlu2 %1463 }
 0x619   :  { %664 = vmax.xlane.f32.xlu2 %v663_v54 }
 0x61a   :  { %v984_v55 = vpop.permute.xlu2 %983 }
 0x61b   :  { %4333 = vmatpush.msk.msra.mxu1 %vm581_vm6, %v984_v55 }
 0x622   :  { %v1055_v38 = vpop.permute.xlu2 %1054 }
 0x623   :  { %4337 = vmatpush.xpose.msk.msrb.mxu0 %vm487_vm12, %v1055_v38 }
 0x62a   :  { %v1053_v4 = vpop.permute.xlu2 %1052 }
 0x62b   :  { %4338 = vmatpush.xpose.msk.msrb.mxu0 %vm487_vm12, %v1053_v4 }
 0x631   :  { %v1468_v56 = vpop.permute.xlu0 %1467 }
 0x632   :  { %v1460_v58 = vpop.permute.xlu1 %1459  ;;  %4367 = vmatpush.xpose.msk.msra.mxu3 %vm487_vm12, %v1468_v56  ;;  %v1051_v18 = vpop.permute.xlu2 %1050 }
 0x633   :  { %4339 = vmatpush.xpose.msk.msrb.mxu0 %vm487_vm12, %v1051_v18 }
 0x636   :  { %4340 = vmatmul.msk.f32.vlgmr.msrb.gmra.mxu0 %vm487_vm12, %v5451_v49 }
 0x638   :  { %v1216_v63 = vpop.f32.mrf.mxu3 }
 0x639   :  { %v5562_v6 = vmul.f32 0.25, %v1216_v63  ;;  %v1466_v59 = vpop.permute.xlu0 %1465  ;;  %v661_v63 = vmul.f32 0.25, %v5542_v33 }
 0x63a   :  { %v1337_v10 = vpop.permute.xlu1 %1336  ;;  %4368 = vmatpush.xpose.msk.msra.mxu3 %vm487_vm12, %v1466_v59 }
 0x63b   :  { %4357 = vmatpush.xpose.msk.msra.mxu0 %vm487_vm12, %v1337_v10  ;;  %v1228_v61 = vsel %vm529_vm2, %v5562_v6, -inf }
 0x63c   :  { %1229 = vmax.xlane.f32.xlu2 %v1228_v61 }
 0x63e   :  { %4341 = vmatmul.msk.f32.gmra.mxu0 %vm487_vm12, %v5467_v22  ;;  %4369 = vmatpush.xpose.msk.msra.mxu3 %vm487_vm12, %v1464_v51 }
 0x640   :  { %v1219_v51 = vpop.f32.mrf.mxu3 }
 0x641   :  { %v1458_v62 = vpop.permute.xlu0 %1457  ;;  %v5585_v54 = vmul.f32 0.25, %v1219_v51 }
 0x642   :  { %4370 = vmatmul.msk.f32.vlgmr.msra.gmra.mxu3 %vm487_vm12, %v1458_v62  ;;  %v5605_v62 = vmul.f32 0.25, %v5536_v24 }
 0x644   :  { %v818_v33 = vsel %vm529_vm2, %v5605_v62, -inf }
 0x648   :  { %v1222_v59 = vpop.f32.mrf.mxu3 }
 0x649   :  { %v4566_v0 = vpop.permute.xlu0 %4565 }
 0x64a   :  { %v4567_v36 = vunpack.i.l.bf16 %v4566_v0  ;;  %4371 = vmatmul.msk.f32.gmra.mxu3 %vm487_vm12, %v1460_v58  ;;  %v4568_v1 = vunpack.i.h.bf16 %v4566_v0 }
 0x64c   :  { %1012 = vmatpush.msra.mxu1 %v4567_v36 }
 0x64e   :  { %1013 = vmatpush.msra.mxu1 %v4568_v1 }
 0x650   :  { %4549 = vmatpush.xpose.msk.msrb.mxu1 %vm487_vm12, %v1055_v38  ;;  %v1231_v38 = vsel %vm529_vm2, %v5585_v54, -inf }
 0x651   :  { %v1462_v2 = vpop.permute.xlu0 %1461 }
 0x652   :  { %4372 = vmatmul.msk.f32.gmra.mxu3 %vm487_vm12, %v1462_v2 }
 0x654   :  { %4550 = vmatpush.xpose.msk.msrb.mxu1 %vm487_vm12, %v1053_v4  ;;  %v5591_v4 = vmul.f32 0.25, %v5528_v23 }
 0x656   :  { %v815_v56 = vsel %vm529_vm2, %v5591_v4, -inf }
 0x658   :  { %4551 = vmatpush.xpose.msk.msrb.mxu1 %vm487_vm12, %v1051_v18 }
 0x659   :  { %v1333_v61 = vpop.permute.xlu0 %1332 }
 0x674   :  { %v948_v3 = vpop.xlane.xlu2 %947 }
 0x675   :  { %v955_v17 = vsub.f32 %v943_v30, %v948_v3 }
 0x677   :  { %v958_v5 = vmul.f32 1.442695, %v955_v17 }
 0x679   :  { %4692 = vpow2.f32 %v958_v5 }
 0x67c   :  { %v951_v9 = vpop.xlane.xlu2 %950 }
 0x67d   :  { %v956_v34 = vsub.f32 %v944_v37, %v951_v9 }
 0x67f   :  { %v4693_v8 = vpop.eup %4692  ;;  %v960_v12 = vmul.f32 1.442695, %v956_v34 }
 0x680   :  { %v964_v32 = vsel %vm529_vm2, %v4693_v8, 0.0 }
 0x681   :  { %4694 = vpow2.f32 %v960_v12  ;;  %965 = vadd.xlane.f32.xlu1 %v964_v32 }
 0x684   :  { %v954_v35 = vpop.xlane.xlu2 %953  ;;  %v671_v36 = vpop.xlane.xlu0 %670 }
 0x685   :  { %v957_v55 = vsub.f32 %v5546_v21, %v954_v35  ;;  %v666_v21 = vsel %vm529_vm2, %v661_v63, -inf  ;;  %v674_v51 = vsub.f32 %v5548_v43, %v671_v36 }
 0x687   :  { %v4695_v39 = vpop.eup %4694 }
 0x688   :  { %v967_v41 = vsel %vm529_vm2, %v4695_v39, 0.0 }
 0x689   :  { %968 = vadd.xlane.f32.xlu0 %v967_v41  ;;  %v5637_v41 = vpack.i.bf16 %v5451_v49, %v5467_v22 }
 0x68c   :  { %v665_v26 = vpop.xlane.xlu2 %664 }
 0x68d   :  { %v672_v46 = vsub.f32 %v660_v53, %v665_v26  ;;  %v962_v53 = vmul.f32 1.442695, %v957_v55 }
 0x68f   :  { %v675_v47 = vmul.f32 1.442695, %v672_v46 }
 0x691   :  { %4696 = vpow2.f32 %v675_v47 }
 0x692   :  { %4698 = vpow2.f32 %v962_v53  ;;  %v679_v53 = vmul.f32 1.442695, %v674_v51 }
 0x697   :  { %v5579_v30 = vpop.eup %4696 }
 0x698   :  { %v681_v37 = vsel %vm529_vm2, %v5579_v30, 0.0  ;;  %v4699_v58 = vpop.eup %4698 }
 0x699   :  { %682 = vadd.xlane.f32.xlu2 %v681_v37  ;;  %v970_v18 = vsel %vm536_vm0, %v4699_v58, 0.0 }
 0x69a   :  { %1334 = vrot.lane.b32.xlu1 %v5503_v13, %s4967_s30 }
 0x6a1   :  { %1232 = vmax.xlane.f32.xlu2 %v1231_v38 }
 0x6a9   :  { %816 = vmax.xlane.f32.xlu2 %v815_v56  ;;  %v5652_v56 = vmul.f32 0.25, %v1222_v59  ;;  %v5663_v59 = vmul.f32 0.25, %v5540_v27 }
 0x6af   :  { %v5616_v9 = vpop.xlane.xlu2 %1229 }
 0x6b1   :  { %971 = vadd.xlane.f32.xlu2 %v970_v18 }
 0x6b3   :  { %v1085_v36 = vpop.f32.mrf.mxu0 }
 0x6c4   :  { %667 = vmax.xlane.f32.xlu1 %v666_v21 }
 0x6c5   :  { %v1498_v23 = vpop.f32.mrf.mxu3 }
 0x6c6   :  { %v5614_v24 = vmul.f32 0.25, %v1498_v23 }
 0x6c8   :  { %v1510_v12 = vsel %vm529_vm2, %v5614_v24, -inf }
 0x6c9   :  { %700 = vrot.lane.b32.xlu2 %v5220_v40, %s4971_s0 }
 0x6cd   :  { %v5602_v10 = vpop.f32.mrf.mxu3 }
 0x6d5   :  { %v1504_v0 = vpop.f32.mrf.mxu3 }
 0x6d6   :  { %v5609_v2 = vmul.f32 0.25, %v1504_v0  ;;  %v821_v0 = vsel %vm536_vm0, %v5663_v59, -inf }
 0x6d8   :  { %v1516_v40 = vsel %vm536_vm0, %v5609_v2, -inf }
 0x6dd   :  { %4570 = vrot.lane.b32.xlu1 %v5236_v50, %s4971_s0 }
 0x6f2   :  { %819 = vmax.xlane.f32.xlu2 %v818_v33 }
 0x6f4   :  { %v966_v1 = vpop.xlane.xlu1 %965 }
 0x6f5   :  { %4700 = vrcp.f32 %v966_v1  ;;  %v5667_v1 = vmul.f32 0.25, %v1085_v36 }
 0x6fa   :  { %1517 = vmax.xlane.f32.xlu2 %v1516_v40  ;;  %v1097_v40 = vsel %vm529_vm2, %v5667_v1, -inf }
 0x6fb   :  { %v4701_v50 = vpop.eup %4700 }
 0x6fc   :  { %v976_v3 = vmul.f32 %v4701_v50, %v4693_v8  ;;  %v969_v17 = vpop.xlane.xlu0 %968 }
 0x6fd   :  { %4702 = vrcp.f32 %v969_v17 }
 0x6fe   :  { %4334 = vmatmul.msk.f32.vlgmr.msra.gmra.mxu1 %vm529_vm2, %v976_v3  ;;  %v5673_v3 = vmul.f32 0.25, %v5602_v10 }
 0x700   :  { %v1513_v27 = vsel %vm529_vm2, %v5673_v3, -inf }
 0x703   :  { %v4703_v5 = vpop.eup %4702 }
 0x704   :  { %v977_v34 = vmul.f32 %v4703_v5, %v4695_v39  ;;  %v1088_v5 = vpop.f32.mrf.mxu0 }
 0x706   :  { %4335 = vmatmul.msk.f32.gmra.mxu1 %vm529_vm2, %v977_v34 }
 0x707   :  { %1511 = vmax.xlane.f32.xlu1 %v1510_v12  ;;  %v5679_v12 = vmul.f32 0.25, %v1088_v5 }
 0x709   :  { %v1100_v10 = vsel %vm529_vm2, %v5679_v12, -inf }
 0x70c   :  { %v1335_v32 = vpop.permute.xlu1 %1334  ;;  %v683_v35 = vpop.xlane.xlu2 %682 }
 0x70d   :  { %4358 = vmatpush.xpose.msk.msra.mxu0 %vm487_vm12, %v1335_v32 }
 0x711   :  { %4359 = vmatpush.xpose.msk.msra.mxu0 %vm487_vm12, %v1333_v61 }
 0x712   :  { %1265 = vrot.lane.b32.xlu2 %v5460_v29, %s4971_s0 }
 0x714   :  { %4360 = vmatmul.msk.f32.vlgmr.msra.gmra.mxu0 %vm487_vm12, %v5489_v42  ;;  %v5627_v8 = vpop.xlane.xlu2 %1232 }
 0x71a   :  { %852 = vrot.lane.b32.xlu2 %v5316_v7, %s7172_s23 }
 0x71c   :  { %4361 = vmatmul.msk.f32.gmra.mxu0 %vm487_vm12, %v5503_v13  ;;  %v5633_v39 = vpop.xlane.xlu2 %816 }
 0x720   :  { %4575 = vrot.lane.b32.xlu1 %v5637_v41, %s4971_s0 }
 0x724   :  { %4362 = vmatmul.msk.f32.gmra.mxu0 %vm487_vm12, %v5496_v45  ;;  %v972_v26 = vpop.xlane.xlu2 %971 }
 0x725   :  { %4704 = vrcp.f32 %v972_v26 }
 0x72b   :  { %v4705_v46 = vpop.eup %4704 }
 0x72c   :  { %v701_v47 = vpop.permute.xlu2 %700  ;;  %v978_v7 = vmul.f32 %v4705_v46, %v4699_v58  ;;  %v1234_v58 = vsel %vm536_vm0, %v5652_v56, -inf }
 0x72d   :  { %4313 = vmatpush.msk.msrb.mxu2 %vm581_vm6, %v701_v47  ;;  %v824_v47 = vsub.f32 %v5591_v4, %v5633_v39  ;;  %v1237_v4 = vsub.f32 %v5562_v6, %v5616_v9 }
 0x72e   :  { %4336 = vmatmul.msk.f32.gmra.mxu1 %vm529_vm2, %v978_v7 }
 0x72f   :  { %v827_v7 = vmul.f32 1.442695, %v824_v47 }
 0x736   :  { %4342 = vmatmul.msk.f32.vlgmr.msrb.gmra.mxu1 %vm487_vm12, %v5460_v29 }
 0x737   :  { %v668_v49 = vpop.xlane.xlu1 %667 }
 0x738   :  { %v673_v22 = vsub.f32 %v661_v63, %v668_v49 }
 0x73a   :  { %v677_v37 = vmul.f32 1.442695, %v673_v22 }
 0x73c   :  { %4706 = vpow2.f32 %v677_v37 }
 0x73d   :  { %4708 = vpow2.f32 %v679_v53 }
 0x73e   :  { %4710 = vrcp.f32 %v683_v35 }
 0x742   :  { %v5648_v55 = vpop.eup %4706 }
 0x743   :  { %v684_v38 = vsel %vm529_vm2, %v5648_v55, 0.0  ;;  %v5656_v18 = vpop.eup %4708 }
 0x744   :  { %685 = vadd.xlane.f32.xlu0 %v684_v38  ;;  %v4711_v21 = vpop.eup %4710  ;;  %v687_v61 = vsel %vm536_vm0, %v5656_v18, 0.0 }
 0x745   :  { %v693_v33 = vmul.f32 %v4711_v21, %v5579_v30  ;;  %v1240_v21 = vmul.f32 1.442695, %v1237_v4 }
 0x74c   :  { %1235 = vmax.xlane.f32.xlu0 %v1234_v58 }
 0x74f   :  { %v4571_v63 = vpop.permute.xlu1 %4570 }
 0x750   :  { %v4572_v43 = vunpack.i.l.bf16 %v4571_v63  ;;  %v4573_v23 = vunpack.i.h.bf16 %v4571_v63 }
 0x752   :  { %729 = vmatpush.msrb.mxu2 %v4572_v43 }
 0x754   :  { %688 = vadd.xlane.f32.xlu0 %v687_v61  ;;  %730 = vmatpush.msrb.mxu2 %v4573_v23 }
 0x755   :  { %4314 = vmatmul.msk.f32.vlgmr.msrb.gmra.mxu2 %vm529_vm2, %v693_v33 }
 0x75c   :  { %822 = vmax.xlane.f32.xlu0 %v821_v0 }
 0x764   :  { %1098 = vmax.xlane.f32.xlu0 %v1097_v40 }
 0x765   :  { %v820_v50 = vpop.xlane.xlu2 %819 }
 0x766   :  { %v825_v30 = vsub.f32 %v5605_v62, %v820_v50 }
 0x768   :  { %v829_v17 = vmul.f32 1.442695, %v825_v30 }
 0x76a   :  { %4712 = vpow2.f32 %v829_v17 }
 0x76b   :  { %4714 = vpow2.f32 %v827_v7 }
 0x76c   :  { %1514 = vmax.xlane.f32.xlu0 %v1513_v27  ;;  %4716 = vpow2.f32 %v1240_v21 }
 0x76d   :  { %v5677_v34 = vpop.xlane.xlu2 %1517 }
 0x770   :  { %v5681_v32 = vpop.eup %4712 }
 0x771   :  { %v836_v35 = vsel %vm529_vm2, %v5681_v32, 0.0  ;;  %v5695_v58 = vpop.eup %4714 }
 0x772   :  { %837 = vadd.xlane.f32.xlu2 %v836_v35  ;;  %v833_v39 = vsel %vm529_vm2, %v5695_v58, 0.0  ;;  %v5705_v33 = vpop.eup %4716 }
 0x773   :  { %v1246_v0 = vsel %vm529_vm2, %v5705_v33, 0.0 }
 0x774   :  { %1101 = vmax.xlane.f32.xlu0 %v1100_v10 }
 0x775   :  { %v1266_v62 = vpop.permute.xlu2 %1265 }
 0x776   :  { %4353 = vmatpush.msk.msra.mxu1 %vm581_vm6, %v1266_v62 }
 0x77a   :  { %v1512_v46 = vpop.xlane.xlu1 %1511 }
 0x77b   :  { %v1519_v30 = vsub.f32 %v5614_v24, %v1512_v46  ;;  %v5715_v5 = vpop.f32.mrf.mxu1  ;;  %v1238_v46 = vsub.f32 %v5585_v54, %v5627_v8 }
 0x77d   :  { %v853_v26 = vpop.permute.xlu2 %852  ;;  %v1522_v27 = vmul.f32 1.442695, %v1519_v30  ;;  %v1521_v30 = vsub.f32 %v5609_v2, %v5677_v34 }
 0x77e   :  { %4323 = vmatpush.msk.msra.mxu2 %vm581_vm6, %v853_v26 }
 0x783   :  { %v5727_v47 = vpop.f32.mrf.mxu1 }
 0x791   :  { %v1367_v49 = vpop.f32.mrf.mxu0 }
 0x792   :  { %v5691_v22 = vmul.f32 0.25, %v1367_v49  ;;  %v4576_v37 = vpop.permute.xlu1 %4575 }
 0x793   :  { %v4577_v51 = vunpack.i.l.bf16 %v4576_v37  ;;  %v4578_v53 = vunpack.i.h.bf16 %v4576_v37  ;;  %v1242_v37 = vmul.f32 1.442695, %v1238_v46 }
 0x794   :  { %v1379_v38 = vsel %vm529_vm2, %v5691_v22, -inf }
 0x795   :  { %1380 = vmax.xlane.f32.xlu0 %v1379_v38  ;;  %1294 = vmatpush.msra.mxu1 %v4577_v51 }
 0x797   :  { %1295 = vmatpush.msra.mxu1 %v4578_v53 }
 0x799   :  { %v1370_v63 = vpop.f32.mrf.mxu0 }
 0x79a   :  { %v5732_v51 = vmul.f32 0.25, %v1370_v63 }
 0x79c   :  { %v1382_v53 = vsel %vm529_vm2, %v5732_v51, -inf }
 0x79d   :  { %834 = vadd.xlane.f32.xlu0 %v833_v39 }
 0x7a1   :  { %v1373_v43 = vpop.f32.mrf.mxu0 }
 0x7a2   :  { %v5701_v23 = vmul.f32 0.25, %v1373_v43 }
 0x7a4   :  { %v1385_v61 = vsel %vm536_vm0, %v5701_v23, -inf }
 0x7a5   :  { %1386 = vmax.xlane.f32.xlu1 %v1385_v61 }
 0x7ad   :  { %1247 = vadd.xlane.f32.xlu1 %v1246_v0 }
 0x7b1   :  { %4580 = vrot.lane.b32.xlu0 %v5526_v20, %s7172_s23 }
 0x7b7   :  { %v686_v6 = vpop.xlane.xlu0 %685 }
 0x7b8   :  { %4718 = vrcp.f32 %v686_v6  ;;  %v4584_v6 = vpack.i.bf16 %v5489_v42, %v5503_v13 }
 0x7be   :  { %v4719_v9 = vpop.eup %4718 }
 0x7bf   :  { %v1236_v36 = vpop.xlane.xlu0 %1235  ;;  %v694_v40 = vmul.f32 %v4719_v9, %v5648_v55 }
 0x7c0   :  { %v1239_v50 = vsub.f32 %v5652_v56, %v1236_v36 }
 0x7c1   :  { %4315 = vmatmul.msk.f32.gmra.mxu2 %vm529_vm2, %v694_v40 }
 0x7c2   :  { %v1244_v17 = vmul.f32 1.442695, %v1239_v50 }
 0x7c4   :  { %4720 = vpow2.f32 %v1244_v17 }
 0x7c7   :  { %v689_v35 = vpop.xlane.xlu0 %688 }
 0x7c8   :  { %4722 = vrcp.f32 %v689_v35  ;;  %v1526_v35 = vmul.f32 1.442695, %v1521_v30 }
 0x7c9   :  { %4724 = vpow2.f32 %v1522_v27 }
 0x7ca   :  { %v5717_v20 = vpop.eup %4720 }
 0x7cb   :  { %v1252_v10 = vsel %vm536_vm0, %v5717_v20, 0.0 }
 0x7cc   :  { %1253 = vadd.xlane.f32.xlu1 %v1252_v10 }
 0x7ce   :  { %v4723_v55 = vpop.eup %4722 }
 0x7cf   :  { %v823_v56 = vpop.xlane.xlu0 %822  ;;  %v695_v62 = vmul.f32 %v4723_v55, %v5656_v18  ;;  %v5722_v26 = vpop.eup %4724 }
 0x7d0   :  { %v826_v24 = vsub.f32 %v5663_v59, %v823_v56  ;;  %v1528_v49 = vsel %vm529_vm2, %v5722_v26, 0.0  ;;  %v5735_v59 = vpop.f32.mrf.mxu1 }
 0x7d1   :  { %4316 = vmatmul.msk.f32.gmra.mxu2 %vm529_vm2, %v695_v62 }
 0x7d2   :  { %v831_v7 = vmul.f32 1.442695, %v826_v24 }
 0x7d4   :  { %4726 = vpow2.f32 %v831_v7  ;;  %1529 = vadd.xlane.f32.xlu1 %v1528_v49 }
 0x7d5   :  { %4728 = vpow2.f32 %v1242_v37 }
 0x7d7   :  { %v1099_v18 = vpop.xlane.xlu0 %1098 }
 0x7d8   :  { %v1106_v38 = vsub.f32 %v5667_v1, %v1099_v18  ;;  %v1091_v21 = vpop.f32.mrf.mxu1 }
 0x7d9   :  { %v5751_v61 = vmul.f32 0.25, %v1091_v21 }
 0x7da   :  { %v5737_v54 = vpop.eup %4726  ;;  %v1109_v8 = vmul.f32 1.442695, %v1106_v38 }
 0x7db   :  { %1383 = vmax.xlane.f32.xlu0 %v1382_v53  ;;  %v839_v4 = vsel %vm536_vm0, %v5737_v54, 0.0  ;;  %v5743_v63 = vpop.eup %4728  ;;  %v1103_v0 = vsel %vm536_vm0, %v5751_v61, -inf }
 0x7dc   :  { %4730 = vpow2.f32 %v1109_v8  ;;  %840 = vadd.xlane.f32.xlu2 %v839_v4  ;;  %v1249_v1 = vsel %vm529_vm2, %v5743_v63, 0.0 }
 0x7df   :  { %v1515_v9 = vpop.xlane.xlu0 %1514 }
 0x7e0   :  { %v1520_v17 = vsub.f32 %v5673_v3, %v1515_v9 }
 0x7e2   :  { %v5745_v39 = vpop.eup %4730  ;;  %v1524_v10 = vmul.f32 1.442695, %v1520_v17 }
 0x7e3   :  { %1250 = vadd.xlane.f32.xlu0 %v1249_v1  ;;  %v1115_v43 = vsel %vm529_vm2, %v5745_v39, 0.0 }
 0x7e4   :  { %1116 = vadd.xlane.f32.xlu1 %v1115_v43 }
 0x7e5   :  { %v838_v2 = vpop.xlane.xlu2 %837 }
 0x7e7   :  { %v1102_v36 = vpop.xlane.xlu0 %1101 }
 0x7e8   :  { %v1107_v50 = vsub.f32 %v5679_v12, %v1102_v36 }
 0x7ea   :  { %v1111_v27 = vmul.f32 1.442695, %v1107_v50 }
 0x7eb   :  { %1104 = vmax.xlane.f32.xlu0 %v1103_v0 }
 0x7ec   :  { %4732 = vpow2.f32 %v1111_v27 }
 0x7ed   :  { %4734 = vpow2.f32 %v1526_v35 }
 0x7f2   :  { %v5769_v56 = vpop.eup %4732 }
 0x7f3   :  { %v5771_v12 = vpop.eup %4734  ;;  %v1118_v24 = vsel %vm529_vm2, %v5769_v56, 0.0 }
 0x7f4   :  { %1547 = vrot.lane.b32.xlu2 %v5496_v45, %s4971_s0  ;;  %v1534_v7 = vsel %vm536_vm0, %v5771_v12, 0.0 }
 0x7fc   :  { %4590 = vrot.lane.b32.xlu2 %v5637_v41, %s7172_s23 }
 0x7fd   :  { %1134 = vrot.lane.b32.xlu1 %v5460_v29, %s7172_s23 }
 0x7ff   :  { %4585 = vrot.lane.b32.xlu0 %v4584_v6, %s4971_s0 }
 0x808   :  { %v1381_v40 = vpop.xlane.xlu0 %1380 }
 0x809   :  { %v1388_v29 = vsub.f32 %v5691_v22, %v1381_v40 }
 0x80b   :  { %v1391_v13 = vmul.f32 1.442695, %v1388_v29 }
 0x810   :  { %v835_v42 = vpop.xlane.xlu0 %834 }
 0x811   :  { %4736 = vrcp.f32 %v835_v42 }
 0x812   :  { %4738 = vpow2.f32 %v1524_v10 }
 0x817   :  { %v4737_v34 = vpop.eup %4736 }
 0x818   :  { %v1387_v41 = vpop.xlane.xlu1 %1386  ;;  %v5775_v22 = vpop.eup %4738  ;;  %v845_v37 = vmul.f32 %v4737_v34, %v5695_v58 }
 0x819   :  { %v1531_v38 = vsel %vm529_vm2, %v5775_v22, 0.0  ;;  %v1390_v43 = vsub.f32 %v5701_v23, %v1387_v41 }
 0x81b   :  { %v1395_v9 = vmul.f32 1.442695, %v1390_v43 }
 0x820   :  { %v1248_v55 = vpop.xlane.xlu1 %1247 }
 0x821   :  { %4740 = vrcp.f32 %v1248_v55 }
 0x822   :  { %4742 = vpow2.f32 %v1391_v13 }
 0x823   :  { %v4581_v3 = vpop.permute.xlu0 %4580  ;;  %4744 = vrcp.f32 %v838_v2 }
 0x824   :  { %v4582_v62 = vunpack.i.l.bf16 %v4581_v3  ;;  %v4583_v46 = vunpack.i.h.bf16 %v4581_v3 }
 0x825   :  { %1119 = vadd.xlane.f32.xlu2 %v1118_v24 }
 0x826   :  { %881 = vmatpush.msra.mxu2 %v4582_v62 }
 0x827   :  { %v4741_v49 = vpop.eup %4740  ;;  %1535 = vadd.xlane.f32.xlu1 %v1534_v7 }
 0x828   :  { %v1258_v18 = vmul.f32 %v4741_v49, %v5705_v33  ;;  %882 = vmatpush.msra.mxu2 %v4583_v46  ;;  %v5783_v8 = vpop.eup %4742  ;;  %v732_v46 = vpop.f32.mrf.mxu2 }
 0x829   :  { %1532 = vadd.xlane.f32.xlu0 %v1531_v38  ;;  %4324 = vmatmul.msk.f32.vlgmr.msra.gmra.mxu2 %vm529_vm2, %v845_v37  ;;  %v4745_v53 = vpop.eup %4744  ;;  %v1397_v4 = vsel %vm529_vm2, %v5783_v8, 0.0 }
 0x82a   :  { %4354 = vmatmul.msk.f32.vlgmr.msra.gmra.mxu1 %vm529_vm2, %v1258_v18  ;;  %v846_v58 = vmul.f32 %v4745_v53, %v5681_v32 }
 0x82d   :  { %1398 = vadd.xlane.f32.xlu2 %v1397_v4 }
 0x831   :  { %4325 = vmatmul.msk.f32.gmra.mxu2 %vm529_vm2, %v846_v58 }
 0x83f   :  { %v1254_v36 = vpop.xlane.xlu1 %1253 }
 0x844   :  { %v735_v18 = vpop.f32.mrf.mxu2 }
 0x845   :  { %4595 = vrot.lane.b32.xlu2 %v4584_v6, %s7172_s23 }
 0x847   :  { %v1530_v27 = vpop.xlane.xlu1 %1529 }
 0x84d   :  { %1027 = vrot.lane.b32.xlu2 %v5715_v5, %s7170_s24 }
 0x84e   :  { %v1384_v33 = vpop.xlane.xlu0 %1383 }
 0x84f   :  { %v1389_v1 = vsub.f32 %v5732_v51, %v1384_v33  ;;  %v841_v21 = vpop.xlane.xlu2 %840 }
 0x850   :  { %4746 = vrcp.f32 %v841_v21 }
 0x851   :  { %v1393_v0 = vmul.f32 1.442695, %v1389_v1 }
 0x853   :  { %4748 = vpow2.f32 %v1393_v0 }
 0x854   :  { %v738_v38 = vpop.f32.mrf.mxu2 }
 0x855   :  { %1031 = vrot.lane.b32.xlu2 %v5735_v59, %s7170_s24 }
 0x856   :  { %v4747_v32 = vpop.eup %4746  ;;  %v1251_v6 = vpop.xlane.xlu0 %1250 }
 0x857   :  { %4750 = vrcp.f32 %v1251_v6  ;;  %v1548_v40 = vpop.permute.xlu2 %1547  ;;  %v847_v5 = vmul.f32 %v4747_v32, %v5737_v54  ;;  %v1117_v42 = vpop.xlane.xlu1 %1116 }
 0x858   :  { %4373 = vmatpush.msk.msrb.mxu1 %vm581_vm6, %v1548_v40  ;;  %4752 = vpow2.f32 %v1395_v9  ;;  %v1617_v40 = vld [vmem:[%s7149_s7 + $0x10] sm:$0xff] }
 0x859   :  { %v5800_v51 = vpop.eup %4748  ;;  %4326 = vmatmul.msk.f32.gmra.mxu2 %vm529_vm2, %v847_v5  ;;  %4754 = vrcp.f32 %v1254_v36 }
 0x85a   :  { %v1400_v23 = vsel %vm529_vm2, %v5800_v51, 0.0 }
 0x85b   :  { %1401 = vadd.xlane.f32.xlu1 %v1400_v23 }
 0x85d   :  { %v4751_v50 = vpop.eup %4750 }
 0x85e   :  { %v1105_v59 = vpop.xlane.xlu0 %1104  ;;  %v1259_v30 = vmul.f32 %v4751_v50, %v5743_v63  ;;  %v5806_v17 = vpop.eup %4752 }
 0x85f   :  { %v1108_v54 = vsub.f32 %v5751_v61, %v1105_v59  ;;  %v1403_v35 = vsel %vm536_vm0, %v5806_v17, 0.0  ;;  %v4755_v10 = vpop.eup %4754  ;;  %v4591_v13 = vpop.permute.xlu2 %4590 }
 0x860   :  { %4355 = vmatmul.msk.f32.gmra.mxu1 %vm529_vm2, %v1259_v30  ;;  %v1260_v29 = vmul.f32 %v4755_v10, %v5717_v20  ;;  %v4592_v3 = vunpack.i.l.bf16 %v4591_v13  ;;  %v4593_v20 = vunpack.i.h.bf16 %v4591_v13  ;;  %v1616_v30 = vld [vmem:[%s7149_s7 + $0x8] sm:$0xff] }
 0x861   :  { %v1113_v41 = vmul.f32 1.442695, %v1108_v54 }
 0x863   :  { %4756 = vpow2.f32 %v1113_v41  ;;  %1404 = vadd.xlane.f32.xlu1 %v1403_v35 }
 0x864   :  { %4758 = vrcp.f32 %v1117_v42 }
 0x865   :  { %4760 = vrcp.f32 %v1530_v27  ;;  %v1615_v27 = vld [vmem:[%s7149_s7] sm:$0xff] }
 0x868   :  { %4356 = vmatmul.msk.f32.gmra.mxu1 %vm529_vm2, %v1260_v29 }
 0x869   :  { %v5814_v63 = vpop.eup %4756 }
 0x86a   :  { %v1121_v61 = vsel %vm536_vm0, %v5814_v63, 0.0  ;;  %v4759_v2 = vpop.eup %4758 }
 0x86b   :  { %1122 = vadd.xlane.f32.xlu0 %v1121_v61  ;;  %v4761_v62 = vpop.eup %4760  ;;  %v1127_v7 = vmul.f32 %v4759_v2, %v5745_v39 }
 0x86c   :  { %v1540_v37 = vmul.f32 %v4761_v62, %v5722_v26 }
 0x86f   :  { %v1135_v55 = vpop.permute.xlu1 %1134 }
 0x870   :  { %4343 = vmatpush.msk.msrb.mxu2 %vm581_vm6, %v1135_v55 }
 0x871   :  { %v4586_v34 = vpop.permute.xlu0 %4585 }
 0x872   :  { %v4587_v24 = vunpack.i.l.bf16 %v4586_v34  ;;  %1163 = vmatpush.msrb.mxu2 %v4592_v3  ;;  %v4588_v49 = vunpack.i.h.bf16 %v4586_v34 }
 0x874   :  { %1164 = vmatpush.msrb.mxu2 %v4593_v20  ;;  %1576 = vmatpush.msrb.mxu1 %v4587_v24 }
 0x875   :  { %4344 = vmatmul.msk.f32.vlgmr.msrb.gmra.mxu2 %vm529_vm2, %v1127_v7 }
 0x876   :  { %1577 = vmatpush.msrb.mxu1 %v4588_v49 }
 0x877   :  { %4374 = vmatmul.msk.f32.vlgmr.msrb.gmra.mxu1 %vm529_vm2, %v1540_v37 }
 0x87c   :  { %746 = vrot.lane.b32.xlu1 %v735_v18, %s7170_s24 }
 0x87f   :  { %1416 = vrot.lane.b32.xlu0 %v5496_v45, %s7172_s23 }
 0x887   :  { %744 = vrot.lane.b32.xlu0 %v732_v46, %s7170_s24 }
 0x88f   :  { %748 = vrot.lane.b32.xlu0 %v738_v38, %s7170_s24 }
 0x897   :  { %1029 = vrot.lane.b32.xlu0 %v5727_v47, %s7170_s24 }
 0x898   :  { %v1120_v26 = vpop.xlane.xlu2 %1119 }
 0x899   :  { %4762 = vrcp.f32 %v1120_v26 }
 0x89a   :  { %v1536_v4 = vpop.xlane.xlu1 %1535 }
 0x89c   :  { %v1533_v39 = vpop.xlane.xlu0 %1532 }
 0x89d   :  { %4764 = vrcp.f32 %v1533_v39 }
 0x89e   :  { %4766 = vrcp.f32 %v1536_v4 }
 0x89f   :  { %v4763_v53 = vpop.eup %4762 }
 0x8a0   :  { %v1399_v58 = vpop.xlane.xlu2 %1398  ;;  %v1128_v33 = vmul.f32 %v4763_v53, %v5769_v56 }
 0x8a2   :  { %4345 = vmatmul.msk.f32.gmra.mxu2 %vm529_vm2, %v1128_v33 }
 0x8a3   :  { %v4765_v45 = vpop.eup %4764 }
 0x8a4   :  { %v1541_v1 = vmul.f32 %v4765_v45, %v5775_v22  ;;  %v4767_v43 = vpop.eup %4766  ;;  %v1618_v22 = vld [vmem:[%s7149_s7 + $0x18] sm:$0xff] }
 0x8a5   :  { %v1542_v0 = vmul.f32 %v4767_v43, %v5771_v12  ;;  %1662 = vmatpush.msrb.mxu0 %v1618_v22 }
 0x8a6   :  { %4375 = vmatmul.msk.f32.gmra.mxu1 %vm529_vm2, %v1541_v1 }
 0x8a7   :  { %v1297_v21 = vpop.f32.mrf.mxu1  ;;  %1663 = vmatpush.msrb.mxu0 %v1617_v40 }
 0x8a8   :  { %1309 = vrot.lane.b32.xlu0 %v1297_v21, %s7170_s24  ;;  %v4596_v47 = vpop.permute.xlu2 %4595 }
 0x8a9   :  { %1664 = vmatpush.msrb.mxu0 %v1616_v30  ;;  %v4597_v55 = vunpack.i.l.bf16 %v4596_v47  ;;  %v4598_v2 = vunpack.i.h.bf16 %v4596_v47 }
 0x8ab   :  { %1665 = vmatpush.msrb.mxu0 %v1615_v27 }
 0x8ac   :  { %v884_v9 = vpop.f32.mrf.mxu2 }
 0x8ae   :  { %4376 = vmatmul.msk.f32.gmra.mxu1 %vm529_vm2, %v1542_v0 }
 0x8b0   :  { %v1028_v36 = vpop.permute.xlu2 %1027 }
 0x8b1   :  { %v1036_v56 = vsel %vm487_vm12, %v884_v9, %v1028_v36 }
 0x8b2   :  { %1039 = vst.msk [vmem:[#allocation2 + $0x11] sm:$0xff] %vm168_vm1, %v1036_v56  ;;  %v5895_v56 = vld [vmem:[%s7150_s8] ss:$0 sm:$0xff] }
 0x8b4   :  { %v887_v32 = vpop.f32.mrf.mxu2 }
 0x8b8   :  { %v1032_v6 = vpop.permute.xlu2 %1031 }
 0x8ce   :  { %v1402_v12 = vpop.xlane.xlu1 %1401 }
 0x8d6   :  { %v1405_v35 = vpop.xlane.xlu1 %1404 }
 0x8dc   :  { %v890_v5 = vpop.f32.mrf.mxu2 }
 0x8dd   :  { %v1038_v23 = vsel %vm487_vm12, %v890_v5, %v1032_v6  ;;  %v1300_v50 = vpop.f32.mrf.mxu1 }
 0x8de   :  { %1041 = vst.msk [vmem:[#allocation2 + $0x21] sm:$0x1] %vm758_vm15, %v1038_v23  ;;  %v1123_v59 = vpop.xlane.xlu0 %1122  ;;  %1311 = vrot.lane.b32.xlu2 %v1300_v50, %s7170_s24 }
 0x8df   :  { %4768 = vrcp.f32 %v1123_v59 }
 0x8e0   :  { %4770 = vrcp.f32 %v1399_v58 }
 0x8e1   :  { %4772 = vrcp.f32 %v1402_v12 }
 0x8e2   :  { %4774 = vrcp.f32 %v1405_v35 }
 0x8e5   :  { %v4769_v54 = vpop.eup %4768  ;;  %v1303_v41 = vpop.f32.mrf.mxu1 }
 0x8e6   :  { %1313 = vrot.lane.b32.xlu1 %v1303_v41, %s7170_s24  ;;  %v1129_v10 = vmul.f32 %v4769_v54, %v5814_v63  ;;  %v4771_v13 = vpop.eup %4770 }
 0x8e7   :  { %v1409_v63 = vmul.f32 %v4771_v13, %v5783_v8 }
 0x8e8   :  { %4346 = vmatmul.msk.f32.gmra.mxu2 %vm529_vm2, %v1129_v10 }
 0x8ee   :  { %v747_v29 = vpop.permute.xlu1 %746 }
 0x8ef   :  { %v754_v42 = vsel %vm487_vm12, %v5509_v14, %v747_v29  ;;  %v4773_v14 = vpop.eup %4772 }
 0x8f0   :  { %757 = vst.msk [vmem:[#allocation2 + $0x8] sm:$0xff] %vm168_vm1, %v754_v42  ;;  %v1410_v20 = vmul.f32 %v4773_v14, %v5800_v51  ;;  %v4775_v46 = vpop.eup %4774 }
 0x8f1   :  { %v1417_v61 = vpop.permute.xlu0 %1416  ;;  %v1411_v49 = vmul.f32 %v4775_v46, %v5806_v17 }
 0x8f2   :  { %4363 = vmatpush.msk.msra.mxu2 %vm581_vm6, %v1417_v61 }
 0x8f4   :  { %1445 = vmatpush.msra.mxu2 %v4597_v55  ;;  %v1579_v3 = vpop.f32.mrf.mxu1 }
 0x8f5   :  { %1591 = vrot.lane.b32.xlu0 %v1579_v3, %s7170_s24 }
 0x8f6   :  { %1446 = vmatpush.msra.mxu2 %v4598_v2 }
 0x8f7   :  { %4364 = vmatmul.msk.f32.vlgmr.msra.gmra.mxu2 %vm529_vm2, %v1409_v63  ;;  %v1607_v51 = vld [vmem:[#allocation2 + $0x8] sm:$0xff] }
 0x8f9   :  { %v745_v34 = vpop.permute.xlu0 %744 }
 0x8fa   :  { %v753_v62 = vsel %vm487_vm12, %v5493_v52, %v745_v34 }
 0x8fb   :  { %756 = vst.msk [vmem:[#allocation2] sm:$0xff] %vm168_vm1, %v753_v62 }
 0x8ff   :  { %4365 = vmatmul.msk.f32.gmra.mxu2 %vm529_vm2, %v1410_v20 }
 0x901   :  { %v749_v24 = vpop.permute.xlu0 %748 }
 0x902   :  { %v755_v8 = vsel %vm487_vm12, %v5518_v16, %v749_v24  ;;  %v1606_v7 = vld [vmem:[#allocation2] sm:$0xff]  ;;  %v1166_v16 = vpop.f32.mrf.mxu2 }
 0x903   :  { %759 = vst.msk [vmem:[#allocation2 + $0x10] sm:$0x1] %vm758_vm15, %v755_v8  ;;  %4377 = vmatmul.msk.f32.vlgmr.msrb.gmra.mxu0 %vm168_vm1, %v1606_v7 }
 0x907   :  { %4366 = vmatmul.msk.f32.gmra.mxu2 %vm529_vm2, %v1411_v49 }
 0x909   :  { %v1030_v52 = vpop.permute.xlu0 %1029 }
 0x90a   :  { %v1037_v37 = vsel %vm487_vm12, %v887_v32, %v1030_v52  ;;  %v1608_v18 = vld [vmem:[#allocation2 + $0x10] sm:$0xff] }
 0x90b   :  { %1040 = vst.msk [vmem:[#allocation2 + $0x19] sm:$0xff] %vm168_vm1, %v1037_v37  ;;  %4378 = vmatmul.msk.f32.gmra.mxu0 %vm168_vm1, %v1607_v51 }
 0x912   :  { %v1609_v26 = vld [vmem:[#allocation2 + $0x18] sm:$0xff] }
 0x913   :  { %4379 = vmatmul.msk.f32.gmra.mxu0 %vm168_vm1, %v1608_v18 }
 0x91a   :  { %v1310_v38 = vpop.permute.xlu0 %1309 }
 0x91b   :  { %v1318_v39 = vsel %vm487_vm12, %v1166_v16, %v1310_v38  ;;  %4380 = vmatmul.msk.f32.gmra.mxu0 %vm168_vm1, %v1609_v26 }
 0x91c   :  { %1321 = vst.msk [vmem:[#allocation2 + $0x22] sm:$0xff] %vm168_vm1, %v1318_v39 }
 0x923   :  { %v1582_v17 = vpop.f32.mrf.mxu1  ;;  %v1610_v53 = vld [vmem:[#allocation2 + $0x20] sm:$0xff] }
 0x924   :  { %1593 = vrot.lane.b32.xlu2 %v1582_v17, %s7170_s24  ;;  %4381 = vmatmul.msk.f32.gmra.mxu0 %vm168_vm1, %v1610_v53 }
 0x925   :  { %v1169_v58 = vpop.f32.mrf.mxu2 }
 0x92b   :  { %v1585_v4 = vpop.f32.mrf.mxu1 }
 0x92c   :  { %1595 = vrot.lane.b32.xlu1 %v1585_v4, %s7170_s24 }
 0x938   :  { %v1312_v33 = vpop.permute.xlu2 %1311 }
 0x939   :  { %v1319_v45 = vsel %vm487_vm12, %v1169_v58, %v1312_v33 }
 0x93a   :  { %1322 = vst.msk [vmem:[#allocation2 + $0x2a] sm:$0xff] %vm168_vm1, %v1319_v45 }
 0x941   :  { %v1611_v1 = vld [vmem:[#allocation2 + $0x28] sm:$0xff] }
 0x942   :  { %4382 = vmatmul.msk.f32.gmra.mxu0 %vm168_vm1, %v1611_v1 }
 0x958   :  { %v1314_v21 = vpop.permute.xlu1 %1313 }
 0x967   :  { %v1592_v0 = vpop.permute.xlu0 %1591 }
 0x96b   :  { %v1172_v47 = vpop.f32.mrf.mxu2 }
 0x96c   :  { %v1320_v43 = vsel %vm487_vm12, %v1172_v47, %v1314_v21 }
 0x96d   :  { %1323 = vst.msk [vmem:[#allocation2 + $0x32] sm:$0x1] %vm758_vm15, %v1320_v43 }
 0x97a   :  { %v1448_v9 = vpop.f32.mrf.mxu2 }
 0x97b   :  { %v1600_v36 = vsel %vm487_vm12, %v1448_v9, %v1592_v0 }
 0x97c   :  { %1603 = vst.msk [vmem:[#allocation2 + $0x33] sm:$0xff] %vm168_vm1, %v1600_v36 }
 0x97e   :  { %v1594_v22 = vpop.permute.xlu2 %1593 }
 0x980   :  { %v1667_v32 = vpop.f32.mrf.mxu0 }
 0x981   :  { %v1668_v6 = vadd.f32 %v5895_v56, %v1667_v32 }
 0x982   :  { %v1451_v40 = vpop.f32.mrf.mxu2 }
 0x983   :  { %v5899_v12 = vadd.f32 %v1668_v6, %v5116_v11  ;;  %v1601_v5 = vsel %vm487_vm12, %v1451_v40, %v1594_v22  ;;  %v1612_v23 = vld [vmem:[#allocation2 + $0x30] sm:$0xff] }
 0x984   :  { %1604 = vst.msk [vmem:[#allocation2 + $0x3b] sm:$0xff] %vm168_vm1, %v1601_v5  ;;  %4383 = vmatmul.msk.f32.gmra.mxu0 %vm168_vm1, %v1612_v23 }
 0x985   :  { %v1705_v50 = vsel %vm168_vm1, %v5899_v12, 0.0 }
 0x986   :  { %1706 = vadd.xlane.f32.xlu0 %v1705_v50 }
 0x988   :  { %v1670_v59 = vpop.f32.mrf.mxu0 }
 0x989   :  { %v1671_v30 = vadd.f32 %v5895_v56, %v1670_v59 }
 0x98a   :  { %v1454_v55 = vpop.f32.mrf.mxu2 }
 0x98b   :  { %v5908_v27 = vadd.f32 %v1671_v30, %v5123_v15  ;;  %v1613_v54 = vld [vmem:[#allocation2 + $0x38] sm:$0xff] }
 0x98c   :  { %4384 = vmatmul.msk.f32.gmra.mxu0 %vm168_vm1, %v1613_v54 }
 0x98d   :  { %v1708_v11 = vsel %vm168_vm1, %v5908_v27, 0.0 }
 0x98e   :  { %1709 = vadd.xlane.f32.xlu2 %v1708_v11 }
 0x990   :  { %v1673_v41 = vpop.f32.mrf.mxu0 }
 0x991   :  { %v1674_v35 = vadd.f32 %v5895_v56, %v1673_v41 }
 0x993   :  { %v5915_v10 = vadd.f32 %v1674_v35, %v5130_v19 }
 0x995   :  { %v1711_v29 = vsel %vm168_vm1, %v5915_v10, 0.0 }
 0x996   :  { %1712 = vadd.xlane.f32.xlu1 %v1711_v29 }
 0x998   :  { %v1676_v42 = vpop.f32.mrf.mxu0 }
 0x999   :  { %v1677_v15 = vadd.f32 %v5895_v56, %v1676_v42  ;;  %v1928_v42 = vld [vmem:[%s7153_s11 + $0x8] sm:$0xff] }
 0x99b   :  { %v5921_v61 = vadd.f32 %v1677_v15, %v5177_v60  ;;  %v1927_v15 = vld [vmem:[%s7153_s11] sm:$0xff] }
 0x99d   :  { %v1714_v13 = vsel %vm168_vm1, %v5921_v61, 0.0 }
 0x99e   :  { %v1596_v2 = vpop.permute.xlu1 %1595  ;;  %1715 = vadd.xlane.f32.xlu0 %v1714_v13 }
 0x99f   :  { %v1602_v3 = vsel %vm487_vm12, %v1454_v55, %v1596_v2 }
 0x9a0   :  { %1605 = vst.msk [vmem:[#allocation2 + $0x43] sm:$0x1] %vm758_vm15, %v1602_v3 }
 0x9a1   :  { %v1679_v19 = vpop.f32.mrf.mxu0 }
 0x9a2   :  { %v1680_v63 = vadd.f32 %v5895_v56, %v1679_v19 }
 0x9a4   :  { %v5929_v34 = vadd.f32 %v1680_v63, %v5230_v48 }
 0x9a6   :  { %v1717_v60 = vsel %vm168_vm1, %v5929_v34, 0.0 }
 0x9a7   :  { %1718 = vadd.xlane.f32.xlu2 %v1717_v60  ;;  %v1614_v14 = vld [vmem:[#allocation2 + $0x40] sm:$0xf] }
 0x9a8   :  { %4385 = vmatmul.msk.f32.gmra.mxu0 %vm168_vm1, %v1614_v14 }
 0x9bf   :  { %v1682_v62 = vpop.f32.mrf.mxu0 }
 0x9c0   :  { %v1683_v20 = vadd.f32 %v5895_v56, %v1682_v62 }
 0x9c2   :  { %v5936_v24 = vadd.f32 %v1683_v20, %v5282_v31 }
 0x9c4   :  { %v1720_v46 = vsel %vm168_vm1, %v5936_v24, 0.0 }
 0x9c5   :  { %1721 = vadd.xlane.f32.xlu0 %v1720_v46 }
 0x9f9   :  { %v1707_v8 = vpop.xlane.xlu0 %1706 }
 0x9fa   :  { %v1732_v48 = vmul.f32 %v1707_v8, %v5138_v28 }
 0x9fc   :  { %v5942_v7 = vsub.f32 %v5899_v12, %v1732_v48 }
 0x9fe   :  { %v1750_v49 = vmul.f32 %v5942_v7, %v5942_v7 }
 0xa00   :  { %v1759_v52 = vsel %vm168_vm1, %v1750_v49, 0.0 }
 0xa01   :  { %1760 = vadd.xlane.f32.xlu1 %v1759_v52  ;;  %v1710_v37 = vpop.xlane.xlu2 %1709  ;;  %v1685_v51 = vpop.f32.mrf.mxu0 }
 0xa02   :  { %v1733_v31 = vmul.f32 %v1710_v37, %v5138_v28  ;;  %v1686_v18 = vadd.f32 %v5895_v56, %v1685_v51 }
 0xa04   :  { %v5950_v16 = vsub.f32 %v5908_v27, %v1733_v31  ;;  %v5953_v38 = vadd.f32 %v1686_v18, %v5293_v44 }
 0xa06   :  { %v1751_v26 = vmul.f32 %v5950_v16, %v5950_v16  ;;  %v1723_v17 = vsel %vm168_vm1, %v5953_v38, 0.0 }
 0xa08   :  { %v1762_v39 = vsel %vm168_vm1, %v1751_v26, 0.0 }
 0xa09   :  { %v1713_v53 = vpop.xlane.xlu1 %1712  ;;  %1763 = vadd.xlane.f32.xlu2 %v1762_v39  ;;  %v1688_v4 = vpop.f32.mrf.mxu0  ;;  %1724 = vadd.xlane.f32.xlu1 %v1723_v17 }
 0xa0a   :  { %v1734_v58 = vmul.f32 %v1713_v53, %v5138_v28  ;;  %v1689_v33 = vadd.f32 %v5895_v56, %v1688_v4 }
 0xa0c   :  { %v5963_v45 = vsub.f32 %v5915_v10, %v1734_v58  ;;  %v5966_v44 = vadd.f32 %v1689_v33, %v5304_v57  ;;  %v6029_v33 = vld [vmem:[%s7151_s9] ss:$0 sm:$0xff] }
 0xa0e   :  { %v1752_v1 = vmul.f32 %v5963_v45, %v5963_v45  ;;  %v1726_v47 = vsel %vm168_vm1, %v5966_v44, 0.0 }
 0xa10   :  { %v1765_v21 = vsel %vm168_vm1, %v1752_v1, 0.0 }
 0xa11   :  { %v1716_v43 = vpop.xlane.xlu0 %1715  ;;  %1766 = vadd.xlane.f32.xlu0 %v1765_v21  ;;  %1727 = vadd.xlane.f32.xlu1 %v1726_v47 }
 0xa12   :  { %v1735_v0 = vmul.f32 %v1716_v43, %v5138_v28 }
 0xa14   :  { %v5975_v9 = vsub.f32 %v5921_v61, %v1735_v0 }
 0xa16   :  { %v1753_v57 = vmul.f32 %v5975_v9, %v5975_v9 }
 0xa18   :  { %v1768_v36 = vsel %vm168_vm1, %v1753_v57, 0.0  ;;  %v6038_v57 = vld [vmem:[%s7152_s10] ss:$0 sm:$0xff] }
 0xa19   :  { %1769 = vadd.xlane.f32.xlu2 %v1768_v36 }
 0xa1a   :  { %v1719_v32 = vpop.xlane.xlu2 %1718 }
 0xa1b   :  { %v1736_v6 = vmul.f32 %v1719_v32, %v5138_v28 }
 0xa1d   :  { %v5982_v22 = vsub.f32 %v5929_v34, %v1736_v6 }
 0xa1f   :  { %v1754_v40 = vmul.f32 %v5982_v22, %v5982_v22 }
 0xa21   :  { %v1771_v5 = vsel %vm168_vm1, %v1754_v40, 0.0 }
 0xa22   :  { %1772 = vadd.xlane.f32.xlu0 %v1771_v5 }
 0xa25   :  { %v1691_v23 = vpop.f32.mrf.mxu0 }
 0xa26   :  { %v1692_v50 = vadd.f32 %v5895_v56, %v1691_v23  ;;  %v1929_v56 = vld [vmem:[%s7153_s11 + $0x10] sm:$0xff] }
 0xa28   :  { %v5989_v59 = vadd.f32 %v1692_v50, %v5342_v25  ;;  %v1930_v25 = vld [vmem:[%s7153_s11 + $0x18] sm:$0xff] }
 0xa29   :  { %1974 = vmatpush.msrb.mxu2 %v1930_v25 }
 0xa2a   :  { %v1729_v30 = vsel %vm193_vm8, %v5989_v59, 0.0 }
 0xa2b   :  { %1730 = vadd.xlane.f32.xlu2 %v1729_v30  ;;  %1975 = vmatpush.msrb.mxu2 %v1929_v56 }
 0xa2d   :  { %1976 = vmatpush.msrb.mxu2 %v1928_v42 }
 0xa2f   :  { %1977 = vmatpush.msrb.mxu2 %v1927_v15 }
 0xa38   :  { %v1722_v54 = vpop.xlane.xlu0 %1721 }
 0xa39   :  { %v1737_v11 = vmul.f32 %v1722_v54, %v5138_v28 }
 0xa3b   :  { %v5995_v41 = vsub.f32 %v5936_v24, %v1737_v11 }
 0xa3d   :  { %v1755_v35 = vmul.f32 %v5995_v41, %v5995_v41 }
 0xa3f   :  { %v1774_v29 = vsel %vm168_vm1, %v1755_v35, 0.0 }
 0xa40   :  { %1775 = vadd.xlane.f32.xlu1 %v1774_v29 }
 0xa74   :  { %v1761_v13 = vpop.xlane.xlu1 %1760 }
 0xa75   :  { %v1786_v55 = vmul.f32 %v1761_v13, %v5138_v28 }
 0xa77   :  { %v1795_v2 = vadd.f32 1e-12, %v1786_v55 }
 0xa79   :  { %4776 = vrsqrt.f32 %v1795_v2  ;;  %vm1810_vm5 = vweird.f32 %v1795_v2 }
 0xa7c   :  { %v1764_v3 = vpop.xlane.xlu2 %1763  ;;  %v1725_v19 = vpop.xlane.xlu1 %1724 }
 0xa7d   :  { %v1787_v63 = vmul.f32 %v1764_v3, %v5138_v28  ;;  %v1738_v60 = vmul.f32 %v1725_v19, %v5138_v28 }
 0xa7f   :  { %v4777_v14 = vpop.eup %4776  ;;  %v1796_v62 = vadd.f32 1e-12, %v1787_v63  ;;  %v6016_v20 = vsub.f32 %v5953_v38, %v1738_v60 }
 0xa80   :  { %v1805_v46 = vmul.f32 %v4777_v14, %v1795_v2  ;;  %vm1811_vm3 = vweird.f32 %v4777_v14 }
 0xa81   :  { %4778 = vrsqrt.f32 %v1796_v62  ;;  %v1756_v8 = vmul.f32 %v6016_v20, %v6016_v20  ;;  %vm1812_vm9 = vmor %vm1810_vm5, %vm1811_vm3  ;;  %vm1820_vm11 = vweird.f32 %v1796_v62 }
 0xa82   :  { %v1806_v48 = vmul.f32 %v4777_v14, %v1805_v46 }
 0xa83   :  { %v1777_v49 = vsel %vm168_vm1, %v1756_v8, 0.0 }
 0xa84   :  { %v1807_v52 = vmul.f32 0.5, %v1806_v48  ;;  %v1767_v37 = vpop.xlane.xlu0 %1766  ;;  %1778 = vadd.xlane.f32.xlu0 %v1777_v49  ;;  %v1728_v51 = vpop.xlane.xlu1 %1727 }
 0xa85   :  { %v1788_v31 = vmul.f32 %v1767_v37, %v5138_v28  ;;  %v1739_v18 = vmul.f32 %v1728_v51, %v5138_v28 }
 0xa86   :  { %v1808_v26 = vsub.f32 1.5, %v1807_v52 }
 0xa87   :  { %v4779_v39 = vpop.eup %4778  ;;  %v1797_v17 = vadd.f32 1e-12, %v1788_v31  ;;  %v6024_v53 = vsub.f32 %v5966_v44, %v1739_v18 }
 0xa88   :  { %v1809_v4 = vmul.f32 %v4777_v14, %v1808_v26  ;;  %v1815_v58 = vmul.f32 %v4779_v39, %v1796_v62  ;;  %vm1821_vm10 = vweird.f32 %v4779_v39 }
 0xa89   :  { %4780 = vrsqrt.f32 %v1797_v17  ;;  %v1757_v1 = vmul.f32 %v6024_v53, %v6024_v53  ;;  %vm1822_vm13 = vmor %vm1820_vm11, %vm1821_vm10  ;;  %vm1830_vm5 = vweird.f32 %v1797_v17 }
 0xa8a   :  { %v1813_v21 = vsel %vm1812_vm9, %v4777_v14, %v1809_v4  ;;  %v1816_v47 = vmul.f32 %v4779_v39, %v1815_v58 }
 0xa8b   :  { %v1894_v43 = vmul.f32 %v1813_v21, %v5942_v7  ;;  %v1780_v0 = vsel %vm168_vm1, %v1757_v1, 0.0 }
 0xa8c   :  { %v1817_v36 = vmul.f32 0.5, %v1816_v47  ;;  %v1770_v32 = vpop.xlane.xlu2 %1769  ;;  %1781 = vadd.xlane.f32.xlu2 %v1780_v0 }
 0xa8d   :  { %v1906_v6 = vmul.f32 %v6029_v33, %v1894_v43  ;;  %v1789_v40 = vmul.f32 %v1770_v32, %v5138_v28 }
 0xa8e   :  { %v1818_v5 = vsub.f32 1.5, %v1817_v36 }
 0xa8f   :  { %v4781_v23 = vpop.eup %4780  ;;  %v1798_v50 = vadd.f32 1e-12, %v1789_v40  ;;  %v1918_v7 = vadd.f32 %v6038_v57, %v1906_v6 }
 0xa90   :  { %v1819_v30 = vmul.f32 %v4779_v39, %v1818_v5  ;;  %v1825_v54 = vmul.f32 %v4781_v23, %v1797_v17  ;;  %vm1831_vm3 = vweird.f32 %v4781_v23 }
 0xa91   :  { %4782 = vrsqrt.f32 %v1798_v50  ;;  %4386 = vmatmul.msk.f32.vlgmr.msrb.gmra.mxu2 %vm168_vm1, %v1918_v7  ;;  %vm1832_vm9 = vmor %vm1830_vm5, %vm1831_vm3  ;;  %vm1840_vm11 = vweird.f32 %v1798_v50 }
 0xa92   :  { %v1826_v11 = vmul.f32 %v4781_v23, %v1825_v54  ;;  %v1823_v35 = vsel %vm1822_vm13, %v4779_v39, %v1819_v30 }
 0xa93   :  { %v1895_v29 = vmul.f32 %v1823_v35, %v5950_v16 }
 0xa94   :  { %v1827_v25 = vmul.f32 0.5, %v1826_v11 }
 0xa95   :  { %v1773_v56 = vpop.xlane.xlu0 %1772  ;;  %v1907_v42 = vmul.f32 %v6029_v33, %v1895_v29 }
 0xa96   :  { %v1828_v15 = vsub.f32 1.5, %v1827_v25  ;;  %v1790_v13 = vmul.f32 %v1773_v56, %v5138_v28 }
 0xa97   :  { %v4783_v55 = vpop.eup %4782  ;;  %v1919_v2 = vadd.f32 %v6038_v57, %v1907_v42 }
 0xa98   :  { %v1829_v3 = vmul.f32 %v4781_v23, %v1828_v15  ;;  %v1835_v19 = vmul.f32 %v4783_v55, %v1798_v50  ;;  %v1799_v63 = vadd.f32 1e-12, %v1790_v13  ;;  %vm1841_vm10 = vweird.f32 %v4783_v55 }
 0xa99   :  { %4387 = vmatmul.msk.f32.gmra.mxu2 %vm168_vm1, %v1919_v2  ;;  %vm1842_vm13 = vmor %vm1840_vm11, %vm1841_vm10 }
 0xa9a   :  { %v1836_v60 = vmul.f32 %v4783_v55, %v1835_v19  ;;  %4784 = vrsqrt.f32 %v1799_v63  ;;  %v1833_v16 = vsel %vm1832_vm9, %v4781_v23, %v1829_v3  ;;  %vm1850_vm5 = vweird.f32 %v1799_v63 }
 0xa9b   :  { %v1896_v14 = vmul.f32 %v1833_v16, %v5963_v45 }
 0xa9c   :  { %v1837_v62 = vmul.f32 0.5, %v1836_v60  ;;  %v2092_v60 = vld [vmem:[%s7155_s13 + $0x28] sm:$0xff] }
 0xa9d   :  { %v1908_v46 = vmul.f32 %v6029_v33, %v1896_v14  ;;  %v2091_v14 = vld [vmem:[%s7155_s13 + $0x20] sm:$0xff] }
 0xa9e   :  { %v1838_v8 = vsub.f32 1.5, %v1837_v62  ;;  %v1731_v48 = vpop.xlane.xlu2 %1730 }
 0xa9f   :  { %v1740_v49 = vmul.f32 %v1731_v48, %v5138_v28  ;;  %v1920_v52 = vadd.f32 %v6038_v57, %v1908_v46  ;;  %v2090_v46 = vld [vmem:[%s7155_s13 + $0x18] sm:$0xff]  ;;  %v2089_v48 = vld [vmem:[%s7155_s13 + $0x10] sm:$0xff] }
 0xaa0   :  { %v4785_v37 = vpop.eup %4784  ;;  %v1839_v51 = vmul.f32 %v4783_v55, %v1838_v8 }
 0xaa1   :  { %v1845_v31 = vmul.f32 %v4785_v37, %v1799_v63  ;;  %v6054_v18 = vsub.f32 %v5989_v59, %v1740_v49  ;;  %4388 = vmatmul.msk.f32.gmra.mxu2 %vm168_vm1, %v1920_v52  ;;  %vm1851_vm3 = vweird.f32 %v4785_v37 }
 0xaa2   :  { %v1843_v45 = vsel %vm1842_vm13, %v4783_v55, %v1839_v51  ;;  %vm1852_vm9 = vmor %vm1850_vm5, %vm1851_vm3  ;;  %v2094_v55 = vld [vmem:[%s7155_s13 + $0x38] sm:$0xff]  ;;  %v2088_v51 = vld [vmem:[%s7155_s13 + $0x8] sm:$0xff] }
 0xaa3   :  { %v1846_v26 = vmul.f32 %v4785_v37, %v1845_v31  ;;  %v1758_v39 = vmul.f32 %v6054_v18, %v6054_v18  ;;  %v1897_v17 = vmul.f32 %v1843_v45, %v5975_v9  ;;  %2135 = vmatpush.msrb.mxu3 %v2094_v55 }
 0xaa5   :  { %v1847_v4 = vmul.f32 0.5, %v1846_v26  ;;  %v1783_v58 = vsel %vm193_vm8, %v1758_v39, 0.0  ;;  %v1909_v1 = vmul.f32 %v6029_v33, %v1897_v17  ;;  %v2087_v26 = vld [vmem:[%s7155_s13] sm:$0xff] }
 0xaa6   :  { %1784 = vadd.xlane.f32.xlu1 %v1783_v58 }
 0xaa7   :  { %v1848_v21 = vsub.f32 1.5, %v1847_v4  ;;  %v1921_v47 = vadd.f32 %v6038_v57, %v1909_v1  ;;  %v6104_v1 = vld [vmem:[%s7154_s12] ss:$0 sm:$0xff] }
 0xaa9   :  { %v1849_v43 = vmul.f32 %v4785_v37, %v1848_v21  ;;  %4389 = vmatmul.msk.f32.gmra.mxu2 %vm168_vm1, %v1921_v47 }
 0xaab   :  { %v1853_v0 = vsel %vm1852_vm9, %v4785_v37, %v1849_v43 }
 0xaac   :  { %v1898_v36 = vmul.f32 %v1853_v0, %v5982_v22 }
 0xaae   :  { %v1910_v9 = vmul.f32 %v6029_v33, %v1898_v36 }
 0xab0   :  { %v1922_v32 = vadd.f32 %v6038_v57, %v1910_v9 }
 0xab2   :  { %4390 = vmatmul.msk.f32.gmra.mxu2 %vm168_vm1, %v1922_v32 }
 0xab3   :  { %v1776_v6 = vpop.xlane.xlu1 %1775 }
 0xab4   :  { %v1791_v40 = vmul.f32 %v1776_v6, %v5138_v28 }
 0xab6   :  { %v1800_v5 = vadd.f32 1e-12, %v1791_v40 }
 0xab8   :  { %4786 = vrsqrt.f32 %v1800_v5  ;;  %vm1860_vm11 = vweird.f32 %v1800_v5 }
 0xabe   :  { %v4787_v23 = vpop.eup %4786 }
 0xabf   :  { %v1855_v50 = vmul.f32 %v4787_v23, %v1800_v5  ;;  %vm1861_vm10 = vweird.f32 %v4787_v23 }
 0xac0   :  { %vm1862_vm13 = vmor %vm1860_vm11, %vm1861_vm10 }
 0xac1   :  { %v1856_v7 = vmul.f32 %v4787_v23, %v1855_v50 }
 0xac3   :  { %v1857_v30 = vmul.f32 0.5, %v1856_v7 }
 0xac5   :  { %v1858_v54 = vsub.f32 1.5, %v1857_v30 }
 0xac7   :  { %v1859_v11 = vmul.f32 %v4787_v23, %v1858_v54 }
 0xac9   :  { %v1863_v22 = vsel %vm1862_vm13, %v4787_v23, %v1859_v11 }
 0xaca   :  { %v1899_v35 = vmul.f32 %v1863_v22, %v5995_v41  ;;  %v2093_v41 = vld [vmem:[%s7155_s13 + $0x30] sm:$0xff] }
 0xacb   :  { %2136 = vmatpush.msrb.mxu3 %v2093_v41 }
 0xacc   :  { %v1911_v29 = vmul.f32 %v6029_v33, %v1899_v35 }
 0xacd   :  { %2137 = vmatpush.msrb.mxu3 %v2092_v60 }
 0xace   :  { %v1923_v25 = vadd.f32 %v6038_v57, %v1911_v29 }
 0xacf   :  { %2138 = vmatpush.msrb.mxu3 %v2091_v14 }
 0xad0   :  { %4391 = vmatmul.msk.f32.gmra.mxu2 %vm168_vm1, %v1923_v25 }
 0xad1   :  { %2139 = vmatpush.msrb.mxu3 %v2090_v46 }
 0xad3   :  { %2140 = vmatpush.msrb.mxu3 %v2089_v48 }
 0xad5   :  { %2141 = vmatpush.msrb.mxu3 %v2088_v51 }
 0xad7   :  { %2142 = vmatpush.msrb.mxu3 %v2087_v26 }
 0xaf7   :  { %v1779_v56 = vpop.xlane.xlu0 %1778 }
 0xaf8   :  { %v1792_v42 = vmul.f32 %v1779_v56, %v5138_v28 }
 0xafa   :  { %v1801_v15 = vadd.f32 1e-12, %v1792_v42 }
 0xafc   :  { %4788 = vrsqrt.f32 %v1801_v15  ;;  %vm1870_vm5 = vweird.f32 %v1801_v15 }
 0xaff   :  { %v1782_v13 = vpop.xlane.xlu2 %1781 }
 0xb00   :  { %v1793_v2 = vmul.f32 %v1782_v13, %v5138_v28 }
 0xb02   :  { %v4789_v3 = vpop.eup %4788  ;;  %v1802_v19 = vadd.f32 1e-12, %v1793_v2 }
 0xb03   :  { %v1865_v63 = vmul.f32 %v4789_v3, %v1801_v15  ;;  %vm1871_vm3 = vweird.f32 %v4789_v3 }
 0xb04   :  { %4790 = vrsqrt.f32 %v1802_v19  ;;  %vm1872_vm9 = vmor %vm1870_vm5, %vm1871_vm3  ;;  %vm1880_vm11 = vweird.f32 %v1802_v19  ;;  %vm7174_vm5 = vcmask 523264  }
 0xb05   :  { %v1866_v16 = vmul.f32 %v4789_v3, %v1865_v63 }
 0xb07   :  { %v1867_v62 = vmul.f32 0.5, %v1866_v16 }
 0xb09   :  { %v1868_v8 = vsub.f32 1.5, %v1867_v62 }
 0xb0a   :  { %v4791_v49 = vpop.eup %4790 }
 0xb0b   :  { %v1869_v52 = vmul.f32 %v4789_v3, %v1868_v8  ;;  %v1875_v37 = vmul.f32 %v4791_v49, %v1802_v19  ;;  %vm1881_vm10 = vweird.f32 %v4791_v49 }
 0xb0c   :  { %vm1882_vm13 = vmor %vm1880_vm11, %vm1881_vm10 }
 0xb0d   :  { %v1876_v31 = vmul.f32 %v4791_v49, %v1875_v37  ;;  %v1873_v45 = vsel %vm1872_vm9, %v4789_v3, %v1869_v52 }
 0xb0e   :  { %v1900_v39 = vmul.f32 %v1873_v45, %v6016_v20 }
 0xb0f   :  { %v1877_v17 = vmul.f32 0.5, %v1876_v31 }
 0xb10   :  { %v1912_v4 = vmul.f32 %v6029_v33, %v1900_v39 }
 0xb11   :  { %v1878_v58 = vsub.f32 1.5, %v1877_v17 }
 0xb12   :  { %v1924_v21 = vadd.f32 %v6038_v57, %v1912_v4 }
 0xb13   :  { %v1879_v47 = vmul.f32 %v4791_v49, %v1878_v58 }
 0xb14   :  { %v1979_v43 = vpop.f32.mrf.mxu2  ;;  %4392 = vmatmul.msk.f32.gmra.mxu2 %vm168_vm1, %v1924_v21 }
 0xb15   :  { %v1883_v20 = vsel %vm1882_vm13, %v4791_v49, %v1879_v47  ;;  %v1980_v0 = vadd.f32 %v6104_v1, %v1979_v43 }
 0xb16   :  { %v1901_v36 = vmul.f32 %v1883_v20, %v6024_v53 }
 0xb17   :  { %v2006_v9 = vmul.f32 %v1980_v0, %v1980_v0 }
 0xb18   :  { %v1913_v32 = vmul.f32 %v6029_v33, %v1901_v36 }
 0xb19   :  { %v2015_v6 = vmul.f32 %v2006_v9, %v1980_v0  ;;  %v1785_v40 = vpop.xlane.xlu1 %1784 }
 0xb1a   :  { %v1794_v5 = vmul.f32 %v1785_v40, %v5138_v28  ;;  %v1925_v23 = vadd.f32 %v6038_v57, %v1913_v32 }
 0xb1b   :  { %v2024_v50 = vmul.f32 0.044715, %v2015_v6 }
 0xb1c   :  { %v1803_v7 = vadd.f32 1e-12, %v1794_v5  ;;  %v1982_v30 = vpop.f32.mrf.mxu2  ;;  %4393 = vmatmul.msk.f32.gmra.mxu2 %vm168_vm1, %v1925_v23 }
 0xb1d   :  { %v2033_v54 = vadd.f32 %v2024_v50, %v1980_v0  ;;  %v1983_v11 = vadd.f32 %v6104_v1, %v1982_v30 }
 0xb1e   :  { %4792 = vrsqrt.f32 %v1803_v7  ;;  %vm1890_vm9 = vweird.f32 %v1803_v7 }
 0xb1f   :  { %v2042_v22 = vmul.f32 0.7978846, %v2033_v54  ;;  %v2007_v53 = vmul.f32 %v1983_v11, %v1983_v11 }
 0xb21   :  { %4794 = vtanh.f32 %v2042_v22  ;;  %v2016_v35 = vmul.f32 %v2007_v53, %v1983_v11 }
 0xb23   :  { %v2025_v29 = vmul.f32 0.044715, %v2016_v35 }
 0xb24   :  { %v4793_v25 = vpop.eup %4792  ;;  %v1985_v56 = vpop.f32.mrf.mxu2 }
 0xb25   :  { %v1885_v42 = vmul.f32 %v4793_v25, %v1803_v7  ;;  %v1986_v15 = vadd.f32 %v6104_v1, %v1985_v56  ;;  %v2034_v13 = vadd.f32 %v2025_v29, %v1983_v11  ;;  %vm1891_vm3 = vweird.f32 %v4793_v25 }
 0xb26   :  { %vm1892_vm10 = vmor %vm1890_vm9, %vm1891_vm3 }
 0xb27   :  { %v4795_v55 = vpop.eup %4794  ;;  %v1886_v2 = vmul.f32 %v4793_v25, %v1885_v42  ;;  %v2008_v41 = vmul.f32 %v1986_v15, %v1986_v15  ;;  %v2043_v3 = vmul.f32 0.7978846, %v2034_v13 }
 0xb28   :  { %v2060_v19 = vadd.f32 1.0, %v4795_v55 }
 0xb29   :  { %v1887_v63 = vmul.f32 0.5, %v1886_v2  ;;  %v2017_v60 = vmul.f32 %v2008_v41, %v1986_v15  ;;  %4796 = vtanh.f32 %v2043_v3 }
 0xb2a   :  { %v2069_v16 = vmul.f32 0.5, %v2060_v19 }
 0xb2b   :  { %v1888_v14 = vsub.f32 1.5, %v1887_v63  ;;  %v2026_v62 = vmul.f32 0.044715, %v2017_v60 }
 0xb2c   :  { %v2078_v46 = vmul.f32 %v2069_v16, %v1980_v0  ;;  %v1988_v8 = vpop.f32.mrf.mxu2 }
 0xb2d   :  { %v1889_v48 = vmul.f32 %v4793_v25, %v1888_v14  ;;  %v1989_v49 = vadd.f32 %v6104_v1, %v1988_v8  ;;  %v2035_v52 = vadd.f32 %v2026_v62, %v1986_v15 }
 0xb2e   :  { %4395 = vmatmul.msk.f32.vlgmr.msrb.gmra.mxu3 %vm7174_vm5, %v2078_v46 }
 0xb2f   :  { %v4797_v37 = vpop.eup %4796  ;;  %v2009_v51 = vmul.f32 %v1989_v49, %v1989_v49  ;;  %v1893_v31 = vsel %vm1892_vm10, %v4793_v25, %v1889_v48  ;;  %v2044_v45 = vmul.f32 0.7978846, %v2035_v52 }
 0xb30   :  { %v1902_v26 = vmul.f32 %v1893_v31, %v6054_v18  ;;  %v2061_v39 = vadd.f32 1.0, %v4797_v37 }
 0xb31   :  { %v2018_v17 = vmul.f32 %v2009_v51, %v1989_v49  ;;  %4798 = vtanh.f32 %v2044_v45 }
 0xb32   :  { %v1914_v4 = vmul.f32 %v6029_v33, %v1902_v26  ;;  %v2070_v58 = vmul.f32 0.5, %v2061_v39 }
 0xb33   :  { %v2027_v21 = vmul.f32 0.044715, %v2018_v17 }
 0xb34   :  { %v1926_v47 = vadd.f32 %v6038_v57, %v1914_v4  ;;  %v2079_v43 = vmul.f32 %v2070_v58, %v1983_v11  ;;  %v6134_v58 = vld [vmem:[%s7156_s14] ss:$0 sm:$0xff] }
 0xb35   :  { %v1991_v20 = vpop.f32.mrf.mxu2  ;;  %v2036_v0 = vadd.f32 %v2027_v21, %v1989_v49 }
 0xb36   :  { %v1992_v36 = vadd.f32 %v6104_v1, %v1991_v20  ;;  %4394 = vmatmul.msk.f32.gmra.mxu2 %vm168_vm1, %v1926_v47  ;;  %4396 = vmatmul.msk.f32.gmra.mxu3 %vm7174_vm5, %v2079_v43 }
 0xb37   :  { %v4799_v9 = vpop.eup %4798  ;;  %v2045_v18 = vmul.f32 0.7978846, %v2036_v0 }
 0xb38   :  { %v2010_v32 = vmul.f32 %v1992_v36, %v1992_v36  ;;  %v2062_v6 = vadd.f32 1.0, %v4799_v9 }
 0xb39   :  { %4800 = vtanh.f32 %v2045_v18 }
 0xb3a   :  { %v2019_v40 = vmul.f32 %v2010_v32, %v1992_v36  ;;  %v2071_v33 = vmul.f32 0.5, %v2062_v6 }
 0xb3c   :  { %v2028_v5 = vmul.f32 0.044715, %v2019_v40  ;;  %v2080_v23 = vmul.f32 %v2071_v33, %v1986_v15 }
 0xb3e   :  { %4397 = vmatmul.msk.f32.gmra.mxu3 %vm7174_vm5, %v2080_v23  ;;  %v2037_v57 = vadd.f32 %v2028_v5, %v1992_v36 }
 0xb3f   :  { %v4801_v50 = vpop.eup %4800 }
 0xb40   :  { %v2063_v7 = vadd.f32 1.0, %v4801_v50  ;;  %v2046_v30 = vmul.f32 0.7978846, %v2037_v57 }
 0xb42   :  { %v2072_v54 = vmul.f32 0.5, %v2063_v7  ;;  %4802 = vtanh.f32 %v2046_v30 }
 0xb44   :  { %v2081_v11 = vmul.f32 %v2072_v54, %v1989_v49 }
 0xb46   :  { %4398 = vmatmul.msk.f32.gmra.mxu3 %vm7174_vm5, %v2081_v11 }
 0xb48   :  { %v4803_v22 = vpop.eup %4802 }
 0xb49   :  { %v2064_v53 = vadd.f32 1.0, %v4803_v22 }
 0xb4b   :  { %v2073_v35 = vmul.f32 0.5, %v2064_v53 }
 0xb4d   :  { %v2082_v29 = vmul.f32 %v2073_v35, %v1992_v36 }
 0xb4f   :  { %4399 = vmatmul.msk.f32.gmra.mxu3 %vm7174_vm5, %v2082_v29 }
 0xb53   :  { %v1994_v25 = vpop.f32.mrf.mxu2 }
 0xb54   :  { %v1995_v56 = vadd.f32 %v6104_v1, %v1994_v25 }
 0xb56   :  { %v2011_v42 = vmul.f32 %v1995_v56, %v1995_v56 }
 0xb58   :  { %v2020_v15 = vmul.f32 %v2011_v42, %v1995_v56 }
 0xb5a   :  { %v2029_v13 = vmul.f32 0.044715, %v2020_v15 }
 0xb5c   :  { %v2038_v55 = vadd.f32 %v2029_v13, %v1995_v56 }
 0xb5e   :  { %v2047_v2 = vmul.f32 0.7978846, %v2038_v55 }
 0xb60   :  { %4804 = vtanh.f32 %v2047_v2 }
 0xb66   :  { %v4805_v41 = vpop.eup %4804 }
 0xb67   :  { %v2065_v3 = vadd.f32 1.0, %v4805_v41 }
 0xb69   :  { %v2074_v19 = vmul.f32 0.5, %v2065_v3 }
 0xb6b   :  { %v2083_v63 = vmul.f32 %v2074_v19, %v1995_v56 }
 0xb6d   :  { %4400 = vmatmul.msk.f32.gmra.mxu3 %vm7174_vm5, %v2083_v63 }
 0xb97   :  { %v1997_v60 = vpop.f32.mrf.mxu2 }
 0xb98   :  { %v1998_v16 = vadd.f32 %v6104_v1, %v1997_v60 }
 0xb9a   :  { %v2012_v14 = vmul.f32 %v1998_v16, %v1998_v16 }
 0xb9c   :  { %v2021_v62 = vmul.f32 %v2012_v14, %v1998_v16 }
 0xb9e   :  { %v2030_v46 = vmul.f32 0.044715, %v2021_v62 }
 0xb9f   :  { %v2000_v8 = vpop.f32.mrf.mxu2 }
 0xba0   :  { %v2039_v48 = vadd.f32 %v2030_v46, %v1998_v16  ;;  %v2001_v49 = vadd.f32 %v6104_v1, %v2000_v8 }
 0xba2   :  { %v2013_v52 = vmul.f32 %v2001_v49, %v2001_v49  ;;  %v2048_v37 = vmul.f32 0.7978846, %v2039_v48 }
 0xba4   :  { %v2022_v51 = vmul.f32 %v2013_v52, %v2001_v49  ;;  %4806 = vtanh.f32 %v2048_v37 }
 0xba6   :  { %v2031_v31 = vmul.f32 0.044715, %v2022_v51 }
 0xba8   :  { %v2040_v45 = vadd.f32 %v2031_v31, %v2001_v49 }
 0xbaa   :  { %v4807_v26 = vpop.eup %4806  ;;  %v2049_v39 = vmul.f32 0.7978846, %v2040_v45 }
 0xbab   :  { %v2066_v17 = vadd.f32 1.0, %v4807_v26 }
 0xbac   :  { %4808 = vtanh.f32 %v2049_v39 }
 0xbad   :  { %v2075_v4 = vmul.f32 0.5, %v2066_v17 }
 0xbaf   :  { %v2084_v21 = vmul.f32 %v2075_v4, %v1998_v16 }
 0xbb1   :  { %v2144_v47 = vpop.f32.mrf.mxu3  ;;  %4401 = vmatmul.msk.f32.gmra.mxu3 %vm7174_vm5, %v2084_v21 }
 0xbb2   :  { %v4809_v43 = vpop.eup %4808  ;;  %v2145_v20 = vadd.f32 %v6134_v58, %v2144_v47 }
 0xbb3   :  { %v2067_v0 = vadd.f32 1.0, %v4809_v43 }
 0xbb4   :  { %v6139_v36 = vadd.f32 %v2145_v20, %v5899_v12 }
 0xbb5   :  { %v2076_v9 = vmul.f32 0.5, %v2067_v0 }
 0xbb6   :  { %v2184_v18 = vsel %vm168_vm1, %v6139_v36, 0.0 }
 0xbb7   :  { %2185 = vadd.xlane.f32.xlu0 %v2184_v18  ;;  %v2085_v32 = vmul.f32 %v2076_v9, %v2001_v49 }
 0xbb9   :  { %v2003_v6 = vpop.f32.mrf.mxu2  ;;  %v2147_v40 = vpop.f32.mrf.mxu3  ;;  %4402 = vmatmul.msk.f32.gmra.mxu3 %vm7174_vm5, %v2085_v32 }
 0xbba   :  { %v2004_v33 = vadd.f32 %v6104_v1, %v2003_v6  ;;  %v2148_v5 = vadd.f32 %v6134_v58, %v2147_v40 }
 0xbbc   :  { %v2014_v23 = vmul.f32 %v2004_v33, %v2004_v33  ;;  %v6147_v57 = vadd.f32 %v2148_v5, %v5908_v27 }
 0xbbe   :  { %v2023_v12 = vmul.f32 %v2014_v23, %v2004_v33  ;;  %v2187_v50 = vsel %vm168_vm1, %v6147_v57, 0.0 }
 0xbbf   :  { %2188 = vadd.xlane.f32.xlu2 %v2187_v50 }
 0xbc0   :  { %v2032_v7 = vmul.f32 0.044715, %v2023_v12 }
 0xbc1   :  { %v2150_v30 = vpop.f32.mrf.mxu3 }
 0xbc2   :  { %v2041_v54 = vadd.f32 %v2032_v7, %v2004_v33  ;;  %v2151_v11 = vadd.f32 %v6134_v58, %v2150_v30  ;;  %v4407_v30 = vld [vmem:[%s7148_s5 + $0x28] sm:$0xff] }
 0xbc4   :  { %v6153_v22 = vadd.f32 %v2151_v11, %v5915_v10  ;;  %v2050_v1 = vmul.f32 0.7978846, %v2041_v54  ;;  %v4406_v54 = vld [vmem:[%s7148_s5 + $0x20] sm:$0xff] }
 0xbc6   :  { %v2190_v53 = vsel %vm168_vm1, %v6153_v22, 0.0  ;;  %4810 = vtanh.f32 %v2050_v1 }
 0xbc7   :  { %2191 = vadd.xlane.f32.xlu1 %v2190_v53 }
 0xbc9   :  { %v2153_v27 = vpop.f32.mrf.mxu3 }
 0xbca   :  { %v2154_v35 = vadd.f32 %v6134_v58, %v2153_v27 }
 0xbcc   :  { %v4811_v29 = vpop.eup %4810  ;;  %v6159_v25 = vadd.f32 %v2154_v35, %v5921_v61 }
 0xbcd   :  { %v2068_v56 = vadd.f32 1.0, %v4811_v29 }
 0xbce   :  { %v2193_v42 = vsel %vm168_vm1, %v6159_v25, 0.0 }
 0xbcf   :  { %2194 = vadd.xlane.f32.xlu0 %v2193_v42  ;;  %v2077_v10 = vmul.f32 0.5, %v2068_v56 }
 0xbd1   :  { %v2086_v15 = vmul.f32 %v2077_v10, %v2004_v33 }
 0xbd2   :  { %v2156_v13 = vpop.f32.mrf.mxu3 }
 0xbd3   :  { %4403 = vmatmul.msk.f32.gmra.mxu3 %vm7174_vm5, %v2086_v15  ;;  %v2157_v52 = vadd.f32 %v6134_v58, %v2156_v13 }
 0xbd5   :  { %v6193_v39 = vadd.f32 %v2157_v52, %v5929_v34 }
 0xbd7   :  { %v2196_v47 = vsel %vm168_vm1, %v6193_v39, 0.0 }
 0xbf0   :  { %v2159_v55 = vpop.f32.mrf.mxu3 }
 0xbf1   :  { %v2160_v2 = vadd.f32 %v6134_v58, %v2159_v55 }
 0xbf3   :  { %v6166_v41 = vadd.f32 %v2160_v2, %v5936_v24 }
 0xbf5   :  { %v2199_v61 = vsel %vm168_vm1, %v6166_v41, 0.0 }
 0xbf6   :  { %2200 = vadd.xlane.f32.xlu0 %v2199_v61 }
 0xc2a   :  { %v2186_v3 = vpop.xlane.xlu0 %2185 }
 0xc2b   :  { %v2211_v19 = vmul.f32 %v2186_v3, %v5138_v28 }
 0xc2d   :  { %v6172_v63 = vsub.f32 %v6139_v36, %v2211_v19 }
 0xc2f   :  { %v2229_v60 = vmul.f32 %v6172_v63, %v6172_v63 }
 0xc31   :  { %v2238_v16 = vsel %vm168_vm1, %v2229_v60, 0.0 }
 0xc32   :  { %2239 = vadd.xlane.f32.xlu1 %v2238_v16  ;;  %v2189_v14 = vpop.xlane.xlu2 %2188 }
 0xc33   :  { %v2212_v24 = vmul.f32 %v2189_v14, %v5138_v28 }
 0xc34   :  { %v2162_v62 = vpop.f32.mrf.mxu3 }
 0xc35   :  { %v6179_v46 = vsub.f32 %v6147_v57, %v2212_v24  ;;  %v2163_v8 = vadd.f32 %v6134_v58, %v2162_v62 }
 0xc37   :  { %v6183_v48 = vadd.f32 %v2163_v8, %v5953_v38  ;;  %v2230_v49 = vmul.f32 %v6179_v46, %v6179_v46 }
 0xc39   :  { %v2241_v37 = vsel %vm168_vm1, %v2230_v49, 0.0  ;;  %v2202_v51 = vsel %vm168_vm1, %v6183_v48, 0.0 }
 0xc3a   :  { %2242 = vadd.xlane.f32.xlu2 %v2241_v37  ;;  %2203 = vadd.xlane.f32.xlu1 %v2202_v51  ;;  %v2192_v31 = vpop.xlane.xlu1 %2191  ;;  %v6256_v51 = vld [vmem:[%s7184_s25 + $0x1] ss:$0 sm:$0xff] }
 0xc3b   :  { %v2213_v45 = vmul.f32 %v2192_v31, %v5138_v28 }
 0xc3c   :  { %v2165_v26 = vpop.f32.mrf.mxu3 }
 0xc3d   :  { %v6196_v38 = vsub.f32 %v6153_v22, %v2213_v45  ;;  %v2166_v17 = vadd.f32 %v6134_v58, %v2165_v26 }
 0xc3f   :  { %v6200_v4 = vadd.f32 %v2166_v17, %v5966_v44  ;;  %v2231_v21 = vmul.f32 %v6196_v38, %v6196_v38 }
 0xc41   :  { %v2205_v43 = vsel %vm168_vm1, %v6200_v4, 0.0  ;;  %v2244_v34 = vsel %vm168_vm1, %v2231_v21, 0.0  ;;  %v6265_v21 = vld [vmem:[%s7185_s28 + $0x1] ss:$0 sm:$0xff] }
 0xc42   :  { %v2195_v20 = vpop.xlane.xlu0 %2194  ;;  %2197 = vadd.xlane.f32.xlu2 %v2196_v47  ;;  %2206 = vadd.xlane.f32.xlu1 %v2205_v43 }
 0xc43   :  { %v2214_v0 = vmul.f32 %v2195_v20, %v5138_v28  ;;  %2245 = vadd.xlane.f32.xlu0 %v2244_v34 }
 0xc45   :  { %v6211_v44 = vsub.f32 %v6159_v25, %v2214_v0 }
 0xc47   :  { %v2232_v9 = vmul.f32 %v6211_v44, %v6211_v44 }
 0xc49   :  { %v2247_v18 = vsel %vm168_vm1, %v2232_v9, 0.0 }
 0xc4a   :  { %2248 = vadd.xlane.f32.xlu2 %v2247_v18 }
 0xc56   :  { %v2168_v32 = vpop.f32.mrf.mxu3 }
 0xc57   :  { %v2169_v6 = vadd.f32 %v6134_v58, %v2168_v32  ;;  %v4408_v58 = vld [vmem:[%s7148_s5 + $0x30] sm:$0xff] }
 0xc59   :  { %v6218_v40 = vadd.f32 %v2169_v6, %v5989_v59  ;;  %v4409_v59 = vld [vmem:[%s7148_s5 + $0x38] sm:$0xff] }
 0xc5a   :  { %2455 = vmatpush.msra.mxu1 %v4409_v59 }
 0xc5b   :  { %v2208_v33 = vsel %vm193_vm8, %v6218_v40, 0.0 }
 0xc5c   :  { %2209 = vadd.xlane.f32.xlu2 %v2208_v33  ;;  %2456 = vmatpush.msra.mxu1 %v4408_v58 }
 0xc5e   :  { %2457 = vmatpush.msra.mxu1 %v4407_v30 }
 0xc60   :  { %2458 = vmatpush.msra.mxu1 %v4406_v54 }
 0xc69   :  { %v2201_v5 = vpop.xlane.xlu0 %2200 }
 0xc6a   :  { %v2216_v23 = vmul.f32 %v2201_v5, %v5138_v28 }
 0xc6c   :  { %v6224_v12 = vsub.f32 %v6166_v41, %v2216_v23 }
 0xc6e   :  { %v2234_v50 = vmul.f32 %v6224_v12, %v6224_v12 }
 0xc70   :  { %v2253_v7 = vsel %vm168_vm1, %v2234_v50, 0.0 }
 0xc71   :  { %2254 = vadd.xlane.f32.xlu1 %v2253_v7 }
 0xca5   :  { %v2240_v11 = vpop.xlane.xlu1 %2239 }
 0xca6   :  { %v2265_v1 = vmul.f32 %v2240_v11, %v5138_v28 }
 0xca8   :  { %v2274_v53 = vadd.f32 1e-12, %v2265_v1 }
 0xcaa   :  { %4812 = vrsqrt.f32 %v2274_v53  ;;  %vm2289_vm13 = vweird.f32 %v2274_v53 }
 0xcad   :  { %v2243_v27 = vpop.xlane.xlu2 %2242  ;;  %v2204_v35 = vpop.xlane.xlu1 %2203 }
 0xcae   :  { %v2266_v29 = vmul.f32 %v2243_v27, %v5138_v28  ;;  %v2217_v24 = vmul.f32 %v2204_v35, %v5138_v28 }
 0xcb0   :  { %v4813_v56 = vpop.eup %4812  ;;  %v2275_v42 = vadd.f32 1e-12, %v2266_v29  ;;  %v6269_v43 = vsub.f32 %v6183_v48, %v2217_v24 }
 0xcb1   :  { %v2284_v10 = vmul.f32 %v4813_v56, %v2274_v53  ;;  %vm2290_vm11 = vweird.f32 %v4813_v56 }
 0xcb2   :  { %4814 = vrsqrt.f32 %v2275_v42  ;;  %vm2291_vm3 = vmor %vm2289_vm13, %vm2290_vm11  ;;  %v2235_v5 = vmul.f32 %v6269_v43, %v6269_v43  ;;  %vm2299_vm10 = vweird.f32 %v2275_v42 }
 0xcb3   :  { %v2285_v15 = vmul.f32 %v4813_v56, %v2284_v10 }
 0xcb4   :  { %v2256_v30 = vsel %vm168_vm1, %v2235_v5, 0.0 }
 0xcb5   :  { %v2286_v13 = vmul.f32 0.5, %v2285_v15  ;;  %v2198_v55 = vpop.xlane.xlu2 %2197  ;;  %v2207_v2 = vpop.xlane.xlu1 %2206 }
 0xcb6   :  { %v2215_v61 = vmul.f32 %v2198_v55, %v5138_v28  ;;  %v2246_v3 = vpop.xlane.xlu0 %2245  ;;  %v2218_v19 = vmul.f32 %v2207_v2, %v5138_v28 }
 0xcb7   :  { %v2287_v60 = vsub.f32 1.5, %v2286_v13  ;;  %v2267_v16 = vmul.f32 %v2246_v3, %v5138_v28 }
 0xcb8   :  { %v4815_v14 = vpop.eup %4814  ;;  %v6248_v62 = vsub.f32 %v6193_v39, %v2215_v61  ;;  %v6251_v8 = vsub.f32 %v6200_v4, %v2218_v19 }
 0xcb9   :  { %v2288_v49 = vmul.f32 %v4813_v56, %v2287_v60  ;;  %v2294_v52 = vmul.f32 %v4815_v14, %v2275_v42  ;;  %v2276_v37 = vadd.f32 1e-12, %v2267_v16  ;;  %vm2300_vm9 = vweird.f32 %v4815_v14 }
 0xcba   :  { %v2233_v31 = vmul.f32 %v6248_v62, %v6248_v62  ;;  %v2236_v45 = vmul.f32 %v6251_v8, %v6251_v8  ;;  %vm2301_vm11 = vmor %vm2299_vm10, %vm2300_vm9 }
 0xcbb   :  { %v2292_v26 = vsel %vm2291_vm3, %v4813_v56, %v2288_v49  ;;  %v2295_v17 = vmul.f32 %v4815_v14, %v2294_v52  ;;  %4816 = vrsqrt.f32 %v2276_v37  ;;  %vm2309_vm3 = vweird.f32 %v2276_v37 }
 0xcbc   :  { %v2373_v47 = vmul.f32 %v2292_v26, %v6172_v63  ;;  %v2250_v34 = vsel %vm168_vm1, %v2233_v31, 0.0  ;;  %v2259_v20 = vsel %vm168_vm1, %v2236_v45, 0.0 }
 0xcbd   :  { %v2296_v0 = vmul.f32 0.5, %v2295_v17  ;;  %v2249_v9 = vpop.xlane.xlu2 %2248  ;;  %2251 = vadd.xlane.f32.xlu0 %v2250_v34  ;;  %2260 = vadd.xlane.f32.xlu2 %v2259_v20 }
 0xcbe   :  { %v2385_v18 = vmul.f32 %v6256_v51, %v2373_v47  ;;  %v2268_v32 = vmul.f32 %v2249_v9, %v5138_v28 }
 0xcbf   :  { %v2297_v6 = vsub.f32 1.5, %v2296_v0 }
 0xcc0   :  { %v2277_v33 = vadd.f32 1e-12, %v2268_v32  ;;  %v2397_v63 = vadd.f32 %v6265_v21, %v2385_v18 }
 0xcc1   :  { %v4817_v23 = vpop.eup %4816  ;;  %v2298_v50 = vmul.f32 %v4815_v14, %v2297_v6 }
 0xcc2   :  { %v2304_v7 = vmul.f32 %v4817_v23, %v2276_v37  ;;  %4818 = vrsqrt.f32 %v2277_v33  ;;  %4411 = vmatmul.msk.f32.vlgmr.msra.gmra.mxu1 %vm168_vm1, %v2397_v63  ;;  %vm2310_vm13 = vweird.f32 %v4817_v23 }
 0xcc3   :  { %v2302_v59 = vsel %vm2301_vm11, %v4815_v14, %v2298_v50  ;;  %vm2311_vm9 = vmor %vm2309_vm3, %vm2310_vm13  ;;  %vm2319_vm11 = vweird.f32 %v2277_v33  ;;  %v6309_v50 = vld [vmem:[%s7186_s4 + $0x1] ss:$0 sm:$0xff]  ;;  %s7187_s4 = smov 64  }
 0xcc4   :  { %v2305_v58 = vmul.f32 %v4817_v23, %v2304_v7  ;;  %v2374_v54 = vmul.f32 %v2302_v59, %v6179_v46 }
 0xcc5   :  { %2257 = vadd.xlane.f32.xlu0 %v2256_v30 }
 0xcc6   :  { %v2306_v11 = vmul.f32 0.5, %v2305_v58  ;;  %v2386_v1 = vmul.f32 %v6256_v51, %v2374_v54 }
 0xcc8   :  { %v4819_v53 = vpop.eup %4818  ;;  %v2307_v27 = vsub.f32 1.5, %v2306_v11  ;;  %v2398_v35 = vadd.f32 %v6265_v21, %v2386_v1 }
 0xcc9   :  { %v2314_v29 = vmul.f32 %v4819_v53, %v2277_v33  ;;  %vm2320_vm10 = vweird.f32 %v4819_v53 }
 0xcca   :  { %v2308_v56 = vmul.f32 %v4817_v23, %v2307_v27  ;;  %4412 = vmatmul.msk.f32.gmra.mxu1 %vm168_vm1, %v2398_v35  ;;  %vm2321_vm5 = vmor %vm2319_vm11, %vm2320_vm10 }
 0xccb   :  { %v2315_v42 = vmul.f32 %v4819_v53, %v2314_v29 }
 0xccc   :  { %v2312_v10 = vsel %vm2311_vm9, %v4817_v23, %v2308_v56 }
 0xccd   :  { %v2375_v15 = vmul.f32 %v2312_v10, %v6196_v38  ;;  %v2316_v46 = vmul.f32 0.5, %v2315_v42 }
 0xccf   :  { %v2317_v13 = vsub.f32 1.5, %v2316_v46  ;;  %v2210_v55 = vpop.xlane.xlu2 %2209  ;;  %v2387_v2 = vmul.f32 %v6256_v51, %v2375_v15 }
 0xcd0   :  { %v2219_v61 = vmul.f32 %v2210_v55, %v5138_v28 }
 0xcd1   :  { %v2318_v3 = vmul.f32 %v4819_v53, %v2317_v13  ;;  %v2399_v19 = vadd.f32 %v6265_v21, %v2387_v2 }
 0xcd2   :  { %v6289_v60 = vsub.f32 %v6218_v40, %v2219_v61 }
 0xcd3   :  { %v2322_v16 = vsel %vm2321_vm5, %v4819_v53, %v2318_v3  ;;  %4413 = vmatmul.msk.f32.gmra.mxu1 %vm168_vm1, %v2399_v19 }
 0xcd4   :  { %v2376_v38 = vmul.f32 %v2322_v16, %v6211_v44  ;;  %v2237_v14 = vmul.f32 %v6289_v60, %v6289_v60 }
 0xcd6   :  { %v2262_v24 = vsel %vm193_vm8, %v2237_v14, 0.0  ;;  %v2388_v49 = vmul.f32 %v6256_v51, %v2376_v38 }
 0xcd7   :  { %2263 = vadd.xlane.f32.xlu1 %v2262_v24 }
 0xcd8   :  { %v2400_v52 = vadd.f32 %v6265_v21, %v2388_v49 }
 0xcdb   :  { %4414 = vmatmul.msk.f32.gmra.mxu1 %vm168_vm1, %v2400_v52 }
 0xce4   :  { %v2255_v37 = vpop.xlane.xlu1 %2254 }
 0xce5   :  { %v2270_v31 = vmul.f32 %v2255_v37, %v5138_v28 }
 0xce7   :  { %v2279_v45 = vadd.f32 1e-12, %v2270_v31 }
 0xce9   :  { %4820 = vrsqrt.f32 %v2279_v45  ;;  %vm2339_vm10 = vweird.f32 %v2279_v45 }
 0xcef   :  { %v4821_v26 = vpop.eup %4820 }
 0xcf0   :  { %v2334_v34 = vmul.f32 %v4821_v26, %v2279_v45  ;;  %vm2340_vm13 = vweird.f32 %v4821_v26 }
 0xcf1   :  { %vm2341_vm11 = vmor %vm2339_vm10, %vm2340_vm13 }
 0xcf2   :  { %v2335_v9 = vmul.f32 %v4821_v26, %v2334_v34 }
 0xcf4   :  { %v2336_v63 = vmul.f32 0.5, %v2335_v9 }
 0xcf6   :  { %v2337_v59 = vsub.f32 1.5, %v2336_v63 }
 0xcf8   :  { %v2338_v27 = vmul.f32 %v4821_v26, %v2337_v59 }
 0xcfa   :  { %v2342_v13 = vsel %vm2341_vm11, %v4821_v26, %v2338_v27 }
 0xcfb   :  { %v2378_v38 = vmul.f32 %v2342_v13, %v6224_v12 }
 0xcfd   :  { %v2390_v37 = vmul.f32 %v6256_v51, %v2378_v38 }
 0xd30   :  { %v2252_v17 = vpop.xlane.xlu0 %2251  ;;  %v2261_v44 = vpop.xlane.xlu2 %2260 }
 0xd31   :  { %v2269_v47 = vmul.f32 %v2252_v17, %v5138_v28  ;;  %v2272_v0 = vmul.f32 %v2261_v44, %v5138_v28  ;;  %v2402_v44 = vadd.f32 %v6265_v21, %v2390_v37 }
 0xd33   :  { %v2278_v20 = vadd.f32 1e-12, %v2269_v47  ;;  %v6302_v18 = vadd.f32 1e-12, %v2272_v0 }
 0xd35   :  { %4822 = vrsqrt.f32 %v2278_v20  ;;  %vm2329_vm3 = vweird.f32 %v2278_v20  ;;  %vm2359_vm10 = vweird.f32 %v6302_v18 }
 0xd36   :  { %4824 = vrsqrt.f32 %v6302_v18 }
 0xd38   :  { %v2258_v32 = vpop.xlane.xlu0 %2257 }
 0xd39   :  { %v2271_v6 = vmul.f32 %v2258_v32, %v5138_v28 }
 0xd3b   :  { %v4823_v33 = vpop.eup %4822  ;;  %v2280_v5 = vadd.f32 1e-12, %v2271_v6 }
 0xd3c   :  { %v2324_v23 = vmul.f32 %v4823_v33, %v2278_v20  ;;  %v4825_v11 = vpop.eup %4824  ;;  %vm2330_vm5 = vweird.f32 %v4823_v33 }
 0xd3d   :  { %4826 = vrsqrt.f32 %v2280_v5  ;;  %v2354_v29 = vmul.f32 %v4825_v11, %v6302_v18  ;;  %vm2331_vm9 = vmor %vm2329_vm3, %vm2330_vm5  ;;  %vm2349_vm13 = vweird.f32 %v2280_v5 }
 0xd3e   :  { %v2325_v7 = vmul.f32 %v4823_v33, %v2324_v23 }
 0xd3f   :  { %v2460_v58 = vpop.f32.mrf.mxu1  ;;  %v2355_v55 = vmul.f32 %v4825_v11, %v2354_v29 }
 0xd40   :  { %v2326_v30 = vmul.f32 0.5, %v2325_v7  ;;  %v6312_v54 = vadd.f32 %v6309_v50, %v2460_v58 }
 0xd41   :  { %v2356_v24 = vmul.f32 0.5, %v2355_v55 }
 0xd42   :  { %v2327_v1 = vsub.f32 1.5, %v2326_v30  ;;  %2621 = vrot.lane.b32.xlu1 %v6312_v54, %s4969_s29 }
 0xd43   :  { %v4827_v53 = vpop.eup %4826  ;;  %v2357_v31 = vsub.f32 1.5, %v2356_v24 }
 0xd44   :  { %v2328_v35 = vmul.f32 %v4823_v33, %v2327_v1  ;;  %v2344_v56 = vmul.f32 %v4827_v53, %v2280_v5  ;;  %vm2350_vm5 = vweird.f32 %v4827_v53 }
 0xd45   :  { %vm2351_vm3 = vmor %vm2349_vm13, %vm2350_vm5  ;;  %v2358_v47 = vmul.f32 %v4825_v11, %v2357_v31 }
 0xd46   :  { %v2332_v42 = vsel %vm2331_vm9, %v4823_v33, %v2328_v35  ;;  %v2345_v10 = vmul.f32 %v4827_v53, %v2344_v56  ;;  %vm2360_vm9 = vweird.f32 %v4825_v11 }
 0xd47   :  { %v2377_v15 = vmul.f32 %v2332_v42, %v6248_v62  ;;  %v2463_v46 = vpop.f32.mrf.mxu1  ;;  %vm2361_vm11 = vmor %vm2359_vm10, %vm2360_vm9 }
 0xd48   :  { %v2346_v2 = vmul.f32 0.5, %v2345_v10  ;;  %v6319_v61 = vadd.f32 %v6309_v50, %v2463_v46 }
 0xd49   :  { %v2389_v3 = vmul.f32 %v6256_v51, %v2377_v15 }
 0xd4a   :  { %v2347_v19 = vsub.f32 1.5, %v2346_v2  ;;  %2623 = vrot.lane.b32.xlu2 %v6319_v61, %s4969_s29  ;;  %v2264_v16 = vpop.xlane.xlu1 %2263 }
 0xd4b   :  { %v2273_v14 = vmul.f32 %v2264_v16, %v5138_v28  ;;  %v2401_v62 = vadd.f32 %v6265_v21, %v2389_v3 }
 0xd4c   :  { %v2348_v49 = vmul.f32 %v4827_v53, %v2347_v19 }
 0xd4d   :  { %v2282_v52 = vadd.f32 1e-12, %v2273_v14  ;;  %4415 = vmatmul.msk.f32.gmra.mxu1 %vm168_vm1, %v2401_v62 }
 0xd4e   :  { %v2352_v45 = vsel %vm2351_vm3, %v4827_v53, %v2348_v49 }
 0xd4f   :  { %4828 = vrsqrt.f32 %v2282_v52  ;;  %v2379_v17 = vmul.f32 %v2352_v45, %v6269_v43  ;;  %v2362_v43 = vsel %vm2361_vm11, %v4825_v11, %v2358_v47  ;;  %vm2369_vm13 = vweird.f32 %v2282_v52 }
 0xd50   :  { %v2466_v26 = vpop.f32.mrf.mxu1  ;;  %v2380_v63 = vmul.f32 %v2362_v43, %v6251_v8 }
 0xd51   :  { %v6330_v12 = vadd.f32 %v6309_v50, %v2466_v26  ;;  %v2391_v0 = vmul.f32 %v6256_v51, %v2379_v17 }
 0xd52   :  { %2617 = vrot.lane.b32.xlu2 %v6319_v61, %s4970_s2  ;;  %v2392_v8 = vmul.f32 %v6256_v51, %v2380_v63 }
 0xd53   :  { %2619 = vrot.lane.b32.xlu1 %v6330_v12, %s4970_s2  ;;  %2625 = vrot.lane.b32.xlu0 %v6330_v12, %s4969_s29  ;;  %v2766_v5 = vrot.slane %v6330_v12, 1  ;;  %v2403_v18 = vadd.f32 %v6265_v21, %v2391_v0 }
 0xd54   :  { %v2404_v1 = vadd.f32 %v6265_v21, %v2392_v8 }
 0xd55   :  { %v4829_v34 = vpop.eup %4828  ;;  %4416 = vmatmul.msk.f32.gmra.mxu1 %vm168_vm1, %v2402_v44 }
 0xd56   :  { %v2364_v20 = vmul.f32 %v4829_v34, %v2282_v52  ;;  %vm2370_vm5 = vweird.f32 %v4829_v34 }
 0xd57   :  { %vm2371_vm3 = vmor %vm2369_vm13, %vm2370_vm5 }
 0xd58   :  { %v2365_v9 = vmul.f32 %v4829_v34, %v2364_v20  ;;  %v2469_v32 = vpop.f32.mrf.mxu1 }
 0xd59   :  { %v2470_v6 = vadd.f32 %v6309_v50, %v2469_v32 }
 0xd5a   :  { %v2366_v33 = vmul.f32 0.5, %v2365_v9 }
 0xd5b   :  { %v2767_v23 = vrot.slane %v2470_v6, 1  ;;  %2615 = vrot.lane.b32.xlu0 %v6312_v54, %s4970_s2 }
 0xd5c   :  { %v2367_v7 = vsub.f32 1.5, %v2366_v33 }
 0xd5d   :  { %v6350_v59 = vsel %vm762_vm7, %v2766_v5, %v2767_v23  ;;  %4417 = vmatmul.msk.f32.gmra.mxu1 %vm168_vm1, %v2403_v18 }
 0xd5e   :  { %v2368_v58 = vmul.f32 %v4829_v34, %v2367_v7  ;;  %2896 = vrot.lane.b32.xlu1 %v6350_v59, %s4970_s2 }
 0xd60   :  { %v2372_v30 = vsel %vm2371_vm3, %v4829_v34, %v2368_v58 }
 0xd61   :  { %v2381_v11 = vmul.f32 %v2372_v30, %v6289_v60 }
 0xd63   :  { %v2393_v53 = vmul.f32 %v6256_v51, %v2381_v11 }
 0xd65   :  { %4418 = vmatmul.msk.f32.gmra.mxu1 %vm168_vm1, %v2404_v1  ;;  %v2405_v27 = vadd.f32 %v6265_v21, %v2393_v53 }
 0xd6d   :  { %4419 = vmatmul.msk.f32.gmra.mxu1 %vm168_vm1, %v2405_v27 }
 0xda4   :  { %v2624_v29 = vpop.permute.xlu2 %2623 }
 0xdac   :  { %v2618_v13 = vpop.permute.xlu2 %2617 }
 0xdb4   :  { %v2622_v60 = vpop.permute.xlu1 %2621 }
 0xdc5   :  { %v2626_v35 = vpop.permute.xlu0 %2625  ;;  %v2620_v19 = vpop.permute.xlu1 %2619 }
 0xdc6   :  { %4430 = vmatpush.xpose.msk.msra.mxu3 %vm487_vm12, %v2626_v35 }
 0xdca   :  { %4431 = vmatpush.xpose.msk.msra.mxu3 %vm487_vm12, %v2624_v29  ;;  %v2472_v56 = vpop.f32.mrf.mxu1 }
 0xdcb   :  { %v2473_v42 = vadd.f32 %v6309_v50, %v2472_v56 }
 0xdcd   :  { %v6365_v10 = vrot.slane %v2473_v42, 1  ;;  %v2616_v21 = vpop.permute.xlu0 %2615  ;;  %v3047_v2 = vrot.slane %v2473_v42, 2 }
 0xdce   :  { %4432 = vmatpush.xpose.msk.msra.mxu3 %vm487_vm12, %v2622_v60 }
 0xdcf   :  { %2906 = vrot.lane.b32.xlu0 %v6365_v10, %s4969_s29  ;;  %v6372_v51 = vsel %vm762_vm7, %v2767_v23, %v6365_v10 }
 0xdd0   :  { %2898 = vrot.lane.b32.xlu1 %v6372_v51, %s4970_s2  ;;  %2904 = vrot.lane.b32.xlu2 %v6372_v51, %s4969_s29  ;;  %v2897_v47 = vpop.permute.xlu1 %2896 }
 0xdd1   :  { %4433 = vmatmul.msk.f32.vlgmr.msra.gmra.mxu3 %vm487_vm12, %v2616_v21 }
 0xdd2   :  { %v2475_v15 = vpop.f32.mrf.mxu1 }
 0xdd3   :  { %v2476_v46 = vadd.f32 %v6309_v50, %v2475_v15 }
 0xdd5   :  { %v3048_v55 = vrot.slane %v2476_v46, 2 }
 0xdd7   :  { %2902 = vrot.lane.b32.xlu0 %v6350_v59, %s4969_s29  ;;  %v6388_v3 = vsel %vm1044_vm4, %v3047_v2, %v3048_v55 }
 0xdd8   :  { %2900 = vrot.lane.b32.xlu1 %v6365_v10, %s4970_s2  ;;  %2494 = vrot.lane.b32.xlu2 %v6330_v12, %s4967_s30 }
 0xdd9   :  { %4434 = vmatmul.msk.f32.gmra.mxu3 %vm487_vm12, %v2618_v13 }
 0xdda   :  { %v2478_v16 = vpop.f32.mrf.mxu1 }
 0xddb   :  { %v2479_v38 = vadd.f32 %v6309_v50, %v2478_v16 }
 0xddd   :  { %v6404_v14 = vrot.slane %v2479_v38, 2  ;;  %v3328_v37 = vrot.slane %v2479_v38, 3 }
 0xddf   :  { %2492 = vrot.lane.b32.xlu0 %v6319_v61, %s4967_s30  ;;  %v6417_v49 = vsel %vm1044_vm4, %v3048_v55, %v6404_v14 }
 0xde0   :  { %2490 = vrot.lane.b32.xlu2 %v6312_v54, %s4967_s30  ;;  %3177 = vrot.lane.b32.xlu1 %v6388_v3, %s4970_s2 }
 0xde1   :  { %4435 = vmatmul.msk.f32.gmra.mxu3 %vm487_vm12, %v2620_v19 }
 0xde2   :  { %v2481_v62 = vpop.f32.mrf.mxu1 }
 0xde3   :  { %v6413_v24 = vadd.f32 %v6309_v50, %v2481_v62 }
 0xde5   :  { %v3329_v52 = vrot.slane %v6413_v24, 3 }
 0xde7   :  { %3183 = vrot.lane.b32.xlu0 %v6388_v3, %s4969_s29  ;;  %v6425_v31 = vsel %vm1326_vm14, %v3328_v37, %v3329_v52 }
 0xde8   :  { %2775 = vrot.lane.b32.xlu2 %v6365_v10, %s4967_s30  ;;  %3052 = vrot.lane.b32.xlu1 %v6388_v3, %s4967_s30 }
 0xdef   :  { %2773 = vrot.lane.b32.xlu0 %v6372_v51, %s4967_s30 }
 0xdf0   :  { %2771 = vrot.lane.b32.xlu2 %v6350_v59, %s4967_s30  ;;  %3181 = vrot.lane.b32.xlu1 %v6404_v14, %s4970_s2 }
 0xdf8   :  { %3179 = vrot.lane.b32.xlu1 %v6417_v49, %s4970_s2 }
 0xe00   :  { %3458 = vrot.lane.b32.xlu1 %v6425_v31, %s4970_s2 }
 0xe2a   :  { %v2905_v45 = vpop.permute.xlu2 %2904 }
 0xe32   :  { %v2495_v26 = vpop.permute.xlu2 %2494 }
 0xe33   :  { %4420 = vmatpush.xpose.msk.msra.mxu0 %vm487_vm12, %v2495_v26 }
 0xe3a   :  { %v2491_v34 = vpop.permute.xlu2 %2490 }
 0xe41   :  { %v2907_v17 = vpop.permute.xlu0 %2906 }
 0xe42   :  { %4450 = vmatpush.xpose.msk.msrb.mxu3 %vm487_vm12, %v2907_v17  ;;  %v2899_v0 = vpop.permute.xlu1 %2898  ;;  %v2776_v32 = vpop.permute.xlu2 %2775 }
 0xe46   :  { %4451 = vmatpush.xpose.msk.msrb.mxu3 %vm487_vm12, %v2905_v45 }
 0xe49   :  { %v2903_v44 = vpop.permute.xlu0 %2902 }
 0xe4a   :  { %4452 = vmatpush.xpose.msk.msrb.mxu3 %vm487_vm12, %v2903_v44  ;;  %v2901_v63 = vpop.permute.xlu1 %2900  ;;  %v2772_v8 = vpop.permute.xlu2 %2771 }
 0xe4d   :  { %4453 = vmatmul.msk.f32.vlgmr.msrb.gmra.mxu3 %vm487_vm12, %v2897_v47  ;;  %v2484_v47 = vpop.f32.mrf.mxu1 }
 0xe51   :  { %v2493_v20 = vpop.permute.xlu0 %2492 }
 0xe52   :  { %4421 = vmatpush.xpose.msk.msra.mxu0 %vm487_vm12, %v2493_v20  ;;  %v3178_v46 = vpop.permute.xlu1 %3177  ;;  %v4599_v20 = vpack.i.bf16 %v6312_v54, %v6319_v61 }
 0xe54   :  { %v2656_v43 = vpop.f32.mrf.mxu3 }
 0xe55   :  { %v6435_v9 = vmul.f32 0.25, %v2656_v43  ;;  %4454 = vmatmul.msk.f32.gmra.mxu3 %vm487_vm12, %v2899_v0  ;;  %v2485_v0 = vadd.f32 %v6309_v50, %v2484_v47 }
 0xe56   :  { %4422 = vmatpush.xpose.msk.msra.mxu0 %vm487_vm12, %v2491_v34 }
 0xe57   :  { %v2668_v6 = vsel %vm529_vm2, %v6435_v9, -inf  ;;  %v6512_v43 = vrot.slane %v2485_v0, 3 }
 0xe58   :  { %2669 = vmax.xlane.f32.xlu2 %v2668_v6 }
 0xe59   :  { %4423 = vmatmul.msk.f32.vlgmr.msra.gmra.mxu0 %vm487_vm12, %v6312_v54  ;;  %v3184_v33 = vpop.permute.xlu0 %3183  ;;  %v4604_v54 = vpack.i.bf16 %v6350_v59, %v6372_v51  ;;  %v6532_v50 = vsel %vm1326_vm14, %v3329_v52, %v6512_v43 }
 0xe5a   :  { %4440 = vmatpush.xpose.msk.msrb.mxu0 %vm487_vm12, %v2776_v32  ;;  %v3053_v45 = vpop.permute.xlu1 %3052 }
 0xe5c   :  { %v2659_v5 = vpop.f32.mrf.mxu3 }
 0xe5d   :  { %v6444_v23 = vmul.f32 0.25, %v2659_v5  ;;  %4455 = vmatmul.msk.f32.gmra.mxu3 %vm487_vm12, %v2901_v63 }
 0xe5f   :  { %v2671_v18 = vsel %vm529_vm2, %v6444_v23, -inf }
 0xe60   :  { %2672 = vmax.xlane.f32.xlu0 %v2671_v18 }
 0xe61   :  { %4424 = vmatmul.msk.f32.gmra.mxu0 %vm487_vm12, %v6319_v61  ;;  %v2774_v7 = vpop.permute.xlu0 %2773 }
 0xe62   :  { %4441 = vmatpush.xpose.msk.msrb.mxu0 %vm487_vm12, %v2774_v7  ;;  %v3182_v34 = vpop.permute.xlu1 %3181 }
 0xe64   :  { %v2662_v58 = vpop.f32.mrf.mxu3 }
 0xe65   :  { %v6452_v30 = vmul.f32 0.25, %v2662_v58 }
 0xe66   :  { %4442 = vmatpush.xpose.msk.msrb.mxu0 %vm487_vm12, %v2772_v8 }
 0xe67   :  { %v2674_v11 = vsel %vm536_vm0, %v6452_v30, -inf }
 0xe68   :  { %2675 = vmax.xlane.f32.xlu1 %v2674_v11 }
 0xe69   :  { %4425 = vmatmul.msk.f32.gmra.mxu0 %vm487_vm12, %v6330_v12 }
 0xe6a   :  { %v3180_v32 = vpop.permute.xlu1 %3179 }
 0xe70   :  { %3056 = vrot.lane.b32.xlu2 %v6404_v14, %s4967_s30 }
 0xe71   :  { %4443 = vmatmul.msk.f32.vlgmr.msrb.gmra.mxu0 %vm487_vm12, %v6350_v59 }
 0xe74   :  { %3187 = vrot.lane.b32.xlu0 %v6404_v14, %s4969_s29 }
 0xe78   :  { %3185 = vrot.lane.b32.xlu2 %v6417_v49, %s4969_s29 }
 0xe79   :  { %4444 = vmatmul.msk.f32.gmra.mxu0 %vm487_vm12, %v6372_v51 }
 0xe7c   :  { %3054 = vrot.lane.b32.xlu0 %v6417_v49, %s4967_s30 }
 0xe81   :  { %3333 = vrot.lane.b32.xlu1 %v6425_v31, %s4967_s30  ;;  %4445 = vmatmul.msk.f32.gmra.mxu0 %vm487_vm12, %v6365_v10 }
 0xe84   :  { %3464 = vrot.lane.b32.xlu0 %v6425_v31, %s4969_s29 }
 0xecb   :  { %v6477_v1 = vpop.xlane.xlu2 %2669 }
 0xed0   :  { %v2937_v53 = vpop.f32.mrf.mxu3 }
 0xed1   :  { %v6479_v27 = vmul.f32 0.25, %v2937_v53 }
 0xed3   :  { %v3057_v35 = vpop.permute.xlu2 %3056  ;;  %v2949_v29 = vsel %vm529_vm2, %v6479_v27, -inf  ;;  %v6492_v55 = vpop.xlane.xlu0 %2672 }
 0xed4   :  { %4460 = vmatpush.xpose.msk.msra.mxu0 %vm487_vm12, %v3057_v35  ;;  %2950 = vmax.xlane.f32.xlu2 %v2949_v29 }
 0xed6   :  { %v2525_v56 = vpop.f32.mrf.mxu0 }
 0xed7   :  { %v6484_v42 = vmul.f32 0.25, %v2525_v56 }
 0xed8   :  { %v2940_v60 = vpop.f32.mrf.mxu3 }
 0xed9   :  { %v6486_v21 = vmul.f32 0.25, %v2940_v60  ;;  %v2537_v15 = vsel %vm529_vm2, %v6484_v42, -inf  ;;  %v2677_v60 = vsub.f32 %v6435_v9, %v6477_v1 }
 0xeda   :  { %2538 = vmax.xlane.f32.xlu1 %v2537_v15 }
 0xedb   :  { %v2952_v13 = vsel %vm529_vm2, %v6486_v21, -inf  ;;  %v3186_v17 = vpop.permute.xlu2 %3185 }
 0xedc   :  { %2953 = vmax.xlane.f32.xlu0 %v2952_v13  ;;  %v3459_v13 = vpop.permute.xlu1 %3458 }
 0xede   :  { %v2528_v2 = vpop.f32.mrf.mxu0 }
 0xedf   :  { %v6494_v19 = vmul.f32 0.25, %v2528_v2  ;;  %v2678_v2 = vsub.f32 %v6444_v23, %v6492_v55  ;;  %v6592_v23 = vpack.i.bf16 %v6388_v3, %v6417_v49 }
 0xee0   :  { %v2943_v16 = vpop.f32.mrf.mxu3 }
 0xee1   :  { %v6496_v38 = vmul.f32 0.25, %v2943_v16  ;;  %v2540_v62 = vsel %vm529_vm2, %v6494_v19, -inf  ;;  %v2682_v16 = vmul.f32 1.442695, %v2678_v2 }
 0xee3   :  { %v2955_v37 = vsel %vm536_vm0, %v6496_v38, -inf }
 0xee4   :  { %2541 = vmax.xlane.f32.xlu0 %v2540_v62  ;;  %2956 = vmax.xlane.f32.xlu2 %v2955_v37  ;;  %v2676_v55 = vpop.xlane.xlu1 %2675 }
 0xee6   :  { %v3188_v26 = vpop.permute.xlu0 %3187  ;;  %v2531_v61 = vpop.f32.mrf.mxu0 }
 0xee7   :  { %4470 = vmatpush.xpose.msk.msra.mxu3 %vm487_vm12, %v3188_v26  ;;  %v2536_v63 = vmul.f32 0.25, %v2531_v61 }
 0xee9   :  { %v2543_v18 = vsel %vm536_vm0, %v2536_v63, -inf }
 0xeeb   :  { %4471 = vmatpush.xpose.msk.msra.mxu3 %vm487_vm12, %v3186_v17 }
 0xeee   :  { %v3055_v44 = vpop.permute.xlu0 %3054  ;;  %v2806_v59 = vpop.f32.mrf.mxu0 }
 0xeef   :  { %4461 = vmatpush.xpose.msk.msra.mxu0 %vm487_vm12, %v3055_v44  ;;  %4472 = vmatpush.xpose.msk.msra.mxu3 %vm487_vm12, %v3184_v33  ;;  %v6540_v6 = vmul.f32 0.25, %v2806_v59 }
 0xef1   :  { %v2818_v24 = vsel %vm529_vm2, %v6540_v6, -inf }
 0xef2   :  { %4473 = vmatmul.msk.f32.vlgmr.msra.gmra.mxu3 %vm487_vm12, %v3178_v46  ;;  %v2680_v46 = vmul.f32 1.442695, %v2677_v60 }
 0xef3   :  { %4462 = vmatpush.xpose.msk.msra.mxu0 %vm487_vm12, %v3053_v45  ;;  %4600 = vrot.lane.b32.xlu1 %v4599_v20, %s4971_s0  ;;  %v3334_v45 = vpop.permute.xlu1 %3333 }
 0xef4   :  { %4830 = vpow2.f32 %v2680_v46 }
 0xef5   :  { %4832 = vpow2.f32 %v2682_v16 }
 0xef6   :  { %4463 = vmatmul.msk.f32.vlgmr.msra.gmra.mxu0 %vm487_vm12, %v6388_v3  ;;  %v2809_v51 = vpop.f32.mrf.mxu0  ;;  %v3465_v58 = vpop.permute.xlu0 %3464 }
 0xef7   :  { %v6568_v29 = vmul.f32 0.25, %v2809_v51 }
 0xef8   :  { %3468 = vrot.lane.b32.xlu0 %v6512_v43, %s4969_s29 }
 0xef9   :  { %v2821_v56 = vsel %vm529_vm2, %v6568_v29, -inf }
 0xefa   :  { %4474 = vmatmul.msk.f32.gmra.mxu3 %vm487_vm12, %v3180_v32  ;;  %v6580_v62 = vpop.eup %4830 }
 0xefb   :  { %4605 = vrot.lane.b32.xlu1 %v4604_v54, %s4971_s0  ;;  %v2686_v9 = vsel %vm529_vm2, %v6580_v62, 0.0  ;;  %v6584_v1 = vpop.eup %4832 }
 0xefc   :  { %3337 = vrot.lane.b32.xlu2 %v6512_v43, %s4967_s30  ;;  %v2689_v37 = vsel %vm529_vm2, %v6584_v1, 0.0 }
 0xefe   :  { %4464 = vmatmul.msk.f32.gmra.mxu0 %vm487_vm12, %v6417_v49  ;;  %v2812_v33 = vpop.f32.mrf.mxu0 }
 0xeff   :  { %v6544_v52 = vmul.f32 0.25, %v2812_v33 }
 0xf01   :  { %v2824_v5 = vsel %vm536_vm0, %v6544_v52, -inf }
 0xf02   :  { %4475 = vmatmul.msk.f32.gmra.mxu3 %vm487_vm12, %v3182_v34 }
 0xf03   :  { %4610 = vrot.lane.b32.xlu1 %v4599_v20, %s7187_s4 }
 0xf04   :  { %3466 = vrot.lane.b32.xlu2 %v6532_v50, %s4969_s29  ;;  %s7188_s29 = smov 16  }
 0xf06   :  { %4465 = vmatmul.msk.f32.gmra.mxu0 %vm487_vm12, %v6404_v14 }
 0xf0b   :  { %2855 = vrot.lane.b32.xlu1 %v6365_v10, %s7187_s4 }
 0xf22   :  { %2819 = vmax.xlane.f32.xlu0 %v2818_v24 }
 0xf2a   :  { %2825 = vmax.xlane.f32.xlu0 %v2824_v5 }
 0xf2d   :  { %2544 = vmax.xlane.f32.xlu2 %v2543_v18 }
 0xf3e   :  { %3335 = vrot.lane.b32.xlu0 %v6532_v50, %s4967_s30 }
 0xf45   :  { %2705 = vrot.lane.b32.xlu2 %v6330_v12, %s4971_s0 }
 0xf46   :  { %2986 = vrot.lane.b32.xlu0 %v6365_v10, %s4971_s0 }
 0xf47   :  { %v6557_v7 = vpop.xlane.xlu2 %2950 }
 0xf48   :  { %v2958_v18 = vsub.f32 %v6479_v27, %v6557_v7 }
 0xf4d   :  { %v2539_v26 = vpop.xlane.xlu1 %2538 }
 0xf4e   :  { %3267 = vrot.lane.b32.xlu0 %v6404_v14, %s4971_s0 }
 0xf4f   :  { %v6563_v11 = vpop.xlane.xlu0 %2953 }
 0xf56   :  { %3548 = vrot.lane.b32.xlu0 %v6512_v43, %s4971_s0 }
 0xf57   :  { %v6561_v8 = vpop.xlane.xlu2 %2956  ;;  %v6566_v35 = vpop.xlane.xlu0 %2541 }
 0xf5f   :  { %v3338_v53 = vpop.permute.xlu2 %3337 }
 0xf60   :  { %4480 = vmatpush.xpose.msk.msrb.mxu0 %vm487_vm12, %v3338_v53  ;;  %v2961_v53 = vmul.f32 1.442695, %v2958_v18 }
 0xf65   :  { %v4601_v20 = vpop.permute.xlu1 %4600 }
 0xf66   :  { %v4602_v49 = vunpack.i.l.bf16 %v4601_v20  ;;  %v4603_v59 = vunpack.i.h.bf16 %v4601_v20 }
 0xf67   :  { %v3467_v15 = vpop.permute.xlu2 %3466 }
 0xf6a   :  { %v3469_v10 = vpop.permute.xlu0 %3468 }
 0xf6b   :  { %4490 = vmatpush.xpose.msk.msrb.mxu3 %vm487_vm12, %v3469_v10 }
 0xf6e   :  { %2822 = vmax.xlane.f32.xlu2 %v2821_v56 }
 0xf6f   :  { %4491 = vmatpush.xpose.msk.msrb.mxu3 %vm487_vm12, %v3467_v15 }
 0xf73   :  { %4492 = vmatpush.xpose.msk.msrb.mxu3 %vm487_vm12, %v3465_v58  ;;  %v4606_v58 = vpop.permute.xlu1 %4605  ;;  %v3087_v16 = vpop.f32.mrf.mxu0 }
 0xf74   :  { %v4607_v7 = vunpack.i.l.bf16 %v4606_v58 }
 0xf76   :  { %4493 = vmatmul.msk.f32.vlgmr.msrb.gmra.mxu3 %vm487_vm12, %v3459_v13 }
 0xf7b   :  { %v4611_v18 = vpop.permute.xlu1 %4610 }
 0xf80   :  { %2687 = vadd.xlane.f32.xlu0 %v2686_v9 }
 0xf86   :  { %2574 = vrot.lane.b32.xlu2 %v6330_v12, %s7187_s4  ;;  %v2679_v12 = vsub.f32 %v6452_v30, %v2676_v55  ;;  %v2546_v30 = vsub.f32 %v6484_v42, %v2539_v26  ;;  %v2547_v42 = vsub.f32 %v6494_v19, %v6566_v35  ;;  %v2959_v19 = vsub.f32 %v6486_v21, %v6563_v11  ;;  %v3218_v26 = vpop.f32.mrf.mxu3 }
 0xf87   :  { %v4608_v35 = vunpack.i.h.bf16 %v4606_v58 }
 0xf88   :  { %2690 = vadd.xlane.f32.xlu0 %v2689_v37  ;;  %v2684_v0 = vmul.f32 1.442695, %v2679_v12  ;;  %v2549_v5 = vmul.f32 1.442695, %v2546_v30  ;;  %v2551_v27 = vmul.f32 1.442695, %v2547_v42 }
 0xf89   :  { %v2963_v13 = vmul.f32 1.442695, %v2959_v19  ;;  %v2856_v19 = vpop.permute.xlu1 %2855 }
 0xf8e   :  { %4615 = vrot.lane.b32.xlu2 %v6592_v23, %s4971_s0  ;;  %v3221_v20 = vpop.f32.mrf.mxu3 }
 0xf95   :  { %v2820_v17 = vpop.xlane.xlu0 %2819 }
 0xf96   :  { %4620 = vrot.lane.b32.xlu2 %v4604_v54, %s7187_s4  ;;  %v2827_v54 = vsub.f32 %v6540_v6, %v2820_v17  ;;  %v6643_v17 = vmul.f32 0.25, %v3087_v16  ;;  %v6686_v16 = vmul.f32 0.25, %v3218_v26 }
 0xf98   :  { %v2830_v24 = vmul.f32 1.442695, %v2827_v54  ;;  %v3224_v54 = vpop.f32.mrf.mxu3 }
 0xf9d   :  { %v2826_v32 = vpop.xlane.xlu0 %2825 }
 0xf9e   :  { %v2829_v11 = vsub.f32 %v6544_v52, %v2826_v32 }
 0xfa0   :  { %v2545_v44 = vpop.xlane.xlu2 %2544  ;;  %v2834_v55 = vmul.f32 1.442695, %v2829_v11 }
 0xfa1   :  { %v2548_v47 = vsub.f32 %v2536_v63, %v2545_v44  ;;  %v3090_v44 = vpop.f32.mrf.mxu0 }
 0xfa3   :  { %v2553_v34 = vmul.f32 1.442695, %v2548_v47  ;;  %v3099_v47 = vsel %vm529_vm2, %v6643_v17, -inf }
 0xfa5   :  { %4834 = vpow2.f32 %v2553_v34  ;;  %v6651_v34 = vmul.f32 0.25, %v3090_v44 }
 0xfa6   :  { %4836 = vpow2.f32 %v2684_v0 }
 0xfa7   :  { %4838 = vpow2.f32 %v2830_v24 }
 0xfa8   :  { %v2706_v3 = vpop.permute.xlu2 %2705  ;;  %4840 = vpow2.f32 %v2549_v5  ;;  %v2960_v5 = vsub.f32 %v6496_v38, %v6561_v8  ;;  %v6677_v8 = vpack.i.bf16 %v6425_v31, %v6532_v50 }
 0xfa9   :  { %4436 = vmatpush.msk.msrb.mxu1 %vm581_vm6, %v2706_v3  ;;  %4842 = vpow2.f32 %v2961_v53  ;;  %v3093_v32 = vpop.f32.mrf.mxu0  ;;  %v3102_v3 = vsel %vm529_vm2, %v6651_v34, -inf }
 0xfaa   :  { %4844 = vpow2.f32 %v2551_v27  ;;  %v2965_v58 = vmul.f32 1.442695, %v2960_v5 }
 0xfab   :  { %v6599_v61 = vpop.eup %4834  ;;  %2734 = vmatpush.msrb.mxu1 %v4602_v49  ;;  %4846 = vpow2.f32 %v2963_v13  ;;  %v6657_v49 = vmul.f32 0.25, %v3093_v32 }
 0xfac   :  { %v2561_v51 = vsel %vm536_vm0, %v6599_v61, 0.0  ;;  %v6605_v63 = vpop.eup %4836  ;;  %4848 = vpow2.f32 %v2834_v55 }
 0xfad   :  { %2562 = vadd.xlane.f32.xlu0 %v2561_v51  ;;  %2735 = vmatpush.msrb.mxu1 %v4603_v59  ;;  %v2692_v6 = vsel %vm536_vm0, %v6605_v63, 0.0  ;;  %v6617_v56 = vpop.eup %4838  ;;  %v3105_v59 = vsel %vm536_vm0, %v6657_v49, -inf  ;;  %v6661_v51 = vmul.f32 0.25, %v3224_v54 }
 0xfae   :  { %v6620_v60 = vpop.eup %4840  ;;  %v2836_v15 = vsel %vm529_vm2, %v6617_v56, 0.0 }
 0xfaf   :  { %v2555_v46 = vsel %vm529_vm2, %v6620_v60, 0.0  ;;  %v6630_v2 = vpop.eup %4842  ;;  %v3236_v42 = vsel %vm536_vm0, %v6661_v51, -inf }
 0xfb0   :  { %v3336_v33 = vpop.permute.xlu0 %3335  ;;  %v6632_v21 = vpop.eup %4844  ;;  %v2967_v9 = vsel %vm529_vm2, %v6630_v2, 0.0 }
 0xfb1   :  { %4481 = vmatpush.xpose.msk.msrb.mxu0 %vm487_vm12, %v3336_v33  ;;  %v2558_v37 = vsel %vm529_vm2, %v6632_v21, 0.0 }
 0xfb5   :  { %2693 = vadd.xlane.f32.xlu0 %v2692_v6  ;;  %4482 = vmatpush.xpose.msk.msrb.mxu0 %vm487_vm12, %v3334_v45  ;;  %v6641_v45 = vpop.eup %4846 }
 0xfb6   :  { %v2970_v52 = vsel %vm529_vm2, %v6641_v45, 0.0  ;;  %v6649_v12 = vpop.eup %4848 }
 0xfb7   :  { %v2842_v0 = vsel %vm536_vm0, %v6649_v12, 0.0 }
 0xfb8   :  { %v2987_v10 = vpop.permute.xlu0 %2986  ;;  %4483 = vmatmul.msk.f32.vlgmr.msrb.gmra.mxu0 %vm487_vm12, %v6425_v31 }
 0xfb9   :  { %4456 = vmatpush.msk.msra.mxu1 %vm581_vm6, %v2987_v10  ;;  %v4612_v10 = vunpack.i.l.bf16 %v4611_v18 }
 0xfbb   :  { %3015 = vmatpush.msra.mxu1 %v4607_v7 }
 0xfbd   :  { %2837 = vadd.xlane.f32.xlu0 %v2836_v15  ;;  %3016 = vmatpush.msra.mxu1 %v4608_v35 }
 0xfbf   :  { %2556 = vadd.xlane.f32.xlu2 %v2555_v46 }
 0xfc0   :  { %4484 = vmatmul.msk.f32.gmra.mxu0 %vm487_vm12, %v6532_v50  ;;  %v3268_v30 = vpop.permute.xlu0 %3267 }
 0xfc5   :  { %2968 = vadd.xlane.f32.xlu0 %v2967_v9 }
 0xfc7   :  { %2559 = vadd.xlane.f32.xlu2 %v2558_v37 }
 0xfc8   :  { %4485 = vmatmul.msk.f32.gmra.mxu0 %vm487_vm12, %v6512_v43  ;;  %v6669_v27 = vpop.permute.xlu0 %3548 }
 0xfcd   :  { %2971 = vadd.xlane.f32.xlu0 %v2970_v52  ;;  %v3230_v52 = vsel %vm529_vm2, %v6686_v16, -inf }
 0xfcf   :  { %3100 = vmax.xlane.f32.xlu2 %v3099_v47 }
 0xfd5   :  { %2843 = vadd.xlane.f32.xlu0 %v2842_v0  ;;  %v6693_v0 = vmul.f32 0.25, %v3221_v20 }
 0xfd7   :  { %3103 = vmax.xlane.f32.xlu2 %v3102_v3  ;;  %v3233_v3 = vsel %vm529_vm2, %v6693_v0, -inf }
 0xfdd   :  { %3106 = vmax.xlane.f32.xlu0 %v3105_v59 }
 0xfe1   :  { %v2823_v24 = vpop.xlane.xlu2 %2822 }
 0xfe2   :  { %v2828_v33 = vsub.f32 %v6568_v29, %v2823_v24  ;;  %v4613_v29 = vunpack.i.h.bf16 %v4611_v18 }
 0xfe4   :  { %v2832_v6 = vmul.f32 1.442695, %v2828_v33 }
 0xfe5   :  { %3237 = vmax.xlane.f32.xlu0 %v3236_v42 }
 0xfe6   :  { %4850 = vpow2.f32 %v2832_v6 }
 0xfe7   :  { %4852 = vpow2.f32 %v2965_v58 }
 0xfe9   :  { %v2575_v53 = vpop.permute.xlu2 %2574 }
 0xfea   :  { %4426 = vmatpush.msk.msra.mxu2 %vm581_vm6, %v2575_v53 }
 0xfec   :  { %v6671_v7 = vpop.eup %4850  ;;  %2603 = vmatpush.msra.mxu2 %v4612_v10 }
 0xfed   :  { %v2839_v38 = vsel %vm529_vm2, %v6671_v7, 0.0  ;;  %v6682_v15 = vpop.eup %4852 }
 0xfee   :  { %2840 = vadd.xlane.f32.xlu1 %v2839_v38  ;;  %2604 = vmatpush.msra.mxu2 %v4613_v29  ;;  %v2973_v13 = vsel %vm536_vm0, %v6682_v15, 0.0 }
 0xfef   :  { %4625 = vrot.lane.b32.xlu2 %v6677_v8, %s4971_s0 }
 0xff0   :  { %4446 = vmatpush.msk.msrb.mxu2 %vm581_vm6, %v2856_v19 }
 0xff1   :  { %v4616_v35 = vpop.permute.xlu2 %4615 }
 0xff2   :  { %v4617_v47 = vunpack.i.l.bf16 %v4616_v35  ;;  %v4618_v26 = vunpack.i.h.bf16 %v4616_v35 }
 0xff3   :  { %v2688_v46 = vpop.xlane.xlu0 %2687 }
 0xff4   :  { %4854 = vrcp.f32 %v2688_v46 }
 0xff6   :  { %2974 = vadd.xlane.f32.xlu1 %v2973_v13 }
 0xff9   :  { %v4621_v31 = vpop.permute.xlu2 %4620  ;;  %v3499_v58 = vpop.f32.mrf.mxu3 }
 0xffa   :  { %v4855_v11 = vpop.eup %4854  ;;  %v4622_v9 = vunpack.i.l.bf16 %v4621_v31  ;;  %v4623_v44 = vunpack.i.h.bf16 %v4621_v31 }
 0xffb   :  { %v2698_v37 = vmul.f32 %v4855_v11, %v6580_v62  ;;  %v2691_v55 = vpop.xlane.xlu0 %2690 }
 0xffc   :  { %4856 = vrcp.f32 %v2691_v55  ;;  %2884 = vmatpush.msrb.mxu2 %v4622_v9 }
 0xffd   :  { %4437 = vmatmul.msk.f32.vlgmr.msrb.gmra.mxu1 %vm529_vm2, %v2698_v37 }
 0xffe   :  { %4476 = vmatpush.msk.msrb.mxu1 %vm581_vm6, %v3268_v30  ;;  %3231 = vmax.xlane.f32.xlu1 %v3230_v52 }
 0xfff   :  { %2885 = vmatpush.msrb.mxu2 %v4623_v44 }
0x1000   :  { %3296 = vmatpush.msrb.mxu1 %v4617_v47 }
0x1002   :  { %v4857_v32 = vpop.eup %4856  ;;  %3297 = vmatpush.msrb.mxu1 %v4618_v26 }
0x1003   :  { %v2699_v62 = vmul.f32 %v4857_v32, %v6584_v1 }
0x1005   :  { %4438 = vmatmul.msk.f32.gmra.mxu1 %vm529_vm2, %v2699_v62 }
0x1006   :  { %3234 = vmax.xlane.f32.xlu1 %v3233_v3 }
0x1020   :  { %v2563_v59 = vpop.xlane.xlu0 %2562 }
0x1028   :  { %v2694_v54 = vpop.xlane.xlu0 %2693 }
0x1029   :  { %4858 = vrcp.f32 %v2694_v54 }
0x102f   :  { %v4859_v30 = vpop.eup %4858 }
0x1030   :  { %v2838_v24 = vpop.xlane.xlu0 %2837  ;;  %v2700_v33 = vmul.f32 %v4859_v30, %v6605_v63  ;;  %v6706_v63 = vmul.f32 0.25, %v3499_v58 }
0x1032   :  { %v2557_v5 = vpop.xlane.xlu2 %2556  ;;  %4439 = vmatmul.msk.f32.gmra.mxu1 %vm529_vm2, %v2700_v33  ;;  %v3511_v35 = vsel %vm529_vm2, %v6706_v63, -inf }
0x1033   :  { %4860 = vrcp.f32 %v2557_v5 }
0x1035   :  { %v3368_v20 = vpop.f32.mrf.mxu0 }
0x1036   :  { %v6701_v18 = vmul.f32 0.25, %v3368_v20 }
0x1038   :  { %v2969_v1 = vpop.xlane.xlu0 %2968  ;;  %v3380_v6 = vsel %vm529_vm2, %v6701_v18, -inf }
0x1039   :  { %v4861_v42 = vpop.eup %4860  ;;  %4862 = vrcp.f32 %v2969_v1  ;;  %3381 = vmax.xlane.f32.xlu1 %v3380_v6 }
0x103a   :  { %v2567_v53 = vmul.f32 %v4861_v42, %v6620_v60  ;;  %v2560_v10 = vpop.xlane.xlu2 %2559 }
0x103b   :  { %4864 = vrcp.f32 %v2560_v10 }
0x103c   :  { %4427 = vmatmul.msk.f32.vlgmr.msra.gmra.mxu2 %vm529_vm2, %v2567_v53  ;;  %4866 = vrcp.f32 %v2563_v59 }
0x103f   :  { %v4863_v29 = vpop.eup %4862 }
0x1040   :  { %v2979_v38 = vmul.f32 %v4863_v29, %v6630_v2  ;;  %v2972_v19 = vpop.xlane.xlu0 %2971 }
0x1041   :  { %v4865_v46 = vpop.eup %4864  ;;  %4868 = vrcp.f32 %v2972_v19  ;;  %3512 = vmax.xlane.f32.xlu1 %v3511_v35 }
0x1042   :  { %v3101_v13 = vpop.xlane.xlu2 %3100  ;;  %4457 = vmatmul.msk.f32.vlgmr.msra.gmra.mxu1 %vm529_vm2, %v2979_v38  ;;  %v2568_v60 = vmul.f32 %v4865_v46, %v6632_v21  ;;  %v4867_v11 = vpop.eup %4866 }
0x1043   :  { %v3108_v31 = vsub.f32 %v6643_v17, %v3101_v13  ;;  %4496 = vmatpush.msk.msra.mxu1 %vm581_vm6, %v6669_v27  ;;  %v2569_v21 = vmul.f32 %v4867_v11, %v6599_v61 }
0x1044   :  { %4428 = vmatmul.msk.f32.gmra.mxu2 %vm529_vm2, %v2568_v60 }
0x1045   :  { %v3111_v2 = vmul.f32 1.442695, %v3108_v31 }
0x1047   :  { %v4869_v9 = vpop.eup %4868  ;;  %4870 = vpow2.f32 %v3111_v2 }
0x1048   :  { %v2844_v37 = vpop.xlane.xlu0 %2843  ;;  %v2980_v55 = vmul.f32 %v4869_v9, %v6641_v45  ;;  %4872 = vrcp.f32 %v2838_v24 }
0x104a   :  { %v6719_v44 = vpop.xlane.xlu2 %3103  ;;  %4458 = vmatmul.msk.f32.gmra.mxu1 %vm529_vm2, %v2980_v55 }
0x104c   :  { %4429 = vmatmul.msk.f32.gmra.mxu2 %vm529_vm2, %v2569_v21 }
0x104d   :  { %v6724_v17 = vpop.eup %4870 }
0x104e   :  { %v3117_v27 = vsel %vm529_vm2, %v6724_v17, 0.0  ;;  %v4873_v52 = vpop.eup %4872 }
0x104f   :  { %3118 = vadd.xlane.f32.xlu1 %v3117_v27  ;;  %v2848_v26 = vmul.f32 %v4873_v52, %v6617_v56 }
0x1050   :  { %v3107_v47 = vpop.xlane.xlu0 %3106 }
0x1051   :  { %v3110_v59 = vsub.f32 %v6657_v49, %v3107_v47 }
0x1052   :  { %v4626_v45 = vpop.permute.xlu2 %4625 }
0x1053   :  { %v4627_v32 = vunpack.i.l.bf16 %v4626_v45  ;;  %v4628_v62 = vunpack.i.h.bf16 %v4626_v45  ;;  %v3115_v30 = vmul.f32 1.442695, %v3110_v59 }
0x1054   :  { %4447 = vmatmul.msk.f32.vlgmr.msrb.gmra.mxu2 %vm529_vm2, %v2848_v26 }
0x1055   :  { %3577 = vmatpush.msra.mxu1 %v4627_v32 }
0x1057   :  { %3578 = vmatpush.msra.mxu1 %v4628_v62 }
0x1058   :  { %v3238_v61 = vpop.xlane.xlu0 %3237 }
0x1059   :  { %v3241_v3 = vsub.f32 %v6661_v51, %v3238_v61 }
0x105b   :  { %v3246_v54 = vmul.f32 1.442695, %v3241_v3 }
0x105d   :  { %4874 = vpow2.f32 %v3246_v54 }
0x1061   :  { %v2841_v24 = vpop.xlane.xlu1 %2840 }
0x1062   :  { %4876 = vrcp.f32 %v2841_v24 }
0x1063   :  { %v6732_v33 = vpop.eup %4874  ;;  %4878 = vpow2.f32 %v3115_v30 }
0x1064   :  { %v3254_v56 = vsel %vm536_vm0, %v6732_v33, 0.0  ;;  %4880 = vrcp.f32 %v2844_v37 }
0x1065   :  { %3255 = vadd.xlane.f32.xlu2 %v3254_v56 }
0x1068   :  { %v4877_v5 = vpop.eup %4876 }
0x1069   :  { %v6736_v20 = vpop.eup %4878  ;;  %v2975_v1 = vpop.xlane.xlu1 %2974  ;;  %v2849_v51 = vmul.f32 %v4877_v5, %v6671_v7 }
0x106a   :  { %4882 = vrcp.f32 %v2975_v1  ;;  %v3123_v49 = vsel %vm536_vm0, %v6736_v20, 0.0  ;;  %v4881_v6 = vpop.eup %4880 }
0x106b   :  { %4448 = vmatmul.msk.f32.gmra.mxu2 %vm529_vm2, %v2849_v51  ;;  %v2850_v53 = vmul.f32 %v4881_v6, %v6649_v12 }
0x106d   :  { %3124 = vadd.xlane.f32.xlu2 %v3123_v49 }
0x1070   :  { %v4883_v42 = vpop.eup %4882 }
0x1071   :  { %v3232_v58 = vpop.xlane.xlu1 %3231  ;;  %v2981_v10 = vmul.f32 %v4883_v42, %v6682_v15 }
0x1072   :  { %v3239_v29 = vsub.f32 %v6686_v16, %v3232_v58 }
0x1073   :  { %4449 = vmatmul.msk.f32.gmra.mxu2 %vm529_vm2, %v2850_v53  ;;  %4459 = vmatmul.msk.f32.gmra.mxu1 %vm529_vm2, %v2981_v10 }
0x1074   :  { %v3242_v7 = vmul.f32 1.442695, %v3239_v29 }
0x1076   :  { %4884 = vpow2.f32 %v3242_v7 }
0x1079   :  { %v3235_v38 = vpop.xlane.xlu1 %3234 }
0x107a   :  { %v3240_v19 = vsub.f32 %v6693_v0, %v3235_v38  ;;  %v2737_v12 = vpop.f32.mrf.mxu1  ;;  %v3109_v0 = vsub.f32 %v6651_v34, %v6719_v44 }
0x107c   :  { %v4885_v35 = vpop.eup %4884  ;;  %v3244_v46 = vmul.f32 1.442695, %v3240_v19  ;;  %v3113_v2 = vmul.f32 1.442695, %v3109_v0 }
0x107d   :  { %v3248_v13 = vsel %vm529_vm2, %v4885_v35, 0.0 }
0x107e   :  { %4886 = vpow2.f32 %v3244_v46  ;;  %3249 = vadd.xlane.f32.xlu0 %v3248_v13 }
0x107f   :  { %4888 = vpow2.f32 %v3113_v2 }
0x1082   :  { %v2740_v16 = vpop.f32.mrf.mxu1 }
0x1084   :  { %v4887_v60 = vpop.eup %4886 }
0x1085   :  { %4635 = vrot.lane.b32.xlu2 %v6677_v8, %s7187_s4  ;;  %v3251_v15 = vsel %vm529_vm2, %v4887_v60, 0.0  ;;  %v6761_v21 = vpop.eup %4888 }
0x1086   :  { %3252 = vadd.xlane.f32.xlu1 %v3251_v15  ;;  %v4502_v15 = vld [vmem:[%s7149_s7 + $0x30] sm:$0xff] }
0x108d   :  { %2751 = vrot.lane.b32.xlu2 %v2740_v16, %s7188_s29 }
0x1092   :  { %3136 = vrot.lane.b32.xlu0 %v6404_v14, %s7187_s4 }
0x109f   :  { %4630 = vrot.lane.b32.xlu1 %v6592_v23, %s7187_s4  ;;  %v3120_v23 = vsel %vm529_vm2, %v6761_v21, 0.0 }
0x10ac   :  { %v3382_v31 = vpop.xlane.xlu1 %3381 }
0x10ad   :  { %v3389_v9 = vsub.f32 %v6701_v18, %v3382_v31  ;;  %v4501_v31 = vld [vmem:[%s7149_s7 + $0x28] sm:$0xff] }
0x10af   :  { %v2743_v37 = vpop.f32.mrf.mxu1  ;;  %v3392_v14 = vmul.f32 1.442695, %v3389_v9 }
0x10b4   :  { %v3513_v11 = vpop.xlane.xlu1 %3512 }
0x10b5   :  { %v3520_v8 = vsub.f32 %v6706_v63, %v3513_v11  ;;  %v4500_v11 = vld [vmem:[%s7149_s7 + $0x20] sm:$0xff] }
0x10b7   :  { %v3523_v55 = vmul.f32 1.442695, %v3520_v8 }
0x10b9   :  { %4890 = vpow2.f32 %v3523_v55 }
0x10ba   :  { %4892 = vpow2.f32 %v3392_v14 }
0x10bc   :  { %3121 = vadd.xlane.f32.xlu0 %v3120_v23 }
0x10bf   :  { %v3018_v34 = vpop.f32.mrf.mxu1  ;;  %v6765_v44 = vpop.eup %4890 }
0x10c0   :  { %3030 = vrot.lane.b32.xlu2 %v3018_v34, %s7188_s29  ;;  %v3529_v63 = vsel %vm529_vm2, %v6765_v44, 0.0  ;;  %v6770_v18 = vpop.eup %4892  ;;  %v6780_v26 = vpop.f32.mrf.mxu2 }
0x10c1   :  { %v3398_v27 = vsel %vm529_vm2, %v6770_v18, 0.0 }
0x10c2   :  { %v3119_v3 = vpop.xlane.xlu1 %3118 }
0x10c4   :  { %3530 = vadd.xlane.f32.xlu0 %v3529_v63 }
0x10c7   :  { %v3021_v32 = vpop.f32.mrf.mxu1 }
0x10c8   :  { %v2609_v62 = vpop.f32.mrf.mxu2 }
0x10c9   :  { %3399 = vadd.xlane.f32.xlu1 %v3398_v27 }
0x10d0   :  { %v2612_v6 = vpop.f32.mrf.mxu2 }
0x10d8   :  { %v3256_v52 = vpop.xlane.xlu2 %3255  ;;  %3417 = vrot.lane.b32.xlu0 %v6512_v43, %s7187_s4  ;;  %v2887_v7 = vpop.f32.mrf.mxu2 }
0x10e0   :  { %v3125_v47 = vpop.xlane.xlu2 %3124  ;;  %3462 = vrot.lane.b32.xlu0 %v6512_v43, %s4970_s2 }
0x10e2   :  { %3460 = vrot.lane.b32.xlu1 %v6532_v50, %s4970_s2 }
0x10e8   :  { %v6782_v45 = vpop.permute.xlu2 %4635  ;;  %2749 = vrot.lane.b32.xlu0 %v2737_v12, %s7188_s29  ;;  %v4503_v12 = vld [vmem:[%s7149_s7 + $0x38] sm:$0xff] }
0x10e9   :  { %3665 = vmatpush.msra.mxu0 %v4503_v12 }
0x10ea   :  { %3032 = vrot.lane.b32.xlu1 %v3021_v32, %s7188_s29 }
0x10eb   :  { %3666 = vmatpush.msra.mxu0 %v4502_v15 }
0x10ed   :  { %3667 = vmatpush.msra.mxu0 %v4501_v31 }
0x10ef   :  { %3668 = vmatpush.msra.mxu0 %v4500_v11 }
0x10f0   :  { %v2752_v61 = vpop.permute.xlu2 %2751  ;;  %2753 = vrot.lane.b32.xlu0 %v2743_v37, %s7188_s29  ;;  %v3024_v50 = vpop.f32.mrf.mxu1  ;;  %v4638_v37 = vunpack.i.h.bf16 %v6782_v45 }
0x10f1   :  { %v2759_v59 = vsel %vm487_vm12, %v2609_v62, %v2752_v61  ;;  %v3250_v43 = vpop.xlane.xlu0 %3249 }
0x10f2   :  { %2762 = vst.msk [vmem:[#allocation2 + $0x8] sm:$0xff] %vm168_vm1, %v2759_v59  ;;  %4894 = vrcp.f32 %v3250_v43 }
0x10f8   :  { %v4895_v54 = vpop.eup %4894  ;;  %3034 = vrot.lane.b32.xlu0 %v3024_v50, %s7188_s29 }
0x10f9   :  { %v3260_v30 = vmul.f32 %v4895_v54, %v4885_v35  ;;  %v3253_v24 = vpop.xlane.xlu1 %3252  ;;  %v3608_v62 = vld [vmem:[#allocation2 + $0x8] sm:$0xff] }
0x10fa   :  { %4896 = vrcp.f32 %v3253_v24 }
0x10fb   :  { %4477 = vmatmul.msk.f32.vlgmr.msrb.gmra.mxu1 %vm529_vm2, %v3260_v30  ;;  %4898 = vrcp.f32 %v3256_v52  ;;  %v3371_v30 = vpop.f32.mrf.mxu0 }
0x10fc   :  { %4900 = vrcp.f32 %v3119_v3 }
0x1100   :  { %v4897_v56 = vpop.eup %4896 }
0x1101   :  { %v3261_v5 = vmul.f32 %v4897_v56, %v4887_v60  ;;  %v4899_v51 = vpop.eup %4898 }
0x1102   :  { %v3262_v49 = vmul.f32 %v4899_v51, %v6732_v33  ;;  %v4901_v58 = vpop.eup %4900 }
0x1103   :  { %4478 = vmatmul.msk.f32.gmra.mxu1 %vm529_vm2, %v3261_v5  ;;  %v3129_v29 = vmul.f32 %v4901_v58, %v6724_v17  ;;  %v3374_v51 = vpop.f32.mrf.mxu0 }
0x1104   :  { %v3137_v1 = vpop.permute.xlu0 %3136  ;;  %v3379_v58 = vmul.f32 0.25, %v3374_v51 }
0x1105   :  { %4466 = vmatpush.msk.msra.mxu2 %vm581_vm6, %v3137_v1 }
0x110b   :  { %4479 = vmatmul.msk.f32.gmra.mxu1 %vm529_vm2, %v3262_v49 }
0x1111   :  { %v4631_v42 = vpop.permute.xlu1 %4630 }
0x1112   :  { %v4632_v53 = vunpack.i.l.bf16 %v4631_v42  ;;  %v4633_v10 = vunpack.i.h.bf16 %v4631_v42 }
0x1114   :  { %3165 = vmatpush.msra.mxu2 %v4632_v53  ;;  %v6848_v53 = vld [vmem:[%s7150_s8 + $0x1] ss:$0 sm:$0xff] }
0x1116   :  { %3166 = vmatpush.msra.mxu2 %v4633_v10 }
0x1117   :  { %4467 = vmatmul.msk.f32.vlgmr.msra.gmra.mxu2 %vm529_vm2, %v3129_v29 }
0x111a   :  { %v3031_v38 = vpop.permute.xlu2 %3030 }
0x111b   :  { %v3039_v19 = vsel %vm487_vm12, %v2887_v7, %v3031_v38  ;;  %v3378_v38 = vmul.f32 0.25, %v3371_v30 }
0x111c   :  { %3042 = vst.msk [vmem:[#allocation2 + $0x11] sm:$0xff] %vm168_vm1, %v3039_v19 }
0x112f   :  { %v3122_v33 = vpop.xlane.xlu0 %3121 }
0x1130   :  { %4902 = vrcp.f32 %v3122_v33  ;;  %v3386_v33 = vsel %vm536_vm0, %v3379_v58, -inf }
0x1131   :  { %4904 = vrcp.f32 %v3125_v47 }
0x1136   :  { %v4903_v35 = vpop.eup %4902 }
0x1137   :  { %v3531_v46 = vpop.xlane.xlu0 %3530  ;;  %v3130_v13 = vmul.f32 %v4903_v35, %v6761_v21  ;;  %v4905_v17 = vpop.eup %4904 }
0x1138   :  { %4906 = vrcp.f32 %v3531_v46  ;;  %v3131_v0 = vmul.f32 %v4905_v17, %v6736_v20  ;;  %v4637_v20 = vunpack.i.l.bf16 %v6782_v45 }
0x1139   :  { %4468 = vmatmul.msk.f32.gmra.mxu2 %vm529_vm2, %v3130_v13  ;;  %v3383_v13 = vsel %vm529_vm2, %v3378_v38, -inf }
0x113c   :  { %v3400_v2 = vpop.xlane.xlu1 %3399 }
0x113d   :  { %4908 = vrcp.f32 %v3400_v2 }
0x113e   :  { %v4907_v60 = vpop.eup %4906 }
0x113f   :  { %v3541_v16 = vmul.f32 %v4907_v60, %v6765_v44  ;;  %v2890_v44 = vpop.f32.mrf.mxu2 }
0x1141   :  { %4469 = vmatmul.msk.f32.gmra.mxu2 %vm529_vm2, %v3131_v0  ;;  %4497 = vmatmul.msk.f32.vlgmr.msra.gmra.mxu1 %vm529_vm2, %v3541_v16 }
0x1143   :  { %v4909_v9 = vpop.eup %4908 }
0x1144   :  { %v3410_v55 = vmul.f32 %v4909_v9, %v6770_v18 }
0x1147   :  { %v2893_v45 = vpop.f32.mrf.mxu2 }
0x114a   :  { %v3418_v8 = vpop.permute.xlu0 %3417 }
0x114b   :  { %4486 = vmatpush.msk.msrb.mxu2 %vm581_vm6, %v3418_v8 }
0x114d   :  { %3446 = vmatpush.msrb.mxu2 %v4637_v20 }
0x114f   :  { %3447 = vmatpush.msrb.mxu2 %v4638_v37 }
0x1150   :  { %4487 = vmatmul.msk.f32.vlgmr.msrb.gmra.mxu2 %vm529_vm2, %v3410_v55 }
0x1152   :  { %v3463_v21 = vpop.permute.xlu0 %3462 }
0x1154   :  { %v3461_v14 = vpop.permute.xlu1 %3460 }
0x1155   :  { %4494 = vmatmul.msk.f32.gmra.mxu3 %vm487_vm12, %v3461_v14 }
0x115a   :  { %v2750_v23 = vpop.permute.xlu0 %2749 }
0x115b   :  { %v2758_v34 = vsel %vm487_vm12, %v6780_v26, %v2750_v23 }
0x115c   :  { %2761 = vst.msk [vmem:[#allocation2] sm:$0xff] %vm168_vm1, %v2758_v34  ;;  %v3033_v63 = vpop.permute.xlu1 %3032 }
0x115d   :  { %v3040_v27 = vsel %vm487_vm12, %v2890_v44, %v3033_v63  ;;  %4495 = vmatmul.msk.f32.gmra.mxu3 %vm487_vm12, %v3463_v21 }
0x115e   :  { %3043 = vst.msk [vmem:[#allocation2 + $0x19] sm:$0xff] %vm168_vm1, %v3040_v27 }
0x1162   :  { %v2754_v18 = vpop.permute.xlu0 %2753 }
0x1163   :  { %v2760_v52 = vsel %vm487_vm12, %v2612_v6, %v2754_v18  ;;  %v3607_v47 = vld [vmem:[#allocation2] sm:$0xff] }
0x1164   :  { %2763 = vst.msk [vmem:[#allocation2 + $0x10] sm:$0x1] %vm758_vm15, %v2760_v52  ;;  %4505 = vmatmul.msk.f32.vlgmr.msra.gmra.mxu0 %vm168_vm1, %v3607_v47 }
0x1165   :  { %v3610_v59 = vld [vmem:[#allocation2 + $0x18] sm:$0xff] }
0x116a   :  { %v3035_v26 = vpop.permute.xlu0 %3034 }
0x116b   :  { %v3041_v32 = vsel %vm487_vm12, %v2893_v45, %v3035_v26  ;;  %v3609_v61 = vld [vmem:[#allocation2 + $0x10] sm:$0xff] }
0x116c   :  { %3044 = vst.msk [vmem:[#allocation2 + $0x21] sm:$0x1] %vm758_vm15, %v3041_v32  ;;  %4506 = vmatmul.msk.f32.gmra.mxu0 %vm168_vm1, %v3608_v62 }
0x1174   :  { %4507 = vmatmul.msk.f32.gmra.mxu0 %vm168_vm1, %v3609_v61 }
0x1178   :  { %v3299_v3 = vpop.f32.mrf.mxu1 }
0x1179   :  { %3311 = vrot.lane.b32.xlu2 %v3299_v3, %s7188_s29 }
0x117c   :  { %4508 = vmatmul.msk.f32.gmra.mxu0 %vm168_vm1, %v3610_v59 }
0x1180   :  { %v3302_v43 = vpop.f32.mrf.mxu1 }
0x1181   :  { %3313 = vrot.lane.b32.xlu1 %v3302_v43, %s7188_s29 }
0x1188   :  { %v3305_v50 = vpop.f32.mrf.mxu1 }
0x1189   :  { %3315 = vrot.lane.b32.xlu0 %v3305_v50, %s7188_s29 }
0x119a   :  { %v3168_v24 = vpop.f32.mrf.mxu2 }
0x11bc   :  { %v3171_v60 = vpop.f32.mrf.mxu2 }
0x11be   :  { %v3580_v54 = vpop.f32.mrf.mxu1 }
0x11bf   :  { %3592 = vrot.lane.b32.xlu2 %v3580_v54, %s7188_s29 }
0x11d3   :  { %v3312_v56 = vpop.permute.xlu2 %3311 }
0x11d4   :  { %v3320_v5 = vsel %vm487_vm12, %v3168_v24, %v3312_v56 }
0x11d5   :  { %3323 = vst.msk [vmem:[#allocation2 + $0x22] sm:$0xff] %vm168_vm1, %v3320_v5 }
0x11d8   :  { %v3502_v1 = vpop.f32.mrf.mxu3 }
0x11d9   :  { %v3509_v49 = vmul.f32 0.25, %v3502_v1 }
0x11db   :  { %v3514_v6 = vsel %vm529_vm2, %v3509_v49, -inf }
0x11dc   :  { %3515 = vmax.xlane.f32.xlu1 %v3514_v6  ;;  %v3611_v42 = vld [vmem:[#allocation2 + $0x20] sm:$0xff] }
0x11dd   :  { %4509 = vmatmul.msk.f32.gmra.mxu0 %vm168_vm1, %v3611_v42 }
0x11e0   :  { %v3505_v10 = vpop.f32.mrf.mxu3 }
0x11e1   :  { %v3510_v29 = vmul.f32 0.25, %v3505_v10  ;;  %v3670_v7 = vpop.f32.mrf.mxu0 }
0x11e2   :  { %v3671_v19 = vadd.f32 %v6848_v53, %v3670_v7 }
0x11e3   :  { %v3517_v35 = vsel %vm536_vm0, %v3510_v29, -inf }
0x11e4   :  { %3387 = vmax.xlane.f32.xlu1 %v3386_v33  ;;  %3518 = vmax.xlane.f32.xlu0 %v3517_v35  ;;  %v6854_v46 = vadd.f32 %v3671_v19, %v6139_v36  ;;  %v3174_v36 = vpop.f32.mrf.mxu2 }
0x11e6   :  { %v3710_v12 = vsel %vm168_vm1, %v6854_v46, 0.0 }
0x11e8   :  { %3384 = vmax.xlane.f32.xlu2 %v3383_v13 }
0x11e9   :  { %v3673_v17 = vpop.f32.mrf.mxu0 }
0x11ea   :  { %v3674_v32 = vadd.f32 %v6848_v53, %v3673_v17 }
0x11ec   :  { %3711 = vadd.xlane.f32.xlu1 %v3710_v12  ;;  %v3449_v55 = vpop.f32.mrf.mxu2  ;;  %v3698_v43 = vadd.f32 %v3674_v32, %v6147_v57  ;;  %v4518_v32 = vld [vmem:[%s7153_s11 + $0x30] sm:$0xff] }
0x11ee   :  { %v3713_v24 = vsel %vm168_vm1, %v3698_v43, 0.0 }
0x11f1   :  { %v3676_v15 = vpop.f32.mrf.mxu0 }
0x11f2   :  { %v3677_v56 = vadd.f32 %v6848_v53, %v3676_v15 }
0x11f3   :  { %v3314_v16 = vpop.permute.xlu1 %3313 }
0x11f4   :  { %v3321_v0 = vsel %vm487_vm12, %v3171_v60, %v3314_v16  ;;  %v6884_v51 = vadd.f32 %v3677_v56, %v6153_v22 }
0x11f5   :  { %3324 = vst.msk [vmem:[#allocation2 + $0x2a] sm:$0xff] %vm168_vm1, %v3321_v0 }
0x11f6   :  { %v3716_v42 = vsel %vm168_vm1, %v6884_v51, 0.0 }
0x11f9   :  { %v3679_v31 = vpop.f32.mrf.mxu0 }
0x11fa   :  { %v3680_v2 = vadd.f32 %v6848_v53, %v3679_v31 }
0x11fb   :  { %v3316_v11 = vpop.permute.xlu0 %3315 }
0x11fc   :  { %v6863_v8 = vadd.f32 %v3680_v2, %v6159_v25  ;;  %v3322_v9 = vsel %vm487_vm12, %v3174_v36, %v3316_v11  ;;  %v3612_v20 = vld [vmem:[#allocation2 + $0x28] sm:$0xff] }
0x11fd   :  { %3325 = vst.msk [vmem:[#allocation2 + $0x32] sm:$0x1] %vm758_vm15, %v3322_v9  ;;  %4510 = vmatmul.msk.f32.gmra.mxu0 %vm168_vm1, %v3612_v20 }
0x11fe   :  { %v3719_v37 = vsel %vm168_vm1, %v6863_v8, 0.0 }
0x11ff   :  { %3720 = vadd.xlane.f32.xlu1 %v3719_v37 }
0x1219   :  { %v3593_v21 = vpop.permute.xlu2 %3592 }
0x121a   :  { %v3601_v14 = vsel %vm487_vm12, %v3449_v55, %v3593_v21 }
0x121b   :  { %3604 = vst.msk [vmem:[#allocation2 + $0x33] sm:$0xff] %vm168_vm1, %v3601_v14 }
0x1222   :  { %v3613_v23 = vld [vmem:[#allocation2 + $0x30] sm:$0xff] }
0x1223   :  { %4511 = vmatmul.msk.f32.gmra.mxu0 %vm168_vm1, %v3613_v23 }
0x124f   :  { %v3516_v25 = vpop.xlane.xlu1 %3515 }
0x1250   :  { %v3521_v34 = vsub.f32 %v3509_v49, %v3516_v25 }
0x1252   :  { %v3525_v44 = vmul.f32 1.442695, %v3521_v34 }
0x1254   :  { %4910 = vpow2.f32 %v3525_v44 }
0x1257   :  { %v3388_v63 = vpop.xlane.xlu1 %3387  ;;  %v3519_v27 = vpop.xlane.xlu0 %3518 }
0x1258   :  { %v3391_v18 = vsub.f32 %v3379_v58, %v3388_v63  ;;  %v3522_v52 = vsub.f32 %v3510_v29, %v3519_v27 }
0x125a   :  { %v4911_v47 = vpop.eup %4910  ;;  %v3396_v45 = vmul.f32 1.442695, %v3391_v18  ;;  %v3527_v26 = vmul.f32 1.442695, %v3522_v52  ;;  %v3682_v57 = vpop.f32.mrf.mxu0  ;;  %v4519_v52 = vld [vmem:[%s7153_s11 + $0x38] sm:$0xff] }
0x125b   :  { %v3385_v62 = vpop.xlane.xlu2 %3384  ;;  %v3532_v61 = vsel %vm529_vm2, %v4911_v47, 0.0  ;;  %v3683_v6 = vadd.f32 %v6848_v53, %v3682_v57  ;;  %3981 = vmatpush.msra.mxu2 %v4519_v52 }
0x125c   :  { %4912 = vpow2.f32 %v3396_v45  ;;  %v3390_v3 = vsub.f32 %v3378_v38, %v3385_v62  ;;  %3533 = vadd.xlane.f32.xlu0 %v3532_v61 }
0x125d   :  { %4914 = vpow2.f32 %v3527_v26  ;;  %v6891_v10 = vadd.f32 %v3683_v6, %v6193_v39  ;;  %3982 = vmatpush.msra.mxu2 %v4518_v32 }
0x125e   :  { %v3394_v59 = vmul.f32 1.442695, %v3390_v3  ;;  %v4517_v3 = vld [vmem:[%s7153_s11 + $0x28] sm:$0xff] }
0x125f   :  { %v3712_v58 = vpop.xlane.xlu1 %3711  ;;  %v3722_v22 = vsel %vm168_vm1, %v6891_v10, 0.0  ;;  %3983 = vmatpush.msra.mxu2 %v4517_v3 }
0x1260   :  { %4916 = vpow2.f32 %v3394_v59  ;;  %v3737_v29 = vmul.f32 %v3712_v58, %v5138_v28 }
0x1262   :  { %v6876_v50 = vpop.eup %4912  ;;  %v6895_v7 = vsub.f32 %v6854_v46, %v3737_v29 }
0x1263   :  { %v4915_v54 = vpop.eup %4914  ;;  %v3404_v30 = vsel %vm536_vm0, %v6876_v50, 0.0 }
0x1264   :  { %3405 = vadd.xlane.f32.xlu1 %v3404_v30  ;;  %3714 = vadd.xlane.f32.xlu0 %v3713_v24  ;;  %v3535_v5 = vsel %vm536_vm0, %v4915_v54, 0.0  ;;  %v3755_v38 = vmul.f32 %v6895_v7, %v6895_v7 }
0x1265   :  { %3536 = vadd.xlane.f32.xlu2 %v3535_v5 }
0x1266   :  { %v4917_v1 = vpop.eup %4916  ;;  %v3764_v35 = vsel %vm168_vm1, %v3755_v38, 0.0 }
0x1267   :  { %v3401_v49 = vsel %vm529_vm2, %v4917_v1, 0.0 }
0x126c   :  { %3402 = vadd.xlane.f32.xlu0 %v3401_v49 }
0x126d   :  { %3717 = vadd.xlane.f32.xlu2 %v3716_v42 }
0x1272   :  { %v3721_v17 = vpop.xlane.xlu1 %3720 }
0x1273   :  { %v3740_v60 = vmul.f32 %v3721_v17, %v5138_v28  ;;  %v6974_v17 = vld [vmem:[%s7152_s10 + $0x1] ss:$0 sm:$0xff] }
0x1275   :  { %3723 = vadd.xlane.f32.xlu2 %v3722_v22  ;;  %v6914_v0 = vsub.f32 %v6863_v8, %v3740_v60 }
0x1277   :  { %v3758_v31 = vmul.f32 %v6914_v0, %v6914_v0 }
0x1279   :  { %v3773_v2 = vsel %vm168_vm1, %v3758_v31, 0.0 }
0x127a   :  { %v3685_v19 = vpop.f32.mrf.mxu0 }
0x127b   :  { %v3686_v33 = vadd.f32 %v6848_v53, %v3685_v19 }
0x127d   :  { %v6904_v39 = vadd.f32 %v3686_v33, %v6166_v41  ;;  %3765 = vadd.xlane.f32.xlu2 %v3764_v35 }
0x127f   :  { %v3725_v13 = vsel %vm168_vm1, %v6904_v39, 0.0 }
0x1280   :  { %3726 = vadd.xlane.f32.xlu0 %v3725_v13  ;;  %v6969_v13 = vld [vmem:[%s7151_s9 + $0x1] ss:$0 sm:$0xff] }
0x12a0   :  { %v3688_v12 = vpop.f32.mrf.mxu0 }
0x12a1   :  { %v3689_v15 = vadd.f32 %v6848_v53, %v3688_v12 }
0x12a3   :  { %v6911_v16 = vadd.f32 %v3689_v15, %v6183_v48 }
0x12a5   :  { %v3728_v41 = vsel %vm168_vm1, %v6911_v16, 0.0 }
0x12a6   :  { %3729 = vadd.xlane.f32.xlu1 %v3728_v41 }
0x12ae   :  { %3774 = vadd.xlane.f32.xlu1 %v3773_v2 }
0x12cf   :  { %v3534_v36 = vpop.xlane.xlu0 %3533 }
0x12d0   :  { %4918 = vrcp.f32 %v3534_v36 }
0x12d6   :  { %v4919_v11 = vpop.eup %4918 }
0x12d7   :  { %v3715_v9 = vpop.xlane.xlu0 %3714  ;;  %v3542_v20 = vmul.f32 %v4919_v11, %v4911_v47  ;;  %v3406_v63 = vpop.xlane.xlu1 %3405 }
0x12d8   :  { %v3738_v48 = vmul.f32 %v3715_v9, %v5138_v28  ;;  %v3537_v37 = vpop.xlane.xlu2 %3536 }
0x12d9   :  { %4920 = vrcp.f32 %v3537_v37  ;;  %4498 = vmatmul.msk.f32.gmra.mxu1 %vm529_vm2, %v3542_v20 }
0x12da   :  { %v6923_v8 = vsub.f32 %v3698_v43, %v3738_v48  ;;  %v4516_v43 = vld [vmem:[%s7153_s11 + $0x20] sm:$0xff] }
0x12db   :  { %3984 = vmatpush.msra.mxu2 %v4516_v43 }
0x12dc   :  { %v3756_v55 = vmul.f32 %v6923_v8, %v6923_v8 }
0x12de   :  { %v3767_v21 = vsel %vm168_vm1, %v3756_v55, 0.0 }
0x12df   :  { %v4921_v14 = vpop.eup %4920  ;;  %3768 = vadd.xlane.f32.xlu0 %v3767_v21  ;;  %v3403_v23 = vpop.xlane.xlu0 %3402 }
0x12e0   :  { %4922 = vrcp.f32 %v3403_v23  ;;  %v3718_v25 = vpop.xlane.xlu2 %3717  ;;  %v3543_v34 = vmul.f32 %v4921_v14, %v4915_v54 }
0x12e1   :  { %v3739_v44 = vmul.f32 %v3718_v25, %v5138_v28  ;;  %4924 = vrcp.f32 %v3406_v63 }
0x12e2   :  { %4499 = vmatmul.msk.f32.gmra.mxu1 %vm529_vm2, %v3543_v34 }
0x12e3   :  { %v6931_v27 = vsub.f32 %v6884_v51, %v3739_v44 }
0x12e5   :  { %v3757_v18 = vmul.f32 %v6931_v27, %v6931_v27 }
0x12e6   :  { %v4923_v47 = vpop.eup %4922 }
0x12e7   :  { %v3770_v45 = vsel %vm168_vm1, %v3757_v18, 0.0  ;;  %v3411_v26 = vmul.f32 %v4923_v47, %v4917_v1  ;;  %v4925_v54 = vpop.eup %4924 }
0x12e8   :  { %3771 = vadd.xlane.f32.xlu2 %v3770_v45  ;;  %v3724_v62 = vpop.xlane.xlu2 %3723  ;;  %v3412_v56 = vmul.f32 %v4925_v54, %v6876_v50 }
0x12e9   :  { %v3741_v61 = vmul.f32 %v3724_v62, %v5138_v28  ;;  %4488 = vmatmul.msk.f32.gmra.mxu2 %vm529_vm2, %v3411_v26 }
0x12eb   :  { %v6948_v59 = vsub.f32 %v6891_v10, %v3741_v61 }
0x12ed   :  { %v3759_v30 = vmul.f32 %v6948_v59, %v6948_v59 }
0x12ef   :  { %v3776_v24 = vsel %vm168_vm1, %v3759_v30, 0.0 }
0x12f0   :  { %3777 = vadd.xlane.f32.xlu0 %v3776_v24  ;;  %v3766_v5 = vpop.xlane.xlu2 %3765 }
0x12f1   :  { %v3791_v1 = vmul.f32 %v3766_v5, %v5138_v28  ;;  %4489 = vmatmul.msk.f32.gmra.mxu2 %vm529_vm2, %v3412_v56 }
0x12f3   :  { %v3800_v57 = vadd.f32 1e-12, %v3791_v1  ;;  %v3727_v49 = vpop.xlane.xlu0 %3726 }
0x12f4   :  { %v3742_v6 = vmul.f32 %v3727_v49, %v5138_v28 }
0x12f5   :  { %4926 = vrsqrt.f32 %v3800_v57  ;;  %vm3815_vm0 = vweird.f32 %v3800_v57 }
0x12f6   :  { %v6961_v42 = vsub.f32 %v6904_v39, %v3742_v6 }
0x12f8   :  { %v3760_v58 = vmul.f32 %v6961_v42, %v6961_v42 }
0x12fa   :  { %v3779_v29 = vsel %vm168_vm1, %v3760_v58, 0.0 }
0x12fb   :  { %v4927_v50 = vpop.eup %4926  ;;  %3780 = vadd.xlane.f32.xlu2 %v3779_v29 }
0x12fc   :  { %v3810_v22 = vmul.f32 %v4927_v50, %v3800_v57  ;;  %vm3816_vm2 = vweird.f32 %v4927_v50 }
0x12fd   :  { %vm3817_vm7 = vmor %vm3815_vm0, %vm3816_vm2 }
0x12fe   :  { %v3811_v38 = vmul.f32 %v4927_v50, %v3810_v22 }
0x1300   :  { %v3812_v19 = vmul.f32 0.5, %v3811_v38 }
0x1302   :  { %v3813_v33 = vsub.f32 1.5, %v3812_v19 }
0x1304   :  { %v3814_v35 = vmul.f32 %v4927_v50, %v3813_v33 }
0x1306   :  { %v3818_v39 = vsel %vm3817_vm7, %v4927_v50, %v3814_v35 }
0x1307   :  { %v3899_v12 = vmul.f32 %v3818_v39, %v6895_v7 }
0x1309   :  { %v3911_v60 = vmul.f32 %v6969_v13, %v3899_v12 }
0x130b   :  { %v3923_v15 = vadd.f32 %v6974_v17, %v3911_v60 }
0x130d   :  { %4521 = vmatmul.msk.f32.vlgmr.msra.gmra.mxu2 %vm168_vm1, %v3923_v15 }
0x1319   :  { %v3730_v41 = vpop.xlane.xlu1 %3729 }
0x131a   :  { %v3743_v31 = vmul.f32 %v3730_v41, %v5138_v28 }
0x131c   :  { %v6982_v2 = vsub.f32 %v6911_v16, %v3743_v31 }
0x131e   :  { %v3761_v36 = vmul.f32 %v6982_v2, %v6982_v2 }
0x1320   :  { %v3782_v11 = vsel %vm168_vm1, %v3761_v36, 0.0 }
0x1321   :  { %3783 = vadd.xlane.f32.xlu1 %v3782_v11  ;;  %v3775_v9 = vpop.xlane.xlu1 %3774 }
0x1322   :  { %v3794_v7 = vmul.f32 %v3775_v9, %v5138_v28 }
0x1324   :  { %v3803_v20 = vadd.f32 1e-12, %v3794_v7 }
0x1326   :  { %4928 = vrsqrt.f32 %v3803_v20  ;;  %vm3845_vm3 = vweird.f32 %v3803_v20 }
0x132c   :  { %v4929_v14 = vpop.eup %4928 }
0x132d   :  { %v3840_v44 = vmul.f32 %v4929_v14, %v3803_v20  ;;  %vm3846_vm11 = vweird.f32 %v4929_v14 }
0x132e   :  { %vm3847_vm2 = vmor %vm3845_vm3, %vm3846_vm11  ;;  %vm7189_vm3 = vcmask 523264  }
0x132f   :  { %v3841_v45 = vmul.f32 %v4929_v14, %v3840_v44  ;;  %v4535_v44 = vld [vmem:[%s7155_s13 + $0x68] sm:$0xff] }
0x1331   :  { %v3842_v43 = vmul.f32 0.5, %v3841_v45 }
0x1333   :  { %v3843_v57 = vsub.f32 1.5, %v3842_v43  ;;  %v4530_v43 = vld [vmem:[%s7155_s13 + $0x40] sm:$0xff] }
0x1335   :  { %v3844_v22 = vmul.f32 %v4929_v14, %v3843_v57 }
0x1337   :  { %v3848_v15 = vsel %vm3847_vm2, %v4929_v14, %v3844_v22  ;;  %vm7192_vm2 = vmmov %vm7189_vm3 }
0x1338   :  { %v3902_v11 = vmul.f32 %v3848_v15, %v6914_v0  ;;  %v4536_v0 = vld [vmem:[%s7155_s13 + $0x70] sm:$0xff] }
0x1352   :  { %v3769_v48 = vpop.xlane.xlu0 %3768 }
0x1353   :  { %v3792_v37 = vmul.f32 %v3769_v48, %v5138_v28 }
0x1355   :  { %v3801_v55 = vadd.f32 1e-12, %v3792_v37  ;;  %v4537_v37 = vld [vmem:[%s7155_s13 + $0x78] sm:$0xff] }
0x1356   :  { %v3583_v21 = vpop.f32.mrf.mxu1  ;;  %4143 = vmatpush.msra.mxu3 %v4537_v37 }
0x1357   :  { %4930 = vrsqrt.f32 %v3801_v55  ;;  %3594 = vrot.lane.b32.xlu0 %v3583_v21, %s7188_s29  ;;  %vm3825_vm14 = vweird.f32 %v3801_v55 }
0x1358   :  { %4144 = vmatpush.msra.mxu3 %v4536_v0 }
0x135a   :  { %4145 = vmatpush.msra.mxu3 %v4535_v44 }
0x135b   :  { %v3772_v23 = vpop.xlane.xlu2 %3771 }
0x135c   :  { %v3793_v25 = vmul.f32 %v3772_v23, %v5138_v28 }
0x135d   :  { %v4931_v34 = vpop.eup %4930 }
0x135e   :  { %v3820_v63 = vmul.f32 %v4931_v34, %v3801_v55  ;;  %v3802_v18 = vadd.f32 1e-12, %v3793_v25  ;;  %vm3826_vm4 = vweird.f32 %v4931_v34 }
0x135f   :  { %v3586_v52 = vpop.f32.mrf.mxu1  ;;  %vm3827_vm9 = vmor %vm3825_vm14, %vm3826_vm4 }
0x1360   :  { %v3821_v47 = vmul.f32 %v4931_v34, %v3820_v63  ;;  %4932 = vrsqrt.f32 %v3802_v18  ;;  %3596 = vrot.lane.b32.xlu2 %v3586_v52, %s7188_s29  ;;  %vm3835_vm5 = vweird.f32 %v3802_v18 }
0x1362   :  { %v3822_v26 = vmul.f32 0.5, %v3821_v47  ;;  %v4533_v47 = vld [vmem:[%s7155_s13 + $0x58] sm:$0xff] }
0x1363   :  { %v3778_v32 = vpop.xlane.xlu0 %3777 }
0x1364   :  { %v3823_v62 = vsub.f32 1.5, %v3822_v26  ;;  %v3795_v61 = vmul.f32 %v3778_v32, %v5138_v28  ;;  %v4532_v26 = vld [vmem:[%s7155_s13 + $0x50] sm:$0xff] }
0x1366   :  { %v4933_v3 = vpop.eup %4932  ;;  %v3824_v54 = vmul.f32 %v4931_v34, %v3823_v62  ;;  %v3804_v30 = vadd.f32 1e-12, %v3795_v61  ;;  %v4531_v61 = vld [vmem:[%s7155_s13 + $0x48] sm:$0xff] }
0x1367   :  { %v3830_v24 = vmul.f32 %v4933_v3, %v3802_v18  ;;  %vm3836_vm10 = vweird.f32 %v4933_v3  ;;  %v4534_v18 = vld [vmem:[%s7155_s13 + $0x60] sm:$0xff] }
0x1368   :  { %v3828_v56 = vsel %vm3827_vm9, %v4931_v34, %v3824_v54  ;;  %4934 = vrsqrt.f32 %v3804_v30  ;;  %vm3837_vm13 = vmor %vm3835_vm5, %vm3836_vm10  ;;  %vm3855_vm7 = vweird.f32 %v3804_v30  ;;  %4146 = vmatpush.msra.mxu3 %v4534_v18 }
0x1369   :  { %v3900_v5 = vmul.f32 %v3828_v56, %v6923_v8  ;;  %v3831_v1 = vmul.f32 %v4933_v3, %v3830_v24 }
0x136a   :  { %4147 = vmatpush.msra.mxu3 %v4533_v47 }
0x136b   :  { %v3832_v49 = vmul.f32 0.5, %v3831_v1  ;;  %v3912_v6 = vmul.f32 %v6969_v13, %v3900_v5 }
0x136c   :  { %v7011_v23 = vpop.f32.mrf.mxu2  ;;  %4148 = vmatpush.msra.mxu3 %v4532_v26 }
0x136d   :  { %v3833_v58 = vsub.f32 1.5, %v3832_v49  ;;  %v3924_v29 = vadd.f32 %v6974_v17, %v3912_v6 }
0x136e   :  { %v4935_v50 = vpop.eup %4934  ;;  %v3781_v38 = vpop.xlane.xlu2 %3780  ;;  %4149 = vmatpush.msra.mxu3 %v4531_v61 }
0x136f   :  { %v3834_v19 = vmul.f32 %v4933_v3, %v3833_v58  ;;  %v3850_v33 = vmul.f32 %v4935_v50, %v3804_v30  ;;  %v3796_v35 = vmul.f32 %v3781_v38, %v5138_v28  ;;  %4522 = vmatmul.msk.f32.gmra.mxu2 %vm168_vm1, %v3924_v29  ;;  %vm3856_vm0 = vweird.f32 %v4935_v50 }
0x1370   :  { %vm3857_vm4 = vmor %vm3855_vm7, %vm3856_vm0  ;;  %4150 = vmatpush.msra.mxu3 %v4530_v43 }
0x1371   :  { %v3838_v8 = vsel %vm3837_vm13, %v4933_v3, %v3834_v19  ;;  %v3851_v39 = vmul.f32 %v4935_v50, %v3850_v33  ;;  %v3805_v12 = vadd.f32 1e-12, %v3796_v35  ;;  %vm7193_vm0 = vmmov %vm7192_vm2 }
0x1372   :  { %v3901_v60 = vmul.f32 %v3838_v8, %v6931_v27  ;;  %v3914_v27 = vmul.f32 %v6969_v13, %v3902_v11  ;;  %vm7194_vm7 = vmmov %vm7193_vm0 }
0x1373   :  { %v3852_v41 = vmul.f32 0.5, %v3851_v39  ;;  %4936 = vrsqrt.f32 %v3805_v12  ;;  %vm3865_vm9 = vweird.f32 %v3805_v12 }
0x1374   :  { %v3913_v31 = vmul.f32 %v6969_v13, %v3901_v60  ;;  %v3926_v34 = vadd.f32 %v6974_v17, %v3914_v27  ;;  %v3455_v3 = vpop.f32.mrf.mxu2 }
0x1375   :  { %v3853_v36 = vsub.f32 1.5, %v3852_v41 }
0x1376   :  { %v3925_v9 = vadd.f32 %v6974_v17, %v3913_v31 }
0x1377   :  { %v3854_v7 = vmul.f32 %v4935_v50, %v3853_v36 }
0x1378   :  { %4523 = vmatmul.msk.f32.gmra.mxu2 %vm168_vm1, %v3925_v9 }
0x1379   :  { %v4937_v20 = vpop.eup %4936  ;;  %v3858_v55 = vsel %vm3857_vm4, %v4935_v50, %v3854_v7  ;;  %vm7195_vm4 = vmmov %vm7193_vm0 }
0x137a   :  { %v3860_v48 = vmul.f32 %v4937_v20, %v3805_v12  ;;  %v3903_v14 = vmul.f32 %v3858_v55, %v6948_v59  ;;  %vm3866_vm14 = vweird.f32 %v4937_v20 }
0x137b   :  { %vm3867_vm10 = vmor %vm3865_vm9, %vm3866_vm14  ;;  %vm4179_vm14 = vcmask 1041408   ;;  %vm4181_vm9 = vcmask 1042432  }
0x137c   :  { %v3861_v21 = vmul.f32 %v4937_v20, %v3860_v48  ;;  %v3915_v52 = vmul.f32 %v6969_v13, %v3903_v14 }
0x137e   :  { %v3862_v25 = vmul.f32 0.5, %v3861_v21  ;;  %v3927_v62 = vadd.f32 %v6974_v17, %v3915_v52 }
0x1380   :  { %v3863_v63 = vsub.f32 1.5, %v3862_v25  ;;  %4524 = vmatmul.msk.f32.gmra.mxu2 %vm168_vm1, %v3926_v34 }
0x1382   :  { %v3864_v59 = vmul.f32 %v4937_v20, %v3863_v63 }
0x1384   :  { %v3868_v45 = vsel %vm3867_vm10, %v4937_v20, %v3864_v59 }
0x1385   :  { %v3904_v32 = vmul.f32 %v3868_v45, %v6961_v42  ;;  %v7041_v42 = vld [vmem:[%s7154_s12 + $0x1] ss:$0 sm:$0xff] }
0x1387   :  { %v3916_v54 = vmul.f32 %v6969_v13, %v3904_v32 }
0x1388   :  { %4525 = vmatmul.msk.f32.gmra.mxu2 %vm168_vm1, %v3927_v62 }
0x1389   :  { %v3928_v30 = vadd.f32 %v6974_v17, %v3916_v54 }
0x1390   :  { %v3986_v24 = vpop.f32.mrf.mxu2  ;;  %4526 = vmatmul.msk.f32.gmra.mxu2 %vm168_vm1, %v3928_v30 }
0x1391   :  { %v3987_v56 = vadd.f32 %v7041_v42, %v3986_v24 }
0x1393   :  { %v4013_v5 = vmul.f32 %v3987_v56, %v3987_v56 }
0x1394   :  { %v3784_v1 = vpop.xlane.xlu1 %3783 }
0x1395   :  { %v4022_v57 = vmul.f32 %v4013_v5, %v3987_v56  ;;  %v3797_v49 = vmul.f32 %v3784_v1, %v5138_v28 }
0x1397   :  { %v4031_v6 = vmul.f32 0.044715, %v4022_v57  ;;  %v3806_v58 = vadd.f32 1e-12, %v3797_v49 }
0x1399   :  { %v4040_v29 = vadd.f32 %v4031_v6, %v3987_v56  ;;  %4938 = vrsqrt.f32 %v3806_v58  ;;  %vm3875_vm5 = vweird.f32 %v3806_v58 }
0x139b   :  { %v4049_v50 = vmul.f32 0.7978846, %v4040_v29 }
0x139d   :  { %4940 = vtanh.f32 %v4049_v50 }
0x139f   :  { %v4939_v22 = vpop.eup %4938 }
0x13a0   :  { %v3870_v38 = vmul.f32 %v4939_v22, %v3806_v58  ;;  %vm3876_vm11 = vweird.f32 %v4939_v22 }
0x13a1   :  { %vm3877_vm13 = vmor %vm3875_vm5, %vm3876_vm11 }
0x13a2   :  { %v3871_v19 = vmul.f32 %v4939_v22, %v3870_v38 }
0x13a3   :  { %v4941_v33 = vpop.eup %4940 }
0x13a4   :  { %v4067_v35 = vadd.f32 1.0, %v4941_v33  ;;  %v3872_v8 = vmul.f32 0.5, %v3871_v19 }
0x13a6   :  { %v4076_v39 = vmul.f32 0.5, %v4067_v35  ;;  %v3873_v12 = vsub.f32 1.5, %v3872_v8 }
0x13a8   :  { %v4085_v60 = vmul.f32 %v4076_v39, %v3987_v56  ;;  %v3874_v15 = vmul.f32 %v4939_v22, %v3873_v12 }
0x13aa   :  { %v3878_v41 = vsel %vm3877_vm13, %v4939_v22, %v3874_v15  ;;  %4539 = vmatmul.msk.f32.vlgmr.msra.gmra.mxu3 %vm7189_vm3, %v4085_v60 }
0x13ab   :  { %v3905_v31 = vmul.f32 %v3878_v41, %v6982_v2 }
0x13ad   :  { %v3917_v36 = vmul.f32 %v6969_v13, %v3905_v31 }
0x13af   :  { %v3929_v11 = vadd.f32 %v6974_v17, %v3917_v36 }
0x13b1   :  { %4527 = vmatmul.msk.f32.gmra.mxu2 %vm168_vm1, %v3929_v11 }
0x13ba   :  { %v3597_v9 = vpop.permute.xlu2 %3596 }
0x13bb   :  { %v3603_v7 = vsel %vm487_vm12, %v3455_v3, %v3597_v9 }
0x13bc   :  { %3606 = vst.msk [vmem:[#allocation2 + $0x43] sm:$0x1] %vm758_vm15, %v3603_v7  ;;  %vm7191_vm15 = vmmov %vm7189_vm3 }
0x13c9   :  { %v3595_v20 = vpop.permute.xlu0 %3594 }
0x13ca   :  { %v3602_v48 = vsel %vm487_vm12, %v7011_v23, %v3595_v20  ;;  %vm7190_vm12 = vmmov %vm7189_vm3 }
0x13cb   :  { %3605 = vst.msk [vmem:[#allocation2 + $0x3b] sm:$0xff] %vm168_vm1, %v3602_v48 }
0x13d2   :  { %v3614_v27 = vld [vmem:[#allocation2 + $0x38] sm:$0xff]  ;;  %v3615_v2 = vld [vmem:[#allocation2 + $0x40] sm:$0xf] }
0x13d3   :  { %4512 = vmatmul.msk.f32.gmra.mxu0 %vm168_vm1, %v3614_v27 }
0x13db   :  { %4513 = vmatmul.msk.f32.gmra.mxu0 %vm168_vm1, %v3615_v2 }
0x13f2   :  { %v3989_v37 = vpop.f32.mrf.mxu2 }
0x13f3   :  { %v3990_v55 = vadd.f32 %v7041_v42, %v3989_v37 }
0x13f5   :  { %v4014_v21 = vmul.f32 %v3990_v55, %v3990_v55 }
0x13f7   :  { %v4023_v0 = vmul.f32 %v4014_v21, %v3990_v55 }
0x13f9   :  { %v4032_v14 = vmul.f32 0.044715, %v4023_v0 }
0x13fb   :  { %v4041_v25 = vadd.f32 %v4032_v14, %v3990_v55  ;;  %v3992_v34 = vpop.f32.mrf.mxu2 }
0x13fc   :  { %v3993_v44 = vadd.f32 %v7041_v42, %v3992_v34 }
0x13fd   :  { %v4050_v63 = vmul.f32 0.7978846, %v4041_v25 }
0x13fe   :  { %v4015_v23 = vmul.f32 %v3993_v44, %v3993_v44 }
0x13ff   :  { %4942 = vtanh.f32 %v4050_v63 }
0x1400   :  { %v4024_v18 = vmul.f32 %v4015_v23, %v3993_v44 }
0x1402   :  { %v4033_v59 = vmul.f32 0.044715, %v4024_v18 }
0x1403   :  { %v3995_v52 = vpop.f32.mrf.mxu2 }
0x1404   :  { %v4042_v47 = vadd.f32 %v4033_v59, %v3993_v44  ;;  %v3996_v45 = vadd.f32 %v7041_v42, %v3995_v52 }
0x1405   :  { %v4943_v26 = vpop.eup %4942 }
0x1406   :  { %v4051_v32 = vmul.f32 0.7978846, %v4042_v47  ;;  %v4016_v62 = vmul.f32 %v3996_v45, %v3996_v45  ;;  %v4068_v61 = vadd.f32 1.0, %v4943_v26 }
0x1408   :  { %4944 = vtanh.f32 %v4051_v32  ;;  %v4025_v3 = vmul.f32 %v4016_v62, %v3996_v45  ;;  %v4077_v43 = vmul.f32 0.5, %v4068_v61 }
0x140a   :  { %v4034_v54 = vmul.f32 0.044715, %v4025_v3  ;;  %v4086_v30 = vmul.f32 %v4077_v43, %v3990_v55 }
0x140b   :  { %v3998_v24 = vpop.f32.mrf.mxu2 }
0x140c   :  { %v4043_v56 = vadd.f32 %v4034_v54, %v3996_v45  ;;  %v3999_v5 = vadd.f32 %v7041_v42, %v3998_v24  ;;  %4540 = vmatmul.msk.f32.gmra.mxu3 %vm7190_vm12, %v4086_v30 }
0x140e   :  { %v4945_v1 = vpop.eup %4944  ;;  %v4052_v57 = vmul.f32 0.7978846, %v4043_v56  ;;  %v4017_v49 = vmul.f32 %v3999_v5, %v3999_v5 }
0x140f   :  { %v4069_v6 = vadd.f32 1.0, %v4945_v1 }
0x1410   :  { %4946 = vtanh.f32 %v4052_v57  ;;  %v4026_v58 = vmul.f32 %v4017_v49, %v3999_v5 }
0x1411   :  { %v4078_v29 = vmul.f32 0.5, %v4069_v6 }
0x1412   :  { %v4035_v50 = vmul.f32 0.044715, %v4026_v58 }
0x1413   :  { %v4001_v22 = vpop.f32.mrf.mxu2  ;;  %v4087_v38 = vmul.f32 %v4078_v29, %v3993_v44 }
0x1414   :  { %v4044_v19 = vadd.f32 %v4035_v50, %v3999_v5  ;;  %v4002_v33 = vadd.f32 %v7041_v42, %v4001_v22 }
0x1415   :  { %4541 = vmatmul.msk.f32.gmra.mxu3 %vm7191_vm15, %v4087_v38 }
0x1416   :  { %v4947_v35 = vpop.eup %4946  ;;  %v4053_v8 = vmul.f32 0.7978846, %v4044_v19  ;;  %v4018_v39 = vmul.f32 %v4002_v33, %v4002_v33 }
0x1417   :  { %v4070_v12 = vadd.f32 1.0, %v4947_v35 }
0x1418   :  { %4948 = vtanh.f32 %v4053_v8  ;;  %v4027_v60 = vmul.f32 %v4018_v39, %v4002_v33 }
0x1419   :  { %v4079_v15 = vmul.f32 0.5, %v4070_v12 }
0x141a   :  { %v4036_v41 = vmul.f32 0.044715, %v4027_v60 }
0x141b   :  { %v4088_v31 = vmul.f32 %v4079_v15, %v3996_v45 }
0x141c   :  { %v4045_v36 = vadd.f32 %v4036_v41, %v4002_v33 }
0x141d   :  { %4542 = vmatmul.msk.f32.gmra.mxu3 %vm7192_vm2, %v4088_v31  ;;  %vm7197_vm2 = vmmov %vm7193_vm0 }
0x141e   :  { %v4949_v11 = vpop.eup %4948  ;;  %v4054_v9 = vmul.f32 0.7978846, %v4045_v36 }
0x141f   :  { %v4071_v7 = vadd.f32 1.0, %v4949_v11 }
0x1420   :  { %4950 = vtanh.f32 %v4054_v9 }
0x1421   :  { %v4080_v20 = vmul.f32 0.5, %v4071_v7 }
0x1423   :  { %v4089_v48 = vmul.f32 %v4080_v20, %v3999_v5 }
0x1425   :  { %4543 = vmatmul.msk.f32.gmra.mxu3 %vm7193_vm0, %v4089_v48 }
0x1426   :  { %v4951_v27 = vpop.eup %4950 }
0x1427   :  { %v4072_v2 = vadd.f32 1.0, %v4951_v27 }
0x1429   :  { %v4081_v37 = vmul.f32 0.5, %v4072_v2 }
0x142b   :  { %v4090_v55 = vmul.f32 %v4081_v37, %v4002_v33 }
0x142d   :  { %4544 = vmatmul.msk.f32.gmra.mxu3 %vm7194_vm7, %v4090_v55  ;;  %v4152_v54 = vpop.f32.mrf.mxu3  ;;  %vm4260_vm7 = vcmask 257026  }
0x1434   :  { %v4004_v21 = vpop.f32.mrf.mxu2 }
0x1435   :  { %v4005_v0 = vadd.f32 %v7041_v42, %v4004_v21 }
0x1437   :  { %v4019_v14 = vmul.f32 %v4005_v0, %v4005_v0 }
0x1439   :  { %v4028_v25 = vmul.f32 %v4019_v14, %v4005_v0 }
0x143b   :  { %v4037_v34 = vmul.f32 0.044715, %v4028_v25 }
0x143d   :  { %v4046_v44 = vadd.f32 %v4037_v34, %v4005_v0 }
0x143f   :  { %v4055_v63 = vmul.f32 0.7978846, %v4046_v44 }
0x1441   :  { %4952 = vtanh.f32 %v4055_v63 }
0x1447   :  { %v4953_v23 = vpop.eup %4952 }
0x1448   :  { %v4073_v18 = vadd.f32 1.0, %v4953_v23 }
0x144a   :  { %v4082_v59 = vmul.f32 0.5, %v4073_v18 }
0x144c   :  { %v4091_v52 = vmul.f32 %v4082_v59, %v4005_v0 }
0x144e   :  { %4545 = vmatmul.msk.f32.gmra.mxu3 %vm7195_vm4, %v4091_v52  ;;  %vm4273_vm4 = vcmask 1024  }
0x1450   :  { %v3691_v47 = vpop.f32.mrf.mxu0 }
0x1451   :  { %v3692_v45 = vadd.f32 %v6848_v53, %v3691_v47 }
0x1453   :  { %v3704_v26 = vadd.f32 %v3692_v45, %v6200_v4  ;;  %v4654_v4 = vld [vmem:[%s7156_s14 + $0x1] ss:$0 sm:$0xff] }
0x1455   :  { %v3731_v32 = vsel %vm168_vm1, %v3704_v26, 0.0 }
0x1456   :  { %3732 = vadd.xlane.f32.xlu1 %v3731_v32 }
0x1458   :  { %v3694_v62 = vpop.f32.mrf.mxu0 }
0x1459   :  { %v3695_v61 = vadd.f32 %v6848_v53, %v3694_v62 }
0x145b   :  { %v3705_v3 = vadd.f32 %v3695_v61, %v6218_v40  ;;  %v4153_v40 = vadd.f32 %v4654_v4, %v4152_v54 }
0x145d   :  { %v3734_v43 = vsel %vm193_vm8, %v3705_v3, 0.0  ;;  %v4174_v35 = vadd.f32 %v4153_v40, %v6854_v46 }
0x145e   :  { %3735 = vadd.xlane.f32.xlu1 %v3734_v43 }
0x148f   :  { %v4155_v30 = vpop.f32.mrf.mxu3 }
0x1490   :  { %v4218_v30 = vld [vmem:[%s7161_s17 + $0x18] sm:$0xff] }
0x1491   :  { %4238 = vmatpush.msrb.mxu1 %v4218_v30 }
0x1498   :  { %v4157_v24 = vpop.f32.mrf.mxu3 }
0x1499   :  { %v4158_v6 = vadd.f32 %v4654_v4, %v4157_v24  ;;  %v4217_v24 = vld [vmem:[%s7161_s17 + $0x10] sm:$0xff] }
0x149a   :  { %4239 = vmatpush.msrb.mxu1 %v4217_v24 }
0x149b   :  { %v4175_v50 = vadd.f32 %v4158_v6, %v6884_v51 }
0x149d   :  { %v4178_v12 = vsel %vm581_vm6, %v4174_v35, %v4175_v50  ;;  %v4656_v50 = vld [vmem:[%s7158_s16] ss:$0 sm:$0xff] }
0x14a0   :  { %v4160_v56 = vpop.f32.mrf.mxu3 }
0x14a1   :  { %v4216_v56 = vld [vmem:[%s7161_s17 + $0x8] sm:$0xff] }
0x14a2   :  { %4240 = vmatpush.msrb.mxu1 %v4216_v56 }
0x14a8   :  { %v4162_v5 = vpop.f32.mrf.mxu3 }
0x14a9   :  { %v4163_v58 = vadd.f32 %v4654_v4, %v4162_v5 }
0x14ab   :  { %v4176_v38 = vadd.f32 %v4163_v58, %v6891_v10 }
0x14ad   :  { %v4180_v51 = vsel %vm4179_vm14, %v4178_v12, %v4176_v38 }
0x14b0   :  { %v4165_v1 = vpop.f32.mrf.mxu3 }
0x14c9   :  { %v3733_v57 = vpop.xlane.xlu1 %3732 }
0x14ca   :  { %v3744_v49 = vmul.f32 %v3733_v57, %v5138_v28 }
0x14cc   :  { %v3753_v53 = vsub.f32 %v3704_v26, %v3744_v49 }
0x14ce   :  { %v3762_v29 = vmul.f32 %v3753_v53, %v3753_v53 }
0x14d0   :  { %v3785_v22 = vsel %vm168_vm1, %v3762_v29, 0.0 }
0x14d1   :  { %v4167_v19 = vpop.f32.mrf.mxu3  ;;  %3786 = vadd.xlane.f32.xlu0 %v3785_v22  ;;  %v3736_v33 = vpop.xlane.xlu1 %3735 }
0x14d2   :  { %v4168_v8 = vadd.f32 %v4654_v4, %v4167_v19  ;;  %v3745_v39 = vmul.f32 %v3736_v33, %v5138_v28 }
0x14d4   :  { %v4177_v60 = vadd.f32 %v4168_v8, %v6911_v16  ;;  %v3754_v15 = vsub.f32 %v3705_v3, %v3745_v39 }
0x14d6   :  { %v4182_v41 = vsel %vm4181_vm9, %v4180_v51, %v4177_v60  ;;  %v3763_v31 = vmul.f32 %v3754_v15, %v3754_v15 }
0x14d7   :  { %v4185_v10 = vsel %vm193_vm8, %v4182_v41, 0.0 }
0x14d8   :  { %4186 = vadd.xlane.f32.xlu2 %v4185_v10  ;;  %v3788_v36 = vsel %vm193_vm8, %v3763_v31, 0.0 }
0x14d9   :  { %3789 = vadd.xlane.f32.xlu1 %v3788_v36 }
0x1544   :  { %v3787_v46 = vpop.xlane.xlu0 %3786 }
0x1545   :  { %v3798_v11 = vmul.f32 %v3787_v46, %v5138_v28 }
0x1547   :  { %v3807_v9 = vadd.f32 1e-12, %v3798_v11 }
0x1549   :  { %4954 = vrsqrt.f32 %v3807_v9  ;;  %vm3885_vm10 = vweird.f32 %v3807_v9 }
0x154b   :  { %v4187_v7 = vpop.xlane.xlu2 %4186 }
0x154c   :  { %v4188_v20 = vmul.f32 %v4187_v7, %v5138_v28  ;;  %v3790_v48 = vpop.xlane.xlu1 %3789 }
0x154d   :  { %v3799_v16 = vmul.f32 %v3790_v48, %v5138_v28 }
0x154e   :  { %v7093_v27 = vsub.f32 %v4182_v41, %v4188_v20 }
0x154f   :  { %v4955_v2 = vpop.eup %4954  ;;  %v3808_v37 = vadd.f32 1e-12, %v3799_v16 }
0x1550   :  { %v3880_v55 = vmul.f32 %v4955_v2, %v3807_v9  ;;  %v4190_v21 = vmul.f32 %v7093_v27, %v7093_v27  ;;  %vm3886_vm6 = vweird.f32 %v4955_v2 }
0x1551   :  { %4956 = vrsqrt.f32 %v3808_v37  ;;  %vm3887_vm11 = vmor %vm3885_vm10, %vm3886_vm6 }
0x1552   :  { %v3881_v0 = vmul.f32 %v4955_v2, %v3880_v55  ;;  %v4191_v14 = vsel %vm193_vm8, %v4190_v21, 0.0  ;;  %vm3895_vm8 = vweird.f32 %v3808_v37 }
0x1553   :  { %4192 = vadd.xlane.f32.xlu1 %v4191_v14 }
0x1554   :  { %v3882_v25 = vmul.f32 0.5, %v3881_v0 }
0x1556   :  { %v3883_v34 = vsub.f32 1.5, %v3882_v25 }
0x1557   :  { %v4957_v44 = vpop.eup %4956 }
0x1558   :  { %v3884_v63 = vmul.f32 %v4955_v2, %v3883_v34  ;;  %v3890_v23 = vmul.f32 %v4957_v44, %v3808_v37  ;;  %vm3896_vm5 = vweird.f32 %v4957_v44 }
0x1559   :  { %vm3897_vm13 = vmor %vm3895_vm8, %vm3896_vm5 }
0x155a   :  { %v3888_v18 = vsel %vm3887_vm11, %v4955_v2, %v3884_v63  ;;  %v3891_v59 = vmul.f32 %v4957_v44, %v3890_v23 }
0x155b   :  { %v3906_v52 = vmul.f32 %v3888_v18, %v3753_v53  ;;  %v4657_v53 = vld [vmem:[%s7159_s19] ss:$0 sm:$0xff] }
0x155c   :  { %v3892_v47 = vmul.f32 0.5, %v3891_v59  ;;  %v26_v59 = vstv %s7162_s20 }
0x155d   :  { %v3918_v45 = vmul.f32 %v6969_v13, %v3906_v52  ;;  %27 = vst [vmem:[#allocation3] sm:$0x1] %v26_v59 }
0x155e   :  { %v3893_v26 = vsub.f32 1.5, %v3892_v47 }
0x155f   :  { %v3930_v32 = vadd.f32 %v6974_v17, %v3918_v45 }
0x1560   :  { %v3894_v62 = vmul.f32 %v4957_v44, %v3893_v26 }
0x1561   :  { %4528 = vmatmul.msk.f32.gmra.mxu2 %vm168_vm1, %v3930_v32 }
0x1562   :  { %v3898_v61 = vsel %vm3897_vm13, %v4957_v44, %v3894_v62 }
0x1563   :  { %v3907_v3 = vmul.f32 %v3898_v61, %v3754_v15 }
0x1564   :  { %v4659_v45 = vld [vmem:[#allocation3] ss:$0 sm:$0xff] }
0x1565   :  { %v3919_v43 = vmul.f32 %v6969_v13, %v3907_v3  ;;  %v4215_v13 = vld [vmem:[%s7161_s17] sm:$0xff] }
0x1566   :  { %4241 = vmatpush.msrb.mxu1 %v4215_v13 }
0x1567   :  { %v3931_v54 = vadd.f32 %v6974_v17, %v3919_v43 }
0x1569   :  { %4529 = vmatmul.msk.f32.gmra.mxu2 %vm168_vm1, %v3931_v54 }
0x156c   :  { %4256 = vrot.lane.b32.xlu1 %v4657_v53, %s4967_s30 }
0x15c6   :  { %v4193_v17 = vpop.xlane.xlu1 %4192 }
0x15c7   :  { %v4194_v5 = vmul.f32 %v4193_v17, %v5138_v28  ;;  %v4655_v28 = vld [vmem:[%s7157_s15] ss:$0 sm:$0xff] }
0x15c9   :  { %v4195_v1 = vadd.f32 1e-12, %v4194_v5 }
0x15cb   :  { %4958 = vrsqrt.f32 %v4195_v1  ;;  %vm4202_vm12 = vweird.f32 %v4195_v1 }
0x15d1   :  { %v4959_v57 = vpop.eup %4958 }
0x15d2   :  { %v4197_v4 = vmul.f32 %v4959_v57, %v4195_v1  ;;  %vm4203_vm3 = vweird.f32 %v4959_v57 }
0x15d3   :  { %vm4204_vm15 = vmor %vm4202_vm12, %vm4203_vm3 }
0x15d4   :  { %v4198_v49 = vmul.f32 %v4959_v57, %v4197_v4 }
0x15d6   :  { %v4199_v6 = vmul.f32 0.5, %v4198_v49 }
0x15d8   :  { %v4200_v58 = vsub.f32 1.5, %v4199_v6 }
0x15da   :  { %v4201_v40 = vmul.f32 %v4959_v57, %v4200_v58 }
0x15dc   :  { %v4205_v29 = vsel %vm4204_vm15, %v4959_v57, %v4201_v40 }
0x15dd   :  { %v4206_v22 = vmul.f32 %v4205_v29, %v7093_v27 }
0x15de   :  { %v4257_v0 = vpop.permute.xlu1 %4256 }
0x15df   :  { %v4210_v38 = vmul.f32 %v4655_v28, %v4206_v22 }
0x15e1   :  { %v4214_v19 = vadd.f32 %v4656_v50, %v4210_v38 }
0x15e3   :  { %4548 = vmatmul.msk.f32.vlgmr.msrb.gmra.mxu1 %vm168_vm1, %v4214_v19  ;;  %vm7196_vm1 = vmmov %vm7193_vm0  ;;  %vm4252_vm0 = vcmask 254976  }
0x15e4   :  { %v4007_v33 = vpop.f32.mrf.mxu2 }
0x15e5   :  { %v4008_v35 = vadd.f32 %v7041_v42, %v4007_v33 }
0x15e7   :  { %v4020_v8 = vmul.f32 %v4008_v35, %v4008_v35 }
0x15e9   :  { %v4029_v39 = vmul.f32 %v4020_v8, %v4008_v35 }
0x15eb   :  { %v4038_v12 = vmul.f32 0.044715, %v4029_v39 }
0x15ec   :  { %v4010_v60 = vpop.f32.mrf.mxu2 }
0x15ed   :  { %v4047_v15 = vadd.f32 %v4038_v12, %v4008_v35  ;;  %v4011_v51 = vadd.f32 %v7041_v42, %v4010_v60  ;;  %v4658_v42 = vld [vmem:[%s7160_s18] ss:$0 sm:$0xff] }
0x15ef   :  { %v4056_v41 = vmul.f32 0.7978846, %v4047_v15  ;;  %v4021_v31 = vmul.f32 %v4011_v51, %v4011_v51 }
0x15f1   :  { %4960 = vtanh.f32 %v4056_v41  ;;  %v4030_v10 = vmul.f32 %v4021_v31, %v4011_v51 }
0x15f3   :  { %v4039_v36 = vmul.f32 0.044715, %v4030_v10 }
0x15f5   :  { %v4048_v46 = vadd.f32 %v4039_v36, %v4011_v51 }
0x15f7   :  { %v4961_v11 = vpop.eup %4960  ;;  %v4057_v9 = vmul.f32 0.7978846, %v4048_v46 }
0x15f8   :  { %v4074_v7 = vadd.f32 1.0, %v4961_v11 }
0x15f9   :  { %4962 = vtanh.f32 %v4057_v9 }
0x15fa   :  { %v4083_v20 = vmul.f32 0.5, %v4074_v7 }
0x15fc   :  { %v4092_v48 = vmul.f32 %v4083_v20, %v4008_v35 }
0x15fe   :  { %4546 = vmatmul.msk.f32.gmra.mxu3 %vm7196_vm1, %v4092_v48 }
0x15ff   :  { %v4963_v16 = vpop.eup %4962 }
0x1600   :  { %v4075_v27 = vadd.f32 1.0, %v4963_v16 }
0x1602   :  { %v4084_v2 = vmul.f32 0.5, %v4075_v27 }
0x1604   :  { %v4093_v37 = vmul.f32 %v4084_v2, %v4011_v51 }
0x1606   :  { %4547 = vmatmul.msk.f32.gmra.mxu3 %vm7197_vm2, %v4093_v37 }
0x1660   :  { %v4243_v55 = vpop.f32.mrf.mxu1 }
0x1661   :  { %v4244_v21 = vadd.f32 %v4658_v42, %v4243_v55 }
0x1663   :  { %4964 = vtanh.f32 %v4244_v21 }
0x1669   :  { %v4965_v14 = vpop.eup %4964 }
0x166a   :  { %v4259_v25 = vmul.f32 %v4965_v14, %v4257_v0  ;;  %v4251_v34 = vmul.f32 %v4965_v14, %v4657_v53 }
0x166c   :  { %v4253_v44 = vsel %vm4252_vm0, %v4251_v34, 0.0  ;;  %v4261_v63 = vsel %vm4260_vm7, %v4259_v25, 0.0 }
0x166d   :  { %4254 = vadd.xlane.f32.xlu1 %v4253_v44  ;;  %4262 = vadd.xlane.f32.xlu0 %v4261_v63 }
0x1681   :  { %v4170_v23 = vpop.f32.mrf.mxu3 }
0x1689   :  { %v4172_v18 = vpop.f32.mrf.mxu3 }
0x16e0   :  { %v4263_v52 = vpop.xlane.xlu0 %4262  ;;  %v4255_v26 = vpop.xlane.xlu1 %4254 }
0x16e1   :  { %v4265_v47 = vrot.slane %v4263_v52, 2 }
0x16e3   :  { %v4267_v32 = vadd.f32 %v4265_v47, %v4255_v26 }
0x16e5   :  { %v4272_v62 = vadd.f32 %v4659_v45, %v4267_v32 }
0x16e7   :  { %4274 = vst.msk [vmem:[%s7163_s21] sm:$0x3] %vm4273_vm4, %v4272_v62 }

</bundles_post_ra>
